<compile_context>
chip_gen: v6e
topology: v6e:2x2x1
jax: 0.10.0
libtpu: 0.0.40
codegen_flags: <defaults>
</compile_context>

<pallas_src>
import functools

import jax
import jax.numpy as jnp
from jax.experimental import pallas as pl
from jax.experimental.pallas import tpu as pltpu


# ------------------------- Pallas kernel (hot path) -------------------------

def _cconv_fused_kernel(x_ref, w_ref, b_ref, o_ref, p_ref, *,
                        kh, kw, stride, dilation, th, Wo, cin2):
    # x_ref: [1, Hp, Wp, 2*Cin]      padded NHWC image (bf16), resident per batch
    # w_ref: [kh*kw*2*Cin, 2*Cout]   flattened block weight (bf16)
    # b_ref: [1, 2*Cout]             combined bias (f32): [br-bi | br+bi]
    # o_ref: [1, th*Wo, 2*Cout]      output tile (f32)
    # p_ref: [th*Wo, kh*kw*2*Cin]    VMEM scratch: fused-im2col patch tile (bf16)
    t = pl.program_id(1)
    h0 = t * (th * stride)                  # first padded input row of this tile
    hlen = (th - 1) * stride + 1
    wlen = (Wo - 1) * stride + 1

    idx = 0
    for i in range(kh):
        for j in range(kw):
            c0 = j * dilation
            blk = x_ref[0, pl.ds(h0 + i * dilation, hlen), c0:c0 + wlen, :]
            if stride > 1:
                # TODO(synk): stride>1 relies on strided value-slice lowering
                # (untested path; module default / test path is stride=1).
                blk = blk[::stride, ::stride, :]
            # [th, Wo, 2Cin] -> [th*Wo, 2Cin]; write into the patch scratch at
            # this (i, j)'s channel-column offset.
            p_ref[:, idx * cin2:(idx + 1) * cin2] = blk.reshape(th * Wo, cin2)
            idx += 1

    # Single combined complex matmul on the MXU, f32 accumulation.
    acc = jnp.dot(p_ref[...], w_ref[...], preferred_element_type=jnp.float32)
    o_ref[0] = acc + b_ref[...]


def _pick_row_tile(Ho, Wo, target_rows=2048):
    """Output rows handled per kernel invocation (M tile = th * Wo)."""
    if Ho * Wo <= target_rows:
        return Ho
    cands = [t for t in range(1, Ho) if Ho % t == 0 and (t * Wo) % 8 == 0]
    if not cands:
        return Ho
    fitting = [t for t in cands if t * Wo <= target_rows]
    return max(fitting) if fitting else min(cands)


# ------------------------------- module wrapper -------------------------------

class CConv2dPallas:
    """JAX/Pallas equivalent of the PyTorch CConv2d module (groups=1)."""
    # TODO(synk): grouped convolution (groups > 1) is not implemented.

    def __init__(self, in_channel, out_channel, kernel_size, stride=1,
                 padding=0, dilation=1, bias=True, *, key):
        if isinstance(kernel_size, int):
            kernel_size = (kernel_size, kernel_size)
        self.kh, self.kw = kernel_size
        self.stride = stride
        self.padding = padding
        self.dilation = dilation
        self.cin = in_channel
        self.cout = out_channel

        kwr, kwi, kbr, kbi = jax.random.split(key, 4)
        fan_in = in_channel * self.kh * self.kw
        fan_out = out_channel * self.kh * self.kw
        # xavier_uniform_ for weights
        limit = (6.0 / (fan_in + fan_out)) ** 0.5
        wshape = (out_channel, in_channel, self.kh, self.kw)
        self.w_real = jax.random.uniform(kwr, wshape, jnp.float32, -limit, limit)
        self.w_imag = jax.random.uniform(kwi, wshape, jnp.float32, -limit, limit)
        # PyTorch default Conv2d bias init: U(-1/sqrt(fan_in), 1/sqrt(fan_in))
        if bias:
            bl = 1.0 / (fan_in ** 0.5)
            self.b_real = jax.random.uniform(kbr, (out_channel,), jnp.float32, -bl, bl)
            self.b_imag = jax.random.uniform(kbi, (out_channel,), jnp.float32, -bl, bl)
        else:
            self.b_real = jnp.zeros((out_channel,), jnp.float32)
            self.b_imag = jnp.zeros((out_channel,), jnp.float32)

    @functools.partial(jax.jit, static_argnums=0)
    def __call__(self, x):
        # x: [B, Cin, H, W, 2]
        B, Cin, H, W, _ = x.shape
        p, s, d = self.padding, self.stride, self.dilation
        kh, kw = self.kh, self.kw
        Hp, Wp = H + 2 * p, W + 2 * p
        Ho = (Hp - d * (kh - 1) - 1) // s + 1
        Wo = (Wp - d * (kw - 1) - 1) // s + 1
        cin2 = 2 * Cin
        cout2 = 2 * self.cout
        K2 = kh * kw * cin2

        # Stack real/imag as extra input channels, pad spatially, NHWC, bf16.
        xs = jnp.concatenate([x[..., 0], x[..., 1]], axis=1)        # [B, 2Cin, H, W]
        xs = jnp.pad(xs, ((0, 0), (0, 0), (p, p), (p, p)))
        xs = xs.transpose(0, 2, 3, 1).astype(jnp.bfloat16)          # [B, Hp, Wp, 2Cin]

        # Block weight [[Wr, -Wi], [Wi, Wr]] flattened (kh, kw, channel)-major.
        w_top = jnp.concatenate([self.w_real, -self.w_imag], axis=1)
        w_bot = jnp.concatenate([self.w_imag, self.w_real], axis=1)
        wc = jnp.concatenate([w_top, w_bot], axis=0)                 # [2Cout, 2Cin, kh, kw]
        wmat = wc.transpose(2, 3, 1, 0).reshape(K2, cout2).astype(jnp.bfloat16)

        # Combined bias: real out gets (br - bi), imag out gets (br + bi).
        bvec = jnp.concatenate([self.b_real - self.b_imag,
                                self.b_real + self.b_imag]).reshape(1, cout2)

        th = _pick_row_tile(Ho, Wo)
        T = Ho // th

        kernel = functools.partial(
            _cconv_fused_kernel, kh=kh, kw=kw, stride=s, dilation=d,
            th=th, Wo=Wo, cin2=cin2)

        # TODO(synk): for very large images the whole padded image of one batch
        # element is kept resident in VMEM; a halo'd manual-DMA pipeline would
        # be needed beyond that regime.
        out = pl.pallas_call(
            kernel,
            out_shape=jax.ShapeDtypeStruct((B, Ho * Wo, cout2), jnp.float32),
            grid_spec=pltpu.PrefetchScalarGridSpec(
                num_scalar_prefetch=0,
                grid=(B, T),
                in_specs=[
                    pl.BlockSpec((1, Hp, Wp, cin2), lambda b, t: (b, 0, 0, 0)),
                    pl.BlockSpec((K2, cout2), lambda b, t: (0, 0)),
                    pl.BlockSpec((1, cout2), lambda b, t: (0, 0)),
                ],
                out_specs=pl.BlockSpec((1, th * Wo, cout2), lambda b, t: (b, t, 0)),
                scratch_shapes=[pltpu.VMEM((th * Wo, K2), jnp.bfloat16)],
            ),
            compiler_params=pltpu.CompilerParams(
                dimension_semantics=("parallel", "arbitrary"),
                vmem_limit_bytes=32 * 1024 * 1024),
        )(xs, wmat, bvec)

        # [B, Ho*Wo, 2Cout] -> [B, Cout, Ho, Wo, 2]  (real block first)
        out = out.reshape(B, Ho, Wo, 2, self.cout).transpose(0, 4, 1, 2, 3)
        return out


# --------------------------------- main --------------------------------------

if __name__ == "__main__":
    key = jax.random.PRNGKey(0)
    k_param, k_x = jax.random.split(key)

    B, Cin, Cout, H, W = 2, 4, 8, 16, 16
    module = CConv2dPallas(Cin, Cout, kernel_size=3, stride=1, padding=1,
                           bias=True, key=k_param)

    x = jax.random.normal(k_x, (B, Cin, H, W, 2), jnp.float32)

    out = jax.block_until_ready(module(x))

    # Pure-JAX reference.  Operands are rounded to bf16 to mirror the kernel's
    # bf16 MXU inputs; accumulation is f32 in both.
    def conv_ref(inp, w, b):
        y = jax.lax.conv_general_dilated(
            inp, w, window_strides=(1, 1), padding=((1, 1), (1, 1)),
            dimension_numbers=("NCHW", "OIHW", "NCHW"),
            preferred_element_type=jnp.float32)
        return y + b[None, :, None, None]

    rb = lambda a: a.astype(jnp.bfloat16).astype(jnp.float32)
    xr, xi = x[..., 0], x[..., 1]
    ref_real = (conv_ref(rb(xr), rb(module.w_real), module.b_real)
                - conv_ref(rb(xi), rb(module.w_imag), module.b_imag))
    ref_imag = (conv_ref(rb(xr), rb(module.w_imag), module.b_imag)
                + conv_ref(rb(xi), rb(module.w_real), module.b_real))
    ref = jnp.stack([ref_real, ref_imag], axis=-1)

    assert out.shape == (B, Cout, H, W, 2), out.shape
    err = float(jnp.max(jnp.abs(out - ref)))
    assert jnp.allclose(out, ref, atol=1e-2, rtol=1e-2), err

    print("KERNEL_OK")
</pallas_src>

<mosaic_0001>
module attributes {stable_mosaic.version = 11 : i64} {
  func.func @_cconv_fused_kernel(%arg0: i32, %arg1: i32, %arg2: memref<1x18x18x8xbf16, #tpu.memory_space<vmem>>, %arg3: memref<72x16xbf16, #tpu.memory_space<vmem>>, %arg4: memref<1x16xf32, #tpu.memory_space<vmem>>, %arg5: memref<1x256x16xf32, #tpu.memory_space<vmem>>, %arg6: memref<256x72xbf16, #tpu.memory_space<vmem>>) attributes {dimension_semantics = [#tpu.dimension_semantics<parallel>, #tpu.dimension_semantics<arbitrary>], iteration_bounds = array<i64: 2, 1>, scalar_prefetch = 0 : i64, scratch_operands = 1 : i64, tpu.core_type = #tpu.core_type<tc>, window_params = [{transform_indices = @transform_0, window_bounds = array<i64: 1, 18, 18, 8>}, {pipeline_mode = #tpu.pipeline_mode<synchronous>, transform_indices = @transform_1, window_bounds = array<i64: 72, 16>}, {pipeline_mode = #tpu.pipeline_mode<synchronous>, transform_indices = @transform_2, window_bounds = array<i64: 1, 16>}, {transform_indices = @transform_3, window_bounds = array<i64: 1, 256, 16>}]} {
    %c16_i32 = arith.constant 16 : i32
    %0 = arith.muli %arg1, %c16_i32 : i32
    %c0_i32 = arith.constant 0 : i32
    %1 = arith.addi %0, %c0_i32 : i32
    %c0 = arith.constant 0 : index
    %2 = arith.index_cast %1 : i32 to index
    %c0_0 = arith.constant 0 : index
    %c0_1 = arith.constant 0 : index
    %3 = vector.load %arg2[%c0, %2, %c0_0, %c0_1] : memref<1x18x18x8xbf16, #tpu.memory_space<vmem>>, vector<1x16x16x8xbf16>
    %4 = vector.shape_cast %3 : vector<1x16x16x8xbf16> to vector<16x16x8xbf16>
    %5 = vector.shape_cast %4 : vector<16x16x8xbf16> to vector<256x8xbf16>
    %c0_2 = arith.constant 0 : index
    %c0_3 = arith.constant 0 : index
    %6 = vector.load %arg6[%c0_2, %c0_3] : memref<256x72xbf16, #tpu.memory_space<vmem>>, vector<256x8xbf16>
    tpu.vector_store %arg6[%c0_2, %c0_3], %5 {strides = array<i32>} : memref<256x72xbf16, #tpu.memory_space<vmem>>, vector<256x8xbf16>,
    %c0_i32_4 = arith.constant 0 : i32
    %7 = arith.addi %0, %c0_i32_4 : i32
    %c0_5 = arith.constant 0 : index
    %8 = arith.index_cast %7 : i32 to index
    %c1 = arith.constant 1 : index
    %c0_6 = arith.constant 0 : index
    %9 = vector.load %arg2[%c0_5, %8, %c1, %c0_6] : memref<1x18x18x8xbf16, #tpu.memory_space<vmem>>, vector<1x16x16x8xbf16>
    %10 = vector.shape_cast %9 : vector<1x16x16x8xbf16> to vector<16x16x8xbf16>
    %11 = vector.shape_cast %10 : vector<16x16x8xbf16> to vector<256x8xbf16>
    %c0_7 = arith.constant 0 : index
    %c8 = arith.constant 8 : index
    %12 = vector.load %arg6[%c0_7, %c8] : memref<256x72xbf16, #tpu.memory_space<vmem>>, vector<256x8xbf16>
    tpu.vector_store %arg6[%c0_7, %c8], %11 {strides = array<i32>} : memref<256x72xbf16, #tpu.memory_space<vmem>>, vector<256x8xbf16>,
    %c0_i32_8 = arith.constant 0 : i32
    %13 = arith.addi %0, %c0_i32_8 : i32
    %c0_9 = arith.constant 0 : index
    %14 = arith.index_cast %13 : i32 to index
    %c2 = arith.constant 2 : index
    %c0_10 = arith.constant 0 : index
    %15 = vector.load %arg2[%c0_9, %14, %c2, %c0_10] : memref<1x18x18x8xbf16, #tpu.memory_space<vmem>>, vector<1x16x16x8xbf16>
    %16 = vector.shape_cast %15 : vector<1x16x16x8xbf16> to vector<16x16x8xbf16>
    %17 = vector.shape_cast %16 : vector<16x16x8xbf16> to vector<256x8xbf16>
    %c0_11 = arith.constant 0 : index
    %c16 = arith.constant 16 : index
    %18 = vector.load %arg6[%c0_11, %c16] : memref<256x72xbf16, #tpu.memory_space<vmem>>, vector<256x8xbf16>
    tpu.vector_store %arg6[%c0_11, %c16], %17 {strides = array<i32>} : memref<256x72xbf16, #tpu.memory_space<vmem>>, vector<256x8xbf16>,
    %c1_i32 = arith.constant 1 : i32
    %19 = arith.addi %0, %c1_i32 : i32
    %c0_12 = arith.constant 0 : index
    %20 = arith.index_cast %19 : i32 to index
    %c0_13 = arith.constant 0 : index
    %c0_14 = arith.constant 0 : index
    %21 = vector.load %arg2[%c0_12, %20, %c0_13, %c0_14] : memref<1x18x18x8xbf16, #tpu.memory_space<vmem>>, vector<1x16x16x8xbf16>
    %22 = vector.shape_cast %21 : vector<1x16x16x8xbf16> to vector<16x16x8xbf16>
    %23 = vector.shape_cast %22 : vector<16x16x8xbf16> to vector<256x8xbf16>
    %c0_15 = arith.constant 0 : index
    %c24 = arith.constant 24 : index
    %24 = vector.load %arg6[%c0_15, %c24] : memref<256x72xbf16, #tpu.memory_space<vmem>>, vector<256x8xbf16>
    tpu.vector_store %arg6[%c0_15, %c24], %23 {strides = array<i32>} : memref<256x72xbf16, #tpu.memory_space<vmem>>, vector<256x8xbf16>,
    %c1_i32_16 = arith.constant 1 : i32
    %25 = arith.addi %0, %c1_i32_16 : i32
    %c0_17 = arith.constant 0 : index
    %26 = arith.index_cast %25 : i32 to index
    %c1_18 = arith.constant 1 : index
    %c0_19 = arith.constant 0 : index
    %27 = vector.load %arg2[%c0_17, %26, %c1_18, %c0_19] : memref<1x18x18x8xbf16, #tpu.memory_space<vmem>>, vector<1x16x16x8xbf16>
    %28 = vector.shape_cast %27 : vector<1x16x16x8xbf16> to vector<16x16x8xbf16>
    %29 = vector.shape_cast %28 : vector<16x16x8xbf16> to vector<256x8xbf16>
    %c0_20 = arith.constant 0 : index
    %c32 = arith.constant 32 : index
    %30 = vector.load %arg6[%c0_20, %c32] : memref<256x72xbf16, #tpu.memory_space<vmem>>, vector<256x8xbf16>
    tpu.vector_store %arg6[%c0_20, %c32], %29 {strides = array<i32>} : memref<256x72xbf16, #tpu.memory_space<vmem>>, vector<256x8xbf16>,
    %c1_i32_21 = arith.constant 1 : i32
    %31 = arith.addi %0, %c1_i32_21 : i32
    %c0_22 = arith.constant 0 : index
    %32 = arith.index_cast %31 : i32 to index
    %c2_23 = arith.constant 2 : index
    %c0_24 = arith.constant 0 : index
    %33 = vector.load %arg2[%c0_22, %32, %c2_23, %c0_24] : memref<1x18x18x8xbf16, #tpu.memory_space<vmem>>, vector<1x16x16x8xbf16>
    %34 = vector.shape_cast %33 : vector<1x16x16x8xbf16> to vector<16x16x8xbf16>
    %35 = vector.shape_cast %34 : vector<16x16x8xbf16> to vector<256x8xbf16>
    %c0_25 = arith.constant 0 : index
    %c40 = arith.constant 40 : index
    %36 = vector.load %arg6[%c0_25, %c40] : memref<256x72xbf16, #tpu.memory_space<vmem>>, vector<256x8xbf16>
    tpu.vector_store %arg6[%c0_25, %c40], %35 {strides = array<i32>} : memref<256x72xbf16, #tpu.memory_space<vmem>>, vector<256x8xbf16>,
    %c2_i32 = arith.constant 2 : i32
    %37 = arith.addi %0, %c2_i32 : i32
    %c0_26 = arith.constant 0 : index
    %38 = arith.index_cast %37 : i32 to index
    %c0_27 = arith.constant 0 : index
    %c0_28 = arith.constant 0 : index
    %39 = vector.load %arg2[%c0_26, %38, %c0_27, %c0_28] : memref<1x18x18x8xbf16, #tpu.memory_space<vmem>>, vector<1x16x16x8xbf16>
    %40 = vector.shape_cast %39 : vector<1x16x16x8xbf16> to vector<16x16x8xbf16>
    %41 = vector.shape_cast %40 : vector<16x16x8xbf16> to vector<256x8xbf16>
    %c0_29 = arith.constant 0 : index
    %c48 = arith.constant 48 : index
    %42 = vector.load %arg6[%c0_29, %c48] : memref<256x72xbf16, #tpu.memory_space<vmem>>, vector<256x8xbf16>
    tpu.vector_store %arg6[%c0_29, %c48], %41 {strides = array<i32>} : memref<256x72xbf16, #tpu.memory_space<vmem>>, vector<256x8xbf16>,
    %c2_i32_30 = arith.constant 2 : i32
    %43 = arith.addi %0, %c2_i32_30 : i32
    %c0_31 = arith.constant 0 : index
    %44 = arith.index_cast %43 : i32 to index
    %c1_32 = arith.constant 1 : index
    %c0_33 = arith.constant 0 : index
    %45 = vector.load %arg2[%c0_31, %44, %c1_32, %c0_33] : memref<1x18x18x8xbf16, #tpu.memory_space<vmem>>, vector<1x16x16x8xbf16>
    %46 = vector.shape_cast %45 : vector<1x16x16x8xbf16> to vector<16x16x8xbf16>
    %47 = vector.shape_cast %46 : vector<16x16x8xbf16> to vector<256x8xbf16>
    %c0_34 = arith.constant 0 : index
    %c56 = arith.constant 56 : index
    %48 = vector.load %arg6[%c0_34, %c56] : memref<256x72xbf16, #tpu.memory_space<vmem>>, vector<256x8xbf16>
    tpu.vector_store %arg6[%c0_34, %c56], %47 {strides = array<i32>} : memref<256x72xbf16, #tpu.memory_space<vmem>>, vector<256x8xbf16>,
    %c2_i32_35 = arith.constant 2 : i32
    %49 = arith.addi %0, %c2_i32_35 : i32
    %c0_36 = arith.constant 0 : index
    %50 = arith.index_cast %49 : i32 to index
    %c2_37 = arith.constant 2 : index
    %c0_38 = arith.constant 0 : index
    %51 = vector.load %arg2[%c0_36, %50, %c2_37, %c0_38] : memref<1x18x18x8xbf16, #tpu.memory_space<vmem>>, vector<1x16x16x8xbf16>
    %52 = vector.shape_cast %51 : vector<1x16x16x8xbf16> to vector<16x16x8xbf16>
    %53 = vector.shape_cast %52 : vector<16x16x8xbf16> to vector<256x8xbf16>
    %c0_39 = arith.constant 0 : index
    %c64 = arith.constant 64 : index
    %54 = vector.load %arg6[%c0_39, %c64] : memref<256x72xbf16, #tpu.memory_space<vmem>>, vector<256x8xbf16>
    tpu.vector_store %arg6[%c0_39, %c64], %53 {strides = array<i32>} : memref<256x72xbf16, #tpu.memory_space<vmem>>, vector<256x8xbf16>,
    %c0_40 = arith.constant 0 : index
    %c0_41 = arith.constant 0 : index
    %55 = vector.load %arg6[%c0_40, %c0_41] : memref<256x72xbf16, #tpu.memory_space<vmem>>, vector<256x72xbf16>
    %c0_42 = arith.constant 0 : index
    %c0_43 = arith.constant 0 : index
    %56 = vector.load %arg3[%c0_42, %c0_43] : memref<72x16xbf16, #tpu.memory_space<vmem>>, vector<72x16xbf16>
    %cst = arith.constant dense<0.000000e+00> : vector<256x16xf32>
    %57 = tpu.matmul %55, %56, %cst {dimension_numbers = #tpu.dot_dimension_numbers<[1], [0], [0], [1], [0, 0, 1, 1], [], []>} : vector<256x72xbf16>, vector<72x16xbf16>, vector<256x16xf32> -> vector<256x16xf32>
    %c0_44 = arith.constant 0 : index
    %c0_45 = arith.constant 0 : index
    %58 = vector.load %arg4[%c0_44, %c0_45] : memref<1x16xf32, #tpu.memory_space<vmem>>, vector<1x16xf32>
    %59 = vector.broadcast %58 : vector<1x16xf32> to vector<256x16xf32>
    %60 = arith.addf %57, %59 : vector<256x16xf32>
    %c0_46 = arith.constant 0 : index
    %c0_47 = arith.constant 0 : index
    %c0_48 = arith.constant 0 : index
    %61 = vector.load %arg5[%c0_46, %c0_47, %c0_48] : memref<1x256x16xf32, #tpu.memory_space<vmem>>, vector<1x256x16xf32>
    %62 = vector.shape_cast %61 : vector<1x256x16xf32> to vector<256x16xf32>
    %63 = vector.shape_cast %60 : vector<256x16xf32> to vector<1x256x16xf32>
    tpu.vector_store %arg5[%c0_46, %c0_47, %c0_48], %63 {strides = array<i32>} : memref<1x256x16xf32, #tpu.memory_space<vmem>>, vector<1x256x16xf32>,
    return
  }
  func.func @transform_0(%arg0: i32, %arg1: i32) -> (i32, i32, i32, i32) {
    %c0_i32 = arith.constant 0 : i32
    %c0_i32_0 = arith.constant 0 : i32
    %c0_i32_1 = arith.constant 0 : i32
    %c0_i32_2 = arith.constant 0 : i32
    return %arg0, %c0_i32, %c0_i32_0, %c0_i32_1 : i32, i32, i32, i32
  }
  func.func @transform_1(%arg0: i32, %arg1: i32) -> (i32, i32) {
    %c0_i32 = arith.constant 0 : i32
    %c0_i32_0 = arith.constant 0 : i32
    %c0_i32_1 = arith.constant 0 : i32
    return %c0_i32, %c0_i32_0 : i32, i32
  }
  func.func @transform_2(%arg0: i32, %arg1: i32) -> (i32, i32) {
    %c0_i32 = arith.constant 0 : i32
    %c0_i32_0 = arith.constant 0 : i32
    %c0_i32_1 = arith.constant 0 : i32
    return %c0_i32, %c0_i32_0 : i32, i32
  }
  func.func @transform_3(%arg0: i32, %arg1: i32) -> (i32, i32, i32) {
    %c0_i32 = arith.constant 0 : i32
    %c0_i32_0 = arith.constant 0 : i32
    return %arg0, %arg1, %c0_i32 : i32, i32, i32
  }
}

</mosaic_0001>

<bundles_post_ra>
// kernel: a_call__.1
= control target key start
LH: loop header
LB: loop body
LE: loop exit
PB: predicated region body
PF: predicated region fallthrough
CT: control target
= control target key end

     0   :  { %s4386_s12 = smov 0   ;;  %s4388_s13 = smov 0   ;;  %s5970_s0 = inlined_call_operand.vmem [shape: bf16[2,18,18,8], index: 0, kind: input, shape index: {}]   ;;  %s5971_s1 = inlined_call_operand.vmem [shape: bf16[72,16], index: 1, kind: input, shape index: {}]   ;;  %s5972_s2 = inlined_call_operand.vmem [shape: f32[1,16], index: 2, kind: input, shape index: {}]   ;;  %s5973_s3 = inlined_call_operand.vmem [shape: f32[2,256,16], index: 3, kind: output, shape index: {}]  }
   0x1   :  { %s4390_s14 = smov 0  }
   0x2 LB: > { %s25_s15 = sadd.s32 1, %s4352_s13  ;;  %p3855_p0 = scmp.ge.s32.totalorder %s4356_s14, 1  ;;  %s4356_s14 = sphi %s4390_s14, %s13_s14   ;;  %s4352_s13 = sphi %s4388_s13, %s5979_s13   ;;  %s4348_s12 = sphi %s4386_s12, %s5978_s12  }
   0x3   : > { %p27_p1 = scmp.ge.s32.totalorder %s25_s15, 2  ;;  %p151_p2 = scmp.lt.s32.totalorder %s4356_s14, 3 }
   0x5   : > { %s5981_s15 = smov (%p27_p1, %s25_s15), 0  ;;  %p152_p3 = pnand %p3855_p0, %p151_p2 }
   0x6   : > { %p179_p4 = scmp.lt.s32.totalorder (!%p152_p3), %s4348_s12, 1  ;;  %s4358_s20 = smov (!%p152_p3), 8  }
   0x7   : > { %155 = sbr.rel (%p152_p3) target bundleno = 860 (0x35c), region = 32  ;;  %s4359_s21 = smov (!%p152_p3), 16  }
   0x8   : > { %s4360_s22 = smov (!%p152_p3), 24   ;;  %s4361_s23 = smov (!%p152_p3), 32  }
   0x9   : > { %s4362_s24 = smov (!%p152_p3), 40   ;;  %s4363_s25 = smov (!%p152_p3), 48  }
   0xa   : > { %s4364_s26 = smov (!%p152_p3), 56   ;;  %s4365_s8 = smov (!%p152_p3), 64  }
   0xc   : > { %s5983_s12 = smov (!%p179_p4, %s4348_s12), 1  ;;  %vm312_vm0 = vsmask.f32 3328  ;;  %vm313_vm1 = vsmask.f32 7440  ;;  %vm231_vm3 = vcmask 60416  }
   0xd   : > { %s4279_s16 = smul.u32 216, %s5983_s12  ;;  %vm4421_vm2 = vmor %vm312_vm0, %vm313_vm1  ;;  %vm924_vm4 = vcmask 1042432   ;;  %vm925_vm5 = vcmask 1046532   ;;  %vm795_vm7 = vcmask 126016   ;;  %vm1135_vm8 = vcmask 191616   ;;  %s4203_s11 = sshll.u32 %s5983_s12, 8 }
   0xe   : > { %vm4565_vm6 = vmor %vm924_vm4, %vm925_vm5  ;;  %vm1332_vm9 = vcmask 257216   ;;  %vm3562_vm10 = vcmask 1043456   ;;  %vm1893_vm11 = vcmask 322816   ;;  %vm2230_vm12 = vcmask 388416  }
   0xf   : > { %s4410_s19 = scalar_lea.vmem %s5970_s0, %s4279_s16  ;;  %vm2427_vm13 = vcmask 454016   ;;  %vm2988_vm14 = vcmask 519616   ;;  %vm3325_vm15 = vcmask 585216   ;;  %vm3513_vm0 = vcmask 588800  }
  0x10   : > { %v267_v0 = vld [vmem:[%s4410_s19 + $0xc] sm:$0xf]  ;;  %v268_v1 = vld [vmem:[%s4410_s19 + $0x10] sm:$0xf]  ;;  %v264_v2 = vld [vmem:[%s4410_s19] sm:$0xf] }
  0x11   : > { %v340_v3 = vshrl.u32 %v267_v0, 16  ;;  %v343_v4 = vshll.u32 %v267_v0, 16  ;;  %v349_v5 = vshll.u32 %v268_v1, 16  ;;  %v353_v6 = vshrl.u32 %v268_v1, 16  ;;  %v265_v7 = vld [vmem:[%s4410_s19 + $0x4] sm:$0xf] }
  0x12   : > { %v316_v8 = vshrl.u32 %v264_v2, 16  ;;  %v319_v9 = vshll.u32 %v264_v2, 16  ;;  %v325_v10 = vshll.u32 %v265_v7, 16  ;;  %v329_v11 = vshrl.u32 %v265_v7, 16  ;;  %v269_v12 = vld [vmem:[%s4410_s19 + $0x14] sm:$0x1] }
  0x13   : > { %v342_v13 = vrot.slane %v340_v3, 4  ;;  %v345_v14 = vrot.slane %v343_v4, 5  ;;  %v351_v15 = vrot.slane %v349_v5, 5  ;;  %v355_v16 = vrot.slane %v353_v6, 4  ;;  %v266_v17 = vld [vmem:[%s4410_s19 + $0x8] sm:$0x1] }
  0x14   : > { %v318_v18 = vrot.slane %v316_v8, 4  ;;  %v321_v19 = vrot.slane %v319_v9, 5  ;;  %v327_v20 = vrot.slane %v325_v10, 5  ;;  %v331_v21 = vrot.slane %v329_v11, 4  ;;  %v271_v22 = vld [vmem:[%s4410_s19 + $0x1c] sm:$0xf] }
  0x15   : > { %v346_v23 = vor.u32 %v345_v14, %v342_v13  ;;  %v356_v24 = vor.u32 %v355_v16, %v351_v15  ;;  %v359_v25 = vshll.u32 %v269_v12, 16  ;;  %v335_v26 = vshll.u32 %v266_v17, 16  ;;  %v272_v30 = vld [vmem:[%s4410_s19 + $0x20] sm:$0x1]  ;;  %v270_v33 = vld [vmem:[%s4410_s19 + $0x18] sm:$0xf] }
  0x16   : > { %v322_v28 = vor.u32 %v321_v19, %v318_v18  ;;  %v332_v29 = vor.u32 %v331_v21, %v327_v20  ;;  %v373_v31 = vshll.u32 %v271_v22, 16  ;;  %v377_v32 = vshrl.u32 %v271_v22, 16  ;;  %v274_v42 = vld [vmem:[%s4410_s19 + $0x28] sm:$0xf]  ;;  %v275_v47 = vld [vmem:[%s4410_s19 + $0x2c] sm:$0x1] }
  0x17   : > { %v347_v34 = vrot.slane %v346_v23, 4  ;;  %v357_v35 = vrot.slane %v356_v24, 4  ;;  %v361_v36 = vrot.slane %v359_v25, 5  ;;  %v337_v37 = vrot.slane %v335_v26, 5  ;;  %v273_v48 = vld [vmem:[%s4410_s19 + $0x24] sm:$0xf] }
  0x18   : > { %v323_v38 = vrot.slane %v322_v28, 4  ;;  %v333_v39 = vrot.slane %v332_v29, 4  ;;  %v375_v40 = vrot.slane %v373_v31, 5  ;;  %v379_v41 = vrot.slane %v377_v32, 4  ;;  %v277_v53 = vld [vmem:[%s4410_s19 + $0x34] sm:$0xf] }
  0x19   : > { %v352_v43 = vsel %vm4421_vm2, %v347_v34, %v351_v15  ;;  %v362_v44 = vsel %vm4421_vm2, %v357_v35, %v361_v36  ;;  %v383_v45 = vshll.u32 %v272_v30, 16  ;;  %v364_v46 = vshrl.u32 %v270_v33, 16  ;;  %v278_v62 = vld [vmem:[%s4410_s19 + $0x38] sm:$0x1]  ;;  %v276_v3 = vld [vmem:[%s4410_s19 + $0x30] sm:$0xf] }
  0x1a   : > { %703 = vrot.lane.b32.xlu1 %v352_v43, %s4358_s20  ;;  %v328_v49 = vsel %vm4421_vm2, %v323_v38, %v327_v20  ;;  %v338_v50 = vsel %vm4421_vm2, %v333_v39, %v337_v37  ;;  %v380_v51 = vor.u32 %v379_v41, %v375_v40  ;;  %v367_v52 = vshll.u32 %v270_v33, 16  ;;  %v280_v8 = vld [vmem:[%s4410_s19 + $0x40] sm:$0xf]  ;;  %v281_v17 = vld [vmem:[%s4410_s19 + $0x44] sm:$0x1] }
  0x1b   : > { %699 = vrot.lane.b32.xlu0 %v328_v49, %s4358_s20  ;;  %v385_v54 = vrot.slane %v383_v45, 5  ;;  %v366_v55 = vrot.slane %v364_v46, 4  ;;  %v397_v56 = vshll.u32 %v274_v42, 16  ;;  %v401_v57 = vshrl.u32 %v274_v42, 16  ;;  %v279_v22 = vld [vmem:[%s4410_s19 + $0x3c] sm:$0xf] }
  0x1c   : > { %v381_v58 = vrot.slane %v380_v51, 4  ;;  %v369_v59 = vrot.slane %v367_v52, 5  ;;  %v407_v60 = vshll.u32 %v275_v47, 16  ;;  %v388_v61 = vshrl.u32 %v273_v48, 16  ;;  %v283_v28 = vld [vmem:[%s4410_s19 + $0x4c] sm:$0xf] }
  0x1d   : > { %v399_v63 = vrot.slane %v397_v56, 5  ;;  %v403_v0 = vrot.slane %v401_v57, 4  ;;  %v391_v1 = vshll.u32 %v273_v48, 16  ;;  %v421_v2 = vshll.u32 %v277_v53, 16  ;;  %v284_v37 = vld [vmem:[%s4410_s19 + $0x50] sm:$0x1] }
  0x1e   : > { %705 = vrot.lane.b32.xlu1 %v362_v44, %s4358_s20  ;;  %v386_v4 = vsel %vm4421_vm2, %v381_v58, %v385_v54  ;;  %v370_v5 = vor.u32 %v369_v59, %v366_v55  ;;  %v409_v6 = vrot.slane %v407_v60, 5  ;;  %v390_v7 = vrot.slane %v388_v61, 4  ;;  %v282_v42 = vld [vmem:[%s4410_s19 + $0x48] sm:$0xf]  ;;  %v286_v47 = vld [vmem:[%s4410_s19 + $0x58] sm:$0xf] }
  0x1f   : > { %701 = vrot.lane.b32.xlu0 %v338_v50, %s4358_s20  ;;  %v404_v9 = vor.u32 %v403_v0, %v399_v63  ;;  %v393_v10 = vrot.slane %v391_v1, 5  ;;  %v423_v11 = vrot.slane %v421_v2, 5  ;;  %v425_v12 = vshrl.u32 %v277_v53, 16  ;;  %v287_v56 = vld [vmem:[%s4410_s19 + $0x5c] sm:$0x1] }
  0x20   : > { %v371_v13 = vrot.slane %v370_v5, 4  ;;  %v431_v14 = vshll.u32 %v278_v62, 16  ;;  %v412_v15 = vshrl.u32 %v276_v3, 16  ;;  %v415_v16 = vshll.u32 %v276_v3, 16  ;;  %v285_v61 = vld [vmem:[%s4410_s19 + $0x54] sm:$0xf] }
  0x21   : > { %v405_v18 = vrot.slane %v404_v9, 4  ;;  %v394_v19 = vor.u32 %v393_v10, %v390_v7  ;;  %v427_v20 = vrot.slane %v425_v12, 4  ;;  %v445_v21 = vshll.u32 %v280_v8, 16 }
  0x22   : > { %709 = vrot.lane.b32.xlu1 %v386_v4, %s4358_s20  ;;  %v376_v23 = vsel %vm4421_vm2, %v371_v13, %v375_v40  ;;  %v433_v24 = vrot.slane %v431_v14, 5  ;;  %v414_v25 = vrot.slane %v412_v15, 4  ;;  %v417_v26 = vrot.slane %v415_v16, 5  ;;  %v290_v15 = vld [vmem:[%s4410_s19 + $0x68] sm:$0x1] }
  0x23   : > { %707 = vrot.lane.b32.xlu0 %v376_v23, %s4358_s20  ;;  %v410_v29 = vsel %vm4421_vm2, %v405_v18, %v409_v6  ;;  %v395_v30 = vrot.slane %v394_v19, 4  ;;  %v428_v31 = vor.u32 %v427_v20, %v423_v11  ;;  %v447_v32 = vrot.slane %v445_v21, 5  ;;  %v289_v6 = vld [vmem:[%s4410_s19 + $0x64] sm:$0xf]  ;;  %v288_v16 = vld [vmem:[%s4410_s19 + $0x60] sm:$0xf] }
  0x24   : > { %v418_v33 = vor.u32 %v417_v26, %v414_v25  ;;  %v449_v34 = vshrl.u32 %v280_v8, 16  ;;  %v455_v35 = vshll.u32 %v281_v17, 16  ;;  %v436_v36 = vshrl.u32 %v279_v22, 16  ;;  %v292_v25 = vld [vmem:[%s4410_s19 + $0x70] sm:$0xf] }
  0x25   : > { %v400_v38 = vsel %vm4421_vm2, %v395_v30, %v399_v63  ;;  %v429_v39 = vrot.slane %v428_v31, 4  ;;  %v439_v40 = vshll.u32 %v279_v22, 16  ;;  %v469_v41 = vshll.u32 %v283_v28, 16 }
  0x26   : > { %713 = vrot.lane.b32.xlu1 %v410_v29, %s4358_s20  ;;  %v419_v43 = vrot.slane %v418_v33, 4  ;;  %v451_v44 = vrot.slane %v449_v34, 4  ;;  %v457_v45 = vrot.slane %v455_v35, 5  ;;  %v438_v46 = vrot.slane %v436_v36, 4  ;;  %v293_v35 = vld [vmem:[%s4410_s19 + $0x74] sm:$0x1] }
  0x27   : > { %711 = vrot.lane.b32.xlu0 %v400_v38, %s4358_s20  ;;  %v434_v48 = vsel %vm4421_vm2, %v429_v39, %v433_v24  ;;  %v441_v49 = vrot.slane %v439_v40, 5  ;;  %v471_v50 = vrot.slane %v469_v41, 5  ;;  %v473_v51 = vshrl.u32 %v283_v28, 16  ;;  %v291_v36 = vld [vmem:[%s4410_s19 + $0x6c] sm:$0xf] }
  0x28   : > { %v424_v52 = vsel %vm4421_vm2, %v419_v43, %v423_v11  ;;  %v452_v53 = vor.u32 %v451_v44, %v447_v32  ;;  %v479_v54 = vshll.u32 %v284_v37, 16  ;;  %v460_v55 = vshrl.u32 %v282_v42, 16 }
  0x29   : > { %v442_v57 = vor.u32 %v441_v49, %v438_v46  ;;  %v475_v58 = vrot.slane %v473_v51, 4  ;;  %v463_v59 = vshll.u32 %v282_v42, 16  ;;  %v493_v60 = vshll.u32 %v286_v47, 16 }
  0x2a   : > { %717 = vrot.lane.b32.xlu1 %v434_v48, %s4358_s20  ;;  %v453_v62 = vrot.slane %v452_v53, 4  ;;  %v481_v63 = vrot.slane %v479_v54, 5  ;;  %v462_v0 = vrot.slane %v460_v55, 4  ;;  %v497_v1 = vshrl.u32 %v286_v47, 16  ;;  %v296_v54 = vld [vmem:[%s4410_s19 + $0x80] sm:$0x1] }
  0x2b   : > { %715 = vrot.lane.b32.xlu0 %v424_v52, %s4358_s20  ;;  %v443_v2 = vrot.slane %v442_v57, 4  ;;  %v476_v3 = vor.u32 %v475_v58, %v471_v50  ;;  %v465_v4 = vrot.slane %v463_v59, 5  ;;  %v495_v5 = vrot.slane %v493_v60, 5  ;;  %v294_v55 = vld [vmem:[%s4410_s19 + $0x78] sm:$0xf] }
  0x2c   : > { %v458_v7 = vsel %vm4421_vm2, %v453_v62, %v457_v45  ;;  %v499_v8 = vrot.slane %v497_v1, 4  ;;  %v503_v9 = vshll.u32 %v287_v56, 16  ;;  %v484_v10 = vshrl.u32 %v285_v61, 16  ;;  %v295_v45 = vld [vmem:[%s4410_s19 + $0x7c] sm:$0xf] }
  0x2d   : > { %v448_v11 = vsel %vm4421_vm2, %v443_v2, %v447_v32  ;;  %v477_v12 = vrot.slane %v476_v3, 4  ;;  %v466_v13 = vor.u32 %v465_v4, %v462_v0  ;;  %v487_v14 = vshll.u32 %v285_v61, 16  ;;  %v298_v0 = vld [vmem:[%s4410_s19 + $0x88] sm:$0xf] }
  0x2e   : > { %721 = vrot.lane.b32.xlu1 %v458_v7, %s4358_s20  ;;  %v500_v17 = vor.u32 %v499_v8, %v495_v5  ;;  %v505_v18 = vrot.slane %v503_v9, 5  ;;  %v486_v19 = vrot.slane %v484_v10, 4  ;;  %v517_v20 = vshll.u32 %v289_v6, 16  ;;  %v297_v10 = vld [vmem:[%s4410_s19 + $0x84] sm:$0xf] }
  0x2f   : > { %719 = vrot.lane.b32.xlu0 %v448_v11, %s4358_s20  ;;  %v482_v21 = vsel %vm4421_vm2, %v477_v12, %v481_v63  ;;  %v467_v22 = vrot.slane %v466_v13, 4  ;;  %v489_v23 = vrot.slane %v487_v14, 5  ;;  %v521_v24 = vshrl.u32 %v289_v6, 16 }
  0x30   : > { %v501_v26 = vrot.slane %v500_v17, 4  ;;  %v519_v28 = vrot.slane %v517_v20, 5  ;;  %v527_v29 = vshll.u32 %v290_v15, 16  ;;  %v508_v30 = vshrl.u32 %v288_v16, 16 }
  0x31   : > { %v472_v31 = vsel %vm4421_vm2, %v467_v22, %v471_v50  ;;  %v490_v32 = vor.u32 %v489_v23, %v486_v19  ;;  %v523_v33 = vrot.slane %v521_v24, 4  ;;  %v511_v34 = vshll.u32 %v288_v16, 16  ;;  %v301_v19 = vld [vmem:[%s4410_s19 + $0x94] sm:$0xf]  ;;  %v302_v24 = vld [vmem:[%s4410_s19 + $0x98] sm:$0x1] }
  0x32   : > { %725 = vrot.lane.b32.xlu1 %v482_v21, %s4358_s20  ;;  %v506_v37 = vsel %vm4421_vm2, %v501_v26, %v505_v18  ;;  %v529_v38 = vrot.slane %v527_v29, 5  ;;  %v510_v39 = vrot.slane %v508_v30, 4  ;;  %v541_v40 = vshll.u32 %v292_v25, 16  ;;  %v300_v30 = vld [vmem:[%s4410_s19 + $0x90] sm:$0xf] }
  0x33   : > { %723 = vrot.lane.b32.xlu0 %v472_v31, %s4358_s20  ;;  %v491_v41 = vrot.slane %v490_v32, 4  ;;  %v524_v42 = vor.u32 %v523_v33, %v519_v28  ;;  %v513_v43 = vrot.slane %v511_v34, 5  ;;  %v545_v44 = vshrl.u32 %v292_v25, 16 }
  0x34   : > { %v543_v46 = vrot.slane %v541_v40, 5  ;;  %v551_v47 = vshll.u32 %v293_v35, 16  ;;  %v532_v48 = vshrl.u32 %v291_v36, 16  ;;  %v535_v49 = vshll.u32 %v291_v36, 16 }
  0x35   : > { %v496_v50 = vsel %vm4421_vm2, %v491_v41, %v495_v5  ;;  %v525_v51 = vrot.slane %v524_v42, 4  ;;  %v514_v52 = vor.u32 %v513_v43, %v510_v39  ;;  %v547_v53 = vrot.slane %v545_v44, 4  ;;  %v299_v5 = vld [vmem:[%s4410_s19 + $0x8c] sm:$0x1]  ;;  %v304_v39 = vld [vmem:[%s4410_s19 + $0xa0] sm:$0xf] }
  0x36   : > { %729 = vrot.lane.b32.xlu1 %v506_v37, %s4358_s20  ;;  %v553_v56 = vrot.slane %v551_v47, 5  ;;  %v534_v57 = vrot.slane %v532_v48, 4  ;;  %v537_v58 = vrot.slane %v535_v49, 5  ;;  %v565_v59 = vshll.u32 %v295_v45, 16  ;;  %v305_v48 = vld [vmem:[%s4410_s19 + $0xa4] sm:$0x1] }
  0x37   : > { %727 = vrot.lane.b32.xlu0 %v496_v50, %s4358_s20  ;;  %v530_v60 = vsel %vm4421_vm2, %v525_v51, %v529_v38  ;;  %v515_v61 = vrot.slane %v514_v52, 4  ;;  %v548_v62 = vor.u32 %v547_v53, %v543_v46  ;;  %v569_v63 = vshrl.u32 %v295_v45, 16  ;;  %v303_v49 = vld [vmem:[%s4410_s19 + $0x9c] sm:$0xf] }
  0x38   : > { %v538_v1 = vor.u32 %v537_v58, %v534_v57  ;;  %v567_v2 = vrot.slane %v565_v59, 5  ;;  %v575_v3 = vshll.u32 %v296_v54, 16  ;;  %v556_v4 = vshrl.u32 %v294_v55, 16  ;;  %v307_v58 = vld [vmem:[%s4410_s19 + $0xac] sm:$0xf] }
  0x39   : > { %v520_v6 = vsel %vm4421_vm2, %v515_v61, %v519_v28  ;;  %v549_v7 = vrot.slane %v548_v62, 4  ;;  %v571_v8 = vrot.slane %v569_v63, 4  ;;  %v559_v9 = vshll.u32 %v294_v55, 16 }
  0x3a   : > { %733 = vrot.lane.b32.xlu1 %v530_v60, %s4358_s20  ;;  %v539_v11 = vrot.slane %v538_v1, 4  ;;  %v577_v12 = vrot.slane %v575_v3, 5  ;;  %v558_v13 = vrot.slane %v556_v4, 4  ;;  %v589_v14 = vshll.u32 %v298_v0, 16  ;;  %v308_v3 = vld [vmem:[%s4410_s19 + $0xb0] sm:$0x1] }
  0x3b   : > { %731 = vrot.lane.b32.xlu0 %v520_v6, %s4358_s20  ;;  %v554_v15 = vsel %vm4421_vm2, %v549_v7, %v553_v56  ;;  %v572_v16 = vor.u32 %v571_v8, %v567_v2  ;;  %v561_v17 = vrot.slane %v559_v9, 5  ;;  %v593_v18 = vshrl.u32 %v298_v0, 16  ;;  %v306_v4 = vld [vmem:[%s4410_s19 + $0xa8] sm:$0xf] }
  0x3c   : > { %v544_v20 = vsel %vm4421_vm2, %v539_v11, %v543_v46  ;;  %v591_v21 = vrot.slane %v589_v14, 5  ;;  %v599_v22 = vshll.u32 %v299_v5, 16  ;;  %v580_v23 = vshrl.u32 %v297_v10, 16 }
  0x3d   : > { %v573_v25 = vrot.slane %v572_v16, 4  ;;  %v562_v26 = vor.u32 %v561_v17, %v558_v13  ;;  %v595_v28 = vrot.slane %v593_v18, 4  ;;  %v583_v29 = vshll.u32 %v297_v10, 16  ;;  %v310_v13 = vld [vmem:[%s4410_s19 + $0xb8] sm:$0xf] }
  0x3e   : > { %737 = vrot.lane.b32.xlu1 %v554_v15, %s4358_s20  ;;  %v601_v31 = vrot.slane %v599_v22, 5  ;;  %v582_v32 = vrot.slane %v580_v23, 4  ;;  %v613_v33 = vshll.u32 %v301_v19, 16  ;;  %v617_v34 = vshrl.u32 %v301_v19, 16  ;;  %v311_v22 = vld [vmem:[%s4410_s19 + $0xbc] sm:$0x1] }
  0x3f   : > { %735 = vrot.lane.b32.xlu0 %v544_v20, %s4358_s20  ;;  %v578_v35 = vsel %vm4421_vm2, %v573_v25, %v577_v12  ;;  %v563_v36 = vrot.slane %v562_v26, 4  ;;  %v596_v37 = vor.u32 %v595_v28, %v591_v21  ;;  %v585_v38 = vrot.slane %v583_v29, 5  ;;  %v309_v23 = vld [vmem:[%s4410_s19 + $0xb4] sm:$0xf] }
  0x40   : > { %v615_v40 = vrot.slane %v613_v33, 5  ;;  %v619_v41 = vrot.slane %v617_v34, 4  ;;  %v623_v42 = vshll.u32 %v302_v24, 16  ;;  %v604_v43 = vshrl.u32 %v300_v30, 16 }
  0x41   : > { %v568_v44 = vsel %vm4421_vm2, %v563_v36, %v567_v2  ;;  %v597_v45 = vrot.slane %v596_v37, 4  ;;  %v586_v46 = vor.u32 %v585_v38, %v582_v32  ;;  %v607_v47 = vshll.u32 %v300_v30, 16  ;;  %v829_v37 = vld [vmem:[%s4410_s19 + $0x4] sm:$0xf] }
  0x42   : > { %741 = vrot.lane.b32.xlu1 %v578_v35, %s4358_s20  ;;  %v620_v50 = vor.u32 %v619_v41, %v615_v40  ;;  %v625_v51 = vrot.slane %v623_v42, 5  ;;  %v606_v52 = vrot.slane %v604_v43, 4  ;;  %v637_v53 = vshll.u32 %v304_v39, 16 }
  0x43   : > { %739 = vrot.lane.b32.xlu0 %v568_v44, %s4358_s20  ;;  %v602_v54 = vsel %vm4421_vm2, %v597_v45, %v601_v31  ;;  %v587_v55 = vrot.slane %v586_v46, 4  ;;  %v609_v56 = vrot.slane %v607_v47, 5  ;;  %v641_v57 = vshrl.u32 %v304_v39, 16 }
  0x44   : > { %v621_v59 = vrot.slane %v620_v50, 4  ;;  %v639_v60 = vrot.slane %v637_v53, 5  ;;  %v647_v61 = vshll.u32 %v305_v48, 16  ;;  %v628_v62 = vshrl.u32 %v303_v49, 16  ;;  %v830_v48 = vld [vmem:[%s4410_s19 + $0x8] sm:$0x1] }
  0x45   : > { %v592_v63 = vsel %vm4421_vm2, %v587_v55, %v591_v21  ;;  %v610_v0 = vor.u32 %v609_v56, %v606_v52  ;;  %v643_v1 = vrot.slane %v641_v57, 4  ;;  %v631_v2 = vshll.u32 %v303_v49, 16  ;;  %v201_v56 = vld [vmem:[%s4410_s19 + $0xc] sm:$0xf] }
  0x46   : > { %745 = vrot.lane.b32.xlu1 %v602_v54, %s4358_s20  ;;  %v626_v5 = vsel %vm4421_vm2, %v621_v59, %v625_v51  ;;  %v649_v6 = vrot.slane %v647_v61, 5  ;;  %v630_v7 = vrot.slane %v628_v62, 4  ;;  %v661_v8 = vshll.u32 %v307_v58, 16  ;;  %v832_v51 = vld [vmem:[%s4410_s19 + $0x10] sm:$0xf] }
  0x47   : > { %743 = vrot.lane.b32.xlu0 %v592_v63, %s4358_s20  ;;  %v611_v9 = vrot.slane %v610_v0, 4  ;;  %v644_v10 = vor.u32 %v643_v1, %v639_v60  ;;  %v633_v11 = vrot.slane %v631_v2, 5  ;;  %v665_v12 = vshrl.u32 %v307_v58, 16  ;;  %v828_v54 = vld [vmem:[%s4410_s19] sm:$0xe] }
  0x48   : > { %v663_v14 = vrot.slane %v661_v8, 5  ;;  %v671_v15 = vshll.u32 %v308_v3, 16  ;;  %v652_v16 = vshrl.u32 %v306_v4, 16  ;;  %v655_v17 = vshll.u32 %v306_v4, 16  ;;  %234 = vst.msk [vmem:[#allocation2 + $0x8] sm:$0xf] %vm231_vm3, %v201_v56 }
  0x49   : > { %v616_v18 = vsel %vm4421_vm2, %v611_v9, %v615_v40  ;;  %v645_v19 = vrot.slane %v644_v10, 4  ;;  %v634_v20 = vor.u32 %v633_v11, %v630_v7  ;;  %v667_v21 = vrot.slane %v665_v12, 4  ;;  %v199_v61 = vld [vmem:[%s4410_s19] sm:$0xf]  ;;  %v833_v0 = vld [vmem:[%s4410_s19 + $0x14] sm:$0x1] }
  0x4a   : > { %749 = vrot.lane.b32.xlu1 %v626_v5, %s4358_s20  ;;  %v673_v24 = vrot.slane %v671_v15, 5  ;;  %v654_v25 = vrot.slane %v652_v16, 4  ;;  %v657_v26 = vrot.slane %v655_v17, 5  ;;  %v685_v28 = vshll.u32 %v310_v13, 16  ;;  %v835_v1 = vld [vmem:[%s4410_s19 + $0x1c] sm:$0xf] }
  0x4b   : > { %747 = vrot.lane.b32.xlu0 %v616_v18, %s4358_s20  ;;  %v650_v29 = vsel %vm4421_vm2, %v645_v19, %v649_v6  ;;  %v635_v30 = vrot.slane %v634_v20, 4  ;;  %v668_v31 = vor.u32 %v667_v21, %v663_v14  ;;  %v689_v32 = vshrl.u32 %v310_v13, 16  ;;  %232 = vst.msk [vmem:[#allocation2] sm:$0xf] %vm231_vm3, %v199_v61  ;;  %v831_v3 = vld [vmem:[%s4410_s19 + $0xc] sm:$0xe] }
  0x4c   : > { %v658_v33 = vor.u32 %v657_v26, %v654_v25  ;;  %v687_v34 = vrot.slane %v685_v28, 5  ;;  %v695_v35 = vshll.u32 %v311_v22, 16  ;;  %v676_v36 = vshrl.u32 %v309_v23, 16  ;;  %v202_v4 = vld [vmem:[%s4410_s19 + $0x10] sm:$0xf] }
  0x4d   : > { %v640_v38 = vsel %vm4421_vm2, %v635_v30, %v639_v60  ;;  %v669_v39 = vrot.slane %v668_v31, 4  ;;  %v691_v40 = vrot.slane %v689_v32, 4  ;;  %v679_v41 = vshll.u32 %v309_v23, 16  ;;  %v200_v5 = vld [vmem:[%s4410_s19 + $0x4] sm:$0xf] }
  0x4e   : > { %753 = vrot.lane.b32.xlu1 %v650_v29, %s4358_s20  ;;  %v659_v42 = vrot.slane %v658_v33, 4  ;;  %v697_v43 = vrot.slane %v695_v35, 5  ;;  %v678_v44 = vrot.slane %v676_v36, 4  ;;  %v929_v49 = vrot.slane %v829_v37, 5  ;;  %235 = vst.msk [vmem:[#allocation2 + $0xc] sm:$0xf] %vm231_vm3, %v202_v4 }
  0x4f   : > { %751 = vrot.lane.b32.xlu0 %v640_v38, %s4358_s20  ;;  %v674_v45 = vsel %vm4421_vm2, %v669_v39, %v673_v24  ;;  %v692_v46 = vor.u32 %v691_v40, %v687_v34  ;;  %v681_v47 = vrot.slane %v679_v41, 5  ;;  %v932_v55 = vrot.slane %v830_v48, 5  ;;  %233 = vst.msk [vmem:[#allocation2 + $0x4] sm:$0xf] %vm231_vm3, %v200_v5  ;;  %v836_v12 = vld [vmem:[%s4410_s19 + $0x20] sm:$0x1] }
  0x50   : > { %v664_v50 = vsel %vm4421_vm2, %v659_v42, %v663_v14  ;;  %v931_v59 = vrot.slane %v929_v49, 4  ;;  %v936_v60 = vrot.slane %v832_v51, 5  ;;  %v3859_v63 = vrot.slane %v828_v54, 9  ;;  %v838_v13 = vld [vmem:[%s4410_s19 + $0x28] sm:$0xf] }
  0x51   : > { %v693_v52 = vrot.slane %v692_v46, 4  ;;  %v682_v53 = vor.u32 %v681_v47, %v678_v44  ;;  %v939_v8 = vrot.slane %v833_v0, 5  ;;  %v943_v9 = vrot.slane %v835_v1, 5  ;;  %v834_v14 = vld [vmem:[%s4410_s19 + $0x18] sm:$0xe] }
  0x52   : > { %757 = vrot.lane.b32.xlu1 %v674_v45, %s4358_s20  ;;  %v933_v6 = vsel %vm4565_vm6, %v931_v59, %v932_v55  ;;  %v938_v7 = vrot.slane %v936_v60, 4  ;;  %v930_v10 = vsel %vm4565_vm6, %v3859_v63, %v929_v49  ;;  %v3860_v11 = vrot.slane %v831_v3, 9  ;;  %v204_v15 = vld [vmem:[%s4410_s19 + $0x1c] sm:$0xf]  ;;  %v203_v16 = vld [vmem:[%s4410_s19 + $0x18] sm:$0xf] }
  0x53   : > { %755 = vrot.lane.b32.xlu0 %v664_v50, %s4358_s20  ;;  %v698_v57 = vsel %vm4421_vm2, %v693_v52, %v697_v43  ;;  %v683_v58 = vrot.slane %v682_v53, 4  ;;  %237 = vst.msk [vmem:[#allocation2 + $0x14] sm:$0xf] %vm231_vm3, %v204_v15  ;;  %v945_v18 = vrot.slane %v943_v9, 4  ;;  %v946_v19 = vrot.slane %v836_v12, 5 }
  0x54   : > { %v940_v17 = vsel %vm4565_vm6, %v938_v7, %v939_v8  ;;  %v950_v20 = vrot.slane %v838_v13, 5  ;;  %236 = vst.msk [vmem:[#allocation2 + $0x10] sm:$0xf] %vm231_vm3, %v203_v16  ;;  %v937_v21 = vsel %vm4565_vm6, %v3860_v11, %v936_v60  ;;  %v3861_v22 = vrot.slane %v834_v14, 9  ;;  %v839_v23 = vld [vmem:[%s4410_s19 + $0x2c] sm:$0x1] }
  0x55   : > { %v688_v2 = vsel %vm4421_vm2, %v683_v58, %v687_v34  ;;  %v841_v24 = vld [vmem:[%s4410_s19 + $0x34] sm:$0xf]  ;;  %v837_v25 = vld [vmem:[%s4410_s19 + $0x24] sm:$0xe]  ;;  %v206_v26 = vld [vmem:[%s4410_s19 + $0x28] sm:$0xf]  ;;  %v947_v29 = vsel %vm4565_vm6, %v945_v18, %v946_v19 }
  0x56   : > { %761 = vrot.lane.b32.xlu1 %v698_v57, %s4358_s20  ;;  %239 = vst.msk [vmem:[#allocation2 + $0x1c] sm:$0xf] %vm231_vm3, %v206_v26  ;;  %v205_v28 = vld [vmem:[%s4410_s19 + $0x24] sm:$0xf]  ;;  %v952_v30 = vrot.slane %v950_v20, 4  ;;  %v953_v31 = vrot.slane %v839_v23, 5  ;;  %v944_v34 = vsel %vm4565_vm6, %v3861_v22, %v943_v9 }
  0x57   : > { %759 = vrot.lane.b32.xlu0 %v688_v2, %s4358_s20  ;;  %v842_v32 = vld [vmem:[%s4410_s19 + $0x38] sm:$0x1]  ;;  %v957_v33 = vrot.slane %v841_v24, 5  ;;  %238 = vst.msk [vmem:[#allocation2 + $0x18] sm:$0xf] %vm231_vm3, %v205_v28  ;;  %v3862_v35 = vrot.slane %v837_v25, 9  ;;  %s5845_s20 = scalar_lea.vmem %s5973_s3, %s4203_s11 }
  0x58   : > { %v844_v36 = vld [vmem:[%s4410_s19 + $0x40] sm:$0xf]  ;;  %v208_v37 = vld [vmem:[%s4410_s19 + $0x34] sm:$0xf]  ;;  %v840_v38 = vld [vmem:[%s4410_s19 + $0x30] sm:$0xe]  ;;  %v954_v41 = vsel %vm4565_vm6, %v952_v30, %v953_v31 }
  0x59   : > { %241 = vst.msk [vmem:[#allocation2 + $0x24] sm:$0xf] %vm231_vm3, %v208_v37  ;;  %v207_v39 = vld [vmem:[%s4410_s19 + $0x30] sm:$0xf]  ;;  %v845_v40 = vld [vmem:[%s4410_s19 + $0x44] sm:$0x1]  ;;  %v951_v46 = vsel %vm4565_vm6, %v3862_v35, %v950_v20 }
  0x5a   : > { %1041 = vrot.lane.b32.xlu1 %v933_v6, %s4359_s21  ;;  %240 = vst.msk [vmem:[#allocation2 + $0x20] sm:$0xf] %vm231_vm3, %v207_v39  ;;  %v959_v42 = vrot.slane %v957_v33, 4  ;;  %v960_v43 = vrot.slane %v842_v32, 5  ;;  %v964_v44 = vrot.slane %v844_v36, 5  ;;  %v3863_v47 = vrot.slane %v840_v38, 9 }
  0x5b   : > { %1039 = vrot.lane.b32.xlu0 %v930_v10, %s4359_s21  ;;  %v210_v45 = vld [vmem:[%s4410_s19 + $0x40] sm:$0xf]  ;;  %v847_v48 = vld [vmem:[%s4410_s19 + $0x4c] sm:$0xf]  ;;  %v209_v49 = vld [vmem:[%s4410_s19 + $0x3c] sm:$0xf] }
  0x5c   : > { %243 = vst.msk [vmem:[#allocation2 + $0x2c] sm:$0xf] %vm231_vm3, %v210_v45  ;;  %v843_v50 = vld [vmem:[%s4410_s19 + $0x3c] sm:$0xe]  ;;  %242 = vst.msk [vmem:[#allocation2 + $0x28] sm:$0xf] %vm231_vm3, %v209_v49  ;;  %v961_v53 = vsel %vm4565_vm6, %v959_v42, %v960_v43  ;;  %v958_v58 = vsel %vm4565_vm6, %v3863_v47, %v957_v33 }
  0x5d   : > { %v848_v51 = vld [vmem:[%s4410_s19 + $0x50] sm:$0x1]  ;;  %v212_v52 = vld [vmem:[%s4410_s19 + $0x4c] sm:$0xf]  ;;  %v966_v54 = vrot.slane %v964_v44, 4  ;;  %v967_v55 = vrot.slane %v845_v40, 5 }
  0x5e   : > { %1045 = vrot.lane.b32.xlu1 %v940_v17, %s4359_s21  ;;  %v971_v56 = vrot.slane %v847_v48, 5  ;;  %245 = vst.msk [vmem:[#allocation2 + $0x34] sm:$0xf] %vm231_vm3, %v212_v52  ;;  %v211_v57 = vld [vmem:[%s4410_s19 + $0x48] sm:$0xf]  ;;  %v3864_v59 = vrot.slane %v843_v50, 9 }
  0x5f   : > { %1043 = vrot.lane.b32.xlu0 %v937_v21, %s4359_s21  ;;  %v4642_v60 = vld [vmem:[%s4410_s19 + $0x58] sm:$0xf]  ;;  %244 = vst.msk [vmem:[#allocation2 + $0x30] sm:$0xf] %vm231_vm3, %v211_v57  ;;  %v846_v63 = vld [vmem:[%s4410_s19 + $0x48] sm:$0xe]  ;;  %v968_v5 = vsel %vm4565_vm6, %v966_v54, %v967_v55 }
  0x60   : > { %v214_v61 = vld [vmem:[%s4410_s19 + $0x58] sm:$0xf]  ;;  %v851_v0 = vld [vmem:[%s4410_s19 + $0x5c] sm:$0x1]  ;;  %v213_v1 = vld [vmem:[%s4410_s19 + $0x54] sm:$0xf]  ;;  %v965_v10 = vsel %vm4565_vm6, %v3864_v59, %v964_v44 }
  0x61   : > { %247 = vst.msk [vmem:[#allocation2 + $0x3c] sm:$0xf] %vm231_vm3, %v214_v61  ;;  %v974_v2 = vrot.slane %v848_v51, 5  ;;  %246 = vst.msk [vmem:[#allocation2 + $0x38] sm:$0xf] %vm231_vm3, %v213_v1  ;;  %v973_v6 = vrot.slane %v971_v56, 4 }
  0x62   : > { %1049 = vrot.lane.b32.xlu1 %v947_v29, %s4359_s21  ;;  %v216_v3 = vld [vmem:[%s4410_s19 + $0x64] sm:$0xf]  ;;  %v215_v4 = vld [vmem:[%s4410_s19 + $0x60] sm:$0xf]  ;;  %v978_v7 = vrot.slane %v4642_v60, 5  ;;  %v3865_v11 = vrot.slane %v846_v63, 9 }
  0x63   : > { %1047 = vrot.lane.b32.xlu0 %v944_v34, %s4359_s21  ;;  %249 = vst.msk [vmem:[#allocation2 + $0x44] sm:$0xf] %vm231_vm3, %v216_v3  ;;  %248 = vst.msk [vmem:[#allocation2 + $0x40] sm:$0xf] %vm231_vm3, %v215_v4  ;;  %v218_v8 = vld [vmem:[%s4410_s19 + $0x70] sm:$0xf]  ;;  %v975_v20 = vsel %vm4565_vm6, %v973_v6, %v974_v2 }
  0x64   : > { %v217_v9 = vld [vmem:[%s4410_s19 + $0x6c] sm:$0xf]  ;;  %v853_v12 = vld [vmem:[%s4410_s19 + $0x64] sm:$0xf]  ;;  %251 = vst.msk [vmem:[#allocation2 + $0x4c] sm:$0xf] %vm231_vm3, %v218_v8  ;;  %v972_v25 = vsel %vm4565_vm6, %v3865_v11, %v971_v56 }
  0x65   : > { %250 = vst.msk [vmem:[#allocation2 + $0x48] sm:$0xf] %vm231_vm3, %v217_v9  ;;  %v220_v13 = vld [vmem:[%s4410_s19 + $0x7c] sm:$0xf]  ;;  %v849_v14 = vld [vmem:[%s4410_s19 + $0x54] sm:$0xe] }
  0x66   : > { %1053 = vrot.lane.b32.xlu1 %v954_v41, %s4359_s21  ;;  %v854_v15 = vld [vmem:[%s4410_s19 + $0x68] sm:$0x1]  ;;  %253 = vst.msk [vmem:[#allocation2 + $0x54] sm:$0xf] %vm231_vm3, %v220_v13  ;;  %v219_v16 = vld [vmem:[%s4410_s19 + $0x78] sm:$0xf] }
  0x67   : > { %1051 = vrot.lane.b32.xlu0 %v951_v46, %s4359_s21  ;;  %v981_v17 = vrot.slane %v851_v0, 5  ;;  %252 = vst.msk [vmem:[#allocation2 + $0x50] sm:$0xf] %vm231_vm3, %v219_v16  ;;  %v222_v18 = vld [vmem:[%s4410_s19 + $0x88] sm:$0xf]  ;;  %v980_v21 = vrot.slane %v978_v7, 4 }
  0x68   : > { %v221_v19 = vld [vmem:[%s4410_s19 + $0x84] sm:$0xf]  ;;  %v985_v22 = vrot.slane %v853_v12, 5  ;;  %255 = vst.msk [vmem:[#allocation2 + $0x5c] sm:$0xf] %vm231_vm3, %v222_v18  ;;  %v3866_v26 = vrot.slane %v849_v14, 9 }
  0x69   : > { %254 = vst.msk [vmem:[#allocation2 + $0x58] sm:$0xf] %vm231_vm3, %v221_v19  ;;  %v224_v23 = vld [vmem:[%s4410_s19 + $0x94] sm:$0xf]  ;;  %v223_v24 = vld [vmem:[%s4410_s19 + $0x90] sm:$0xf]  ;;  %v982_v35 = vsel %vm4565_vm6, %v980_v21, %v981_v17 }
  0x6a   : > { %1057 = vrot.lane.b32.xlu1 %v961_v53, %s4359_s21  ;;  %v856_v28 = vld [vmem:[%s4410_s19 + $0x70] sm:$0xf]  ;;  %257 = vst.msk [vmem:[#allocation2 + $0x64] sm:$0xf] %vm231_vm3, %v224_v23  ;;  %256 = vst.msk [vmem:[#allocation2 + $0x60] sm:$0xf] %vm231_vm3, %v223_v24  ;;  %v979_v40 = vsel %vm4565_vm6, %v3866_v26, %v978_v7 }
  0x6b   : > { %1055 = vrot.lane.b32.xlu0 %v958_v58, %s4359_s21  ;;  %v226_v29 = vld [vmem:[%s4410_s19 + $0xa0] sm:$0xf]  ;;  %v225_v31 = vld [vmem:[%s4410_s19 + $0x9c] sm:$0xf]  ;;  %v988_v32 = vrot.slane %v854_v15, 5  ;;  %v987_v36 = vrot.slane %v985_v22, 4 }
  0x6c   : > { %v852_v30 = vld [vmem:[%s4410_s19 + $0x60] sm:$0xe]  ;;  %259 = vst.msk [vmem:[#allocation2 + $0x6c] sm:$0xf] %vm231_vm3, %v226_v29  ;;  %258 = vst.msk [vmem:[#allocation2 + $0x68] sm:$0xf] %vm231_vm3, %v225_v31 }
  0x6d   : > { %v228_v33 = vld [vmem:[%s4410_s19 + $0xac] sm:$0xf]  ;;  %v227_v34 = vld [vmem:[%s4410_s19 + $0xa8] sm:$0xf]  ;;  %v992_v37 = vrot.slane %v856_v28, 5  ;;  %v3867_v41 = vrot.slane %v852_v30, 9  ;;  %v989_v45 = vsel %vm4565_vm6, %v987_v36, %v988_v32 }
  0x6e   : > { %1061 = vrot.lane.b32.xlu1 %v968_v5, %s4359_s21  ;;  %261 = vst.msk [vmem:[#allocation2 + $0x74] sm:$0xf] %vm231_vm3, %v228_v33  ;;  %260 = vst.msk [vmem:[#allocation2 + $0x70] sm:$0xf] %vm231_vm3, %v227_v34  ;;  %v230_v38 = vld [vmem:[%s4410_s19 + $0xb8] sm:$0xf] }
  0x6f   : > { %1059 = vrot.lane.b32.xlu0 %v965_v10, %s4359_s21  ;;  %v229_v39 = vld [vmem:[%s4410_s19 + $0xb4] sm:$0xf]  ;;  %v859_v43 = vld [vmem:[%s4410_s19 + $0x7c] sm:$0xf]  ;;  %263 = vst.msk [vmem:[#allocation2 + $0x7c] sm:$0xf] %vm231_vm3, %v230_v38  ;;  %v986_v49 = vsel %vm4565_vm6, %v3867_v41, %v985_v22 }
  0x70   : > { %v857_v42 = vld [vmem:[%s4410_s19 + $0x74] sm:$0x1]  ;;  %262 = vst.msk [vmem:[#allocation2 + $0x78] sm:$0xf] %vm231_vm3, %v229_v39  ;;  %v855_v44 = vld [vmem:[%s4410_s19 + $0x6c] sm:$0xe] }
  0x71   : > { %v994_v46 = vrot.slane %v992_v37, 4  ;;  %v995_v47 = vrot.slane %v857_v42, 5  ;;  %v999_v48 = vrot.slane %v859_v43, 5  ;;  %v3868_v50 = vrot.slane %v855_v44, 9  ;;  %v860_v51 = vld [vmem:[%s4410_s19 + $0x80] sm:$0x1] }
  0x72   : > { %1065 = vrot.lane.b32.xlu1 %v975_v20, %s4359_s21  ;;  %v862_v52 = vld [vmem:[%s4410_s19 + $0x88] sm:$0xf]  ;;  %v858_v53 = vld [vmem:[%s4410_s19 + $0x78] sm:$0xe]  ;;  %v1002_v56 = vrot.slane %v860_v51, 5  ;;  %vm3727_vm1 = vcmask 130048  }
  0x73   : > { %1063 = vrot.lane.b32.xlu0 %v972_v25, %s4359_s21  ;;  %v996_v54 = vsel %vm4565_vm6, %v994_v46, %v995_v47  ;;  %v1001_v55 = vrot.slane %v999_v48, 4  ;;  %v1006_v57 = vrot.slane %v862_v52, 5  ;;  %v993_v58 = vsel %vm4565_vm6, %v3868_v50, %v992_v37  ;;  %v863_v60 = vld [vmem:[%s4410_s19 + $0x8c] sm:$0x1]  ;;  %v865_v61 = vld [vmem:[%s4410_s19 + $0x94] sm:$0xf] }
  0x74   : > { %v3869_v59 = vrot.slane %v858_v53, 9  ;;  %v861_v63 = vld [vmem:[%s4410_s19 + $0x84] sm:$0xe]  ;;  %v1009_v2 = vrot.slane %v863_v60, 5  ;;  %v1013_v3 = vrot.slane %v865_v61, 5 }
  0x75   : > { %v1003_v0 = vsel %vm4565_vm6, %v1001_v55, %v1002_v56  ;;  %v1008_v1 = vrot.slane %v1006_v57, 4  ;;  %v3870_v5 = vrot.slane %v861_v63, 9  ;;  %v866_v6 = vld [vmem:[%s4410_s19 + $0x98] sm:$0x1]  ;;  %v868_v7 = vld [vmem:[%s4410_s19 + $0xa0] sm:$0xf] }
  0x76   : > { %1069 = vrot.lane.b32.xlu1 %v982_v35, %s4359_s21  ;;  %v1000_v4 = vsel %vm4565_vm6, %v3869_v59, %v999_v48  ;;  %v864_v8 = vld [vmem:[%s4410_s19 + $0x90] sm:$0xe]  ;;  %v1015_v10 = vrot.slane %v1013_v3, 4  ;;  %v1016_v11 = vrot.slane %v866_v6, 5  ;;  %v1020_v12 = vrot.slane %v868_v7, 5 }
  0x77   : > { %1067 = vrot.lane.b32.xlu0 %v979_v40, %s4359_s21  ;;  %v1010_v9 = vsel %vm4565_vm6, %v1008_v1, %v1009_v2  ;;  %v1007_v13 = vsel %vm4565_vm6, %v3870_v5, %v1006_v57  ;;  %v3871_v14 = vrot.slane %v864_v8, 9  ;;  %v869_v15 = vld [vmem:[%s4410_s19 + $0xa4] sm:$0x1]  ;;  %v871_v16 = vld [vmem:[%s4410_s19 + $0xac] sm:$0xf] }
  0x78   : > { %v867_v17 = vld [vmem:[%s4410_s19 + $0x9c] sm:$0xe]  ;;  %v1017_v18 = vsel %vm4565_vm6, %v1015_v10, %v1016_v11  ;;  %v1022_v19 = vrot.slane %v1020_v12, 4  ;;  %v1023_v20 = vrot.slane %v869_v15, 5  ;;  %v1027_v21 = vrot.slane %v871_v16, 5 }
  0x79   : > { %v1014_v22 = vsel %vm4565_vm6, %v3871_v14, %v1013_v3  ;;  %v3872_v23 = vrot.slane %v867_v17, 9  ;;  %v872_v24 = vld [vmem:[%s4410_s19 + $0xb0] sm:$0x1]  ;;  %v874_v25 = vld [vmem:[%s4410_s19 + $0xb8] sm:$0xf] }
  0x7a   : > { %1073 = vrot.lane.b32.xlu1 %v989_v45, %s4359_s21  ;;  %v870_v26 = vld [vmem:[%s4410_s19 + $0xa8] sm:$0xe]  ;;  %v1024_v28 = vsel %vm4565_vm6, %v1022_v19, %v1023_v20  ;;  %v1029_v29 = vrot.slane %v1027_v21, 4  ;;  %v1030_v30 = vrot.slane %v872_v24, 5  ;;  %v1034_v31 = vrot.slane %v874_v25, 5 }
  0x7b   : > { %1071 = vrot.lane.b32.xlu0 %v986_v49, %s4359_s21  ;;  %v1021_v33 = vsel %vm4565_vm6, %v3872_v23, %v1020_v12  ;;  %v3873_v34 = vrot.slane %v870_v26, 9  ;;  %v875_v35 = vld [vmem:[%s4410_s19 + $0xbc] sm:$0x1]  ;;  %v873_v37 = vld [vmem:[%s4410_s19 + $0xb4] sm:$0xe] }
  0x7c   : > { %v1031_v38 = vsel %vm4565_vm6, %v1029_v29, %v1030_v30  ;;  %v1036_v39 = vrot.slane %v1034_v31, 4  ;;  %v1037_v40 = vrot.slane %v875_v35, 5  ;;  %v3874_v43 = vrot.slane %v873_v37, 9  ;;  %v3876_v49 = vld [vmem:[%s4410_s19 + $0x10] sm:$0xf] }
  0x7d   : > { %v1028_v42 = vsel %vm4565_vm6, %v3873_v34, %v1027_v21  ;;  %v3875_v51 = vld [vmem:[%s4410_s19 + $0xc] sm:$0xf]  ;;  %v3878_v53 = vld [vmem:[%s4410_s19 + $0x1c] sm:$0xf]  ;;  %v3877_v55 = vld [vmem:[%s4410_s19 + $0x18] sm:$0xf] }
  0x7e   : > { %1077 = vrot.lane.b32.xlu1 %v996_v54, %s4359_s21  ;;  %v1038_v45 = vsel %vm4565_vm6, %v1036_v39, %v1037_v40  ;;  %v1035_v47 = vsel %vm4565_vm6, %v3874_v43, %v1034_v31  ;;  %v3880_v57 = vld [vmem:[%s4410_s19 + $0x28] sm:$0xf]  ;;  %v3879_v59 = vld [vmem:[%s4410_s19 + $0x24] sm:$0xf]  ;;  %v3882_v61 = vld [vmem:[%s4410_s19 + $0x34] sm:$0xf] }
  0x7f   : > { %1075 = vrot.lane.b32.xlu0 %v993_v58, %s4359_s21  ;;  %v3884_v2 = vld [vmem:[%s4410_s19 + $0x40] sm:$0xf]  ;;  %v3886_v6 = vld [vmem:[%s4410_s19 + $0x4c] sm:$0xf]  ;;  %v3885_v8 = vld [vmem:[%s4410_s19 + $0x48] sm:$0xf] }
  0x80   : > { %v3888_v10 = vld [vmem:[%s4410_s19 + $0x58] sm:$0xf]  ;;  %v3887_v12 = vld [vmem:[%s4410_s19 + $0x54] sm:$0xf]  ;;  %v3890_v14 = vld [vmem:[%s4410_s19 + $0x64] sm:$0xf] }
  0x81   : > { %v3889_v16 = vld [vmem:[%s4410_s19 + $0x60] sm:$0xf]  ;;  %v3891_v20 = vld [vmem:[%s4410_s19 + $0x6c] sm:$0xf]  ;;  %v3893_v24 = vld [vmem:[%s4410_s19 + $0x78] sm:$0xf] }
  0x82   : > { %1081 = vrot.lane.b32.xlu1 %v1003_v0, %s4359_s21  ;;  %v3881_v0 = vld [vmem:[%s4410_s19 + $0x30] sm:$0xf]  ;;  %v3896_v26 = vld [vmem:[%s4410_s19 + $0x88] sm:$0xf]  ;;  %v3895_v29 = vld [vmem:[%s4410_s19 + $0x84] sm:$0xf] }
  0x83   : > { %1079 = vrot.lane.b32.xlu0 %v1000_v4, %s4359_s21  ;;  %v3883_v4 = vld [vmem:[%s4410_s19 + $0x3c] sm:$0xf]  ;;  %v3898_v31 = vld [vmem:[%s4410_s19 + $0x94] sm:$0xf]  ;;  %v3897_v34 = vld [vmem:[%s4410_s19 + $0x90] sm:$0xf] }
  0x84   : > { %v3907_v35 = vld [vmem:[%s4410_s19 + $0xc] sm:$0xf]  ;;  %v3900_v39 = vld [vmem:[%s4410_s19 + $0xa0] sm:$0xf] }
  0x85   : > { %v1414_v40 = vshrl.u32 %v3907_v35, 16 }
  0x86   : > { %1085 = vrot.lane.b32.xlu1 %v1010_v9, %s4359_s21 }
  0x87   : > { %1083 = vrot.lane.b32.xlu0 %v1007_v13, %s4359_s21 }
  0x8a   : > { %1089 = vrot.lane.b32.xlu1 %v1017_v18, %s4359_s21  ;;  %v3892_v18 = vld [vmem:[%s4410_s19 + $0x70] sm:$0xf] }
  0x8b   : > { %1087 = vrot.lane.b32.xlu0 %v1014_v22, %s4359_s21  ;;  %v3894_v22 = vld [vmem:[%s4410_s19 + $0x7c] sm:$0xf] }
  0x8c   : > { %v704_v32 = vpop.permute.xlu1 %703 }
  0x8d   : > { %798 = vst.msk [vmem:[#allocation2 + $0x8] sm:$0xf] %vm795_vm7, %v704_v32  ;;  %v700_v36 = vpop.permute.xlu0 %699  ;;  %v3908_v32 = vld [vmem:[%s4410_s19 + $0x10] sm:$0xf] }
  0x8e   : > { %796 = vst.msk [vmem:[#allocation2] sm:$0xf] %vm795_vm7, %v700_v36  ;;  %1093 = vrot.lane.b32.xlu1 %v1024_v28, %s4359_s21  ;;  %v1423_v37 = vshll.u32 %v3908_v32, 16 }
  0x8f   : > { %1091 = vrot.lane.b32.xlu0 %v1021_v33, %s4359_s21 }
  0x90   : > { %v706_v41 = vpop.permute.xlu1 %705 }
  0x91   : > { %799 = vst.msk [vmem:[#allocation2 + $0xc] sm:$0xf] %vm795_vm7, %v706_v41  ;;  %v702_v44 = vpop.permute.xlu0 %701  ;;  %v1417_v41 = vshll.u32 %v3907_v35, 16  ;;  %v3905_v35 = vld [vmem:[%s4410_s19 + $0xc0] sm:$0xf] }
  0x92   : > { %797 = vst.msk [vmem:[#allocation2 + $0x4] sm:$0xf] %vm795_vm7, %v702_v44  ;;  %1097 = vrot.lane.b32.xlu1 %v1031_v38, %s4359_s21  ;;  %v1427_v38 = vshrl.u32 %v3908_v32, 16  ;;  %v3899_v44 = vld [vmem:[%s4410_s19 + $0x9c] sm:$0xf] }
  0x93   : > { %1095 = vrot.lane.b32.xlu0 %v1028_v42, %s4359_s21  ;;  %v3911_v42 = vld [vmem:[%s4410_s19 + $0x1c] sm:$0xf]  ;;  %v3920_v32 = vld [vmem:[%s4410_s19 + $0x40] sm:$0xf] }
  0x94   : > { %v710_v46 = vpop.permute.xlu1 %709 }
  0x95   : > { %801 = vst.msk [vmem:[#allocation2 + $0x14] sm:$0xf] %vm795_vm7, %v710_v46  ;;  %v708_v48 = vpop.permute.xlu0 %707 }
  0x96   : > { %800 = vst.msk [vmem:[#allocation2 + $0x10] sm:$0xf] %vm795_vm7, %v708_v48  ;;  %1101 = vrot.lane.b32.xlu1 %v1038_v45, %s4359_s21  ;;  %v3910_v45 = vld [vmem:[%s4410_s19 + $0x18] sm:$0xf]  ;;  %v3902_v48 = vld [vmem:[%s4410_s19 + $0xac] sm:$0xf] }
  0x97   : > { %1099 = vrot.lane.b32.xlu0 %v1035_v47, %s4359_s21  ;;  %v3914_v47 = vld [vmem:[%s4410_s19 + $0x28] sm:$0xf] }
  0x98   : > { %v714_v50 = vpop.permute.xlu1 %713 }
  0x99   : > { %803 = vst.msk [vmem:[#allocation2 + $0x1c] sm:$0xf] %vm795_vm7, %v714_v50  ;;  %v712_v52 = vpop.permute.xlu0 %711  ;;  %v1429_v50 = vrot.slane %v1427_v38, 4 }
  0x9a   : > { %802 = vst.msk [vmem:[#allocation2 + $0x18] sm:$0xf] %vm795_vm7, %v712_v52  ;;  %1238 = vrot.lane.b32.xlu1 %v3876_v49, %s4360_s22  ;;  %v4866_v49 = vrot.slane %v1423_v37, 5  ;;  %v1451_v52 = vshrl.u32 %v3911_v42, 16 }
  0x9b   : > { %1236 = vrot.lane.b32.xlu0 %v3875_v51, %s4360_s22  ;;  %v1447_v51 = vshll.u32 %v3911_v42, 16 }
  0x9c   : > { %v718_v54 = vpop.permute.xlu1 %717 }
  0x9d   : > { %805 = vst.msk [vmem:[#allocation2 + $0x24] sm:$0xf] %vm795_vm7, %v718_v54  ;;  %v716_v56 = vpop.permute.xlu0 %715  ;;  %v1416_v54 = vrot.slane %v1414_v40, 4 }
  0x9e   : > { %804 = vst.msk [vmem:[#allocation2 + $0x20] sm:$0xf] %vm795_vm7, %v716_v56  ;;  %1242 = vrot.lane.b32.xlu1 %v3878_v53, %s4360_s22  ;;  %v3909_v53 = vld [vmem:[%s4410_s19 + $0x14] sm:$0x1]  ;;  %v1438_v56 = vshrl.u32 %v3910_v45, 16 }
  0x9f   : > { %1240 = vrot.lane.b32.xlu0 %v3877_v55, %s4360_s22  ;;  %v1419_v55 = vrot.slane %v1417_v41, 5 }
  0xa0   : > { %v722_v58 = vpop.permute.xlu1 %721 }
  0xa1   : > { %807 = vst.msk [vmem:[#allocation2 + $0x2c] sm:$0xf] %vm795_vm7, %v722_v58  ;;  %v720_v60 = vpop.permute.xlu0 %719 }
  0xa2   : > { %806 = vst.msk [vmem:[#allocation2 + $0x28] sm:$0xf] %vm795_vm7, %v720_v60  ;;  %1246 = vrot.lane.b32.xlu1 %v3880_v57, %s4360_s22  ;;  %v1441_v57 = vshll.u32 %v3910_v45, 16  ;;  %v1471_v60 = vshll.u32 %v3914_v47, 16  ;;  %v3918_v45 = vld [vmem:[%s4410_s19 + $0x38] sm:$0x1] }
  0xa3   : > { %1244 = vrot.lane.b32.xlu0 %v3879_v59, %s4360_s22  ;;  %v3901_v59 = vld [vmem:[%s4410_s19 + $0xa8] sm:$0xf] }
  0xa4   : > { %v726_v63 = vpop.permute.xlu1 %725 }
  0xa5   : > { %809 = vst.msk [vmem:[#allocation2 + $0x34] sm:$0xf] %vm795_vm7, %v726_v63  ;;  %v724_v1 = vpop.permute.xlu0 %723 }
  0xa6   : > { %808 = vst.msk [vmem:[#allocation2 + $0x30] sm:$0xf] %vm795_vm7, %v724_v1  ;;  %1250 = vrot.lane.b32.xlu1 %v3882_v61, %s4360_s22  ;;  %v1475_v61 = vshrl.u32 %v3914_v47, 16  ;;  %v3913_v1 = vld [vmem:[%s4410_s19 + $0x24] sm:$0xf]  ;;  %v1523_v47 = vshrl.u32 %v3920_v32, 16 }
  0xa7   : > { %1248 = vrot.lane.b32.xlu0 %v3881_v0, %s4360_s22  ;;  %v3904_v0 = vld [vmem:[%s4410_s19 + $0xb8] sm:$0xf] }
  0xa8   : > { %v730_v3 = vpop.permute.xlu1 %729 }
  0xa9   : > { %811 = vst.msk [vmem:[#allocation2 + $0x3c] sm:$0xf] %vm795_vm7, %v730_v3  ;;  %v728_v5 = vpop.permute.xlu0 %727  ;;  %v1430_v3 = vor.u32 %v1429_v50, %v4866_v49 }
  0xaa   : > { %810 = vst.msk [vmem:[#allocation2 + $0x38] sm:$0xf] %vm795_vm7, %v728_v5  ;;  %1254 = vrot.lane.b32.xlu1 %v3884_v2, %s4360_s22  ;;  %v3903_v2 = vld [vmem:[%s4410_s19 + $0xb4] sm:$0xf]  ;;  %v4878_v5 = vrot.slane %v1447_v51, 5 }
  0xab   : > { %1252 = vrot.lane.b32.xlu0 %v3883_v4, %s4360_s22  ;;  %v1433_v4 = vshll.u32 %v3909_v53, 16 }
  0xac   : > { %v734_v7 = vpop.permute.xlu1 %733 }
  0xad   : > { %813 = vst.msk [vmem:[#allocation2 + $0x44] sm:$0xf] %vm795_vm7, %v734_v7  ;;  %v732_v9 = vpop.permute.xlu0 %731  ;;  %v3916_v7 = vld [vmem:[%s4410_s19 + $0x30] sm:$0xf] }
  0xae   : > { %812 = vst.msk [vmem:[#allocation2 + $0x40] sm:$0xf] %vm795_vm7, %v732_v9  ;;  %1258 = vrot.lane.b32.xlu1 %v3886_v6, %s4360_s22  ;;  %v3917_v6 = vld [vmem:[%s4410_s19 + $0x34] sm:$0xf]  ;;  %v3912_v9 = vld [vmem:[%s4410_s19 + $0x20] sm:$0x1] }
  0xaf   : > { %1256 = vrot.lane.b32.xlu0 %v3885_v8, %s4360_s22  ;;  %v1420_v8 = vor.u32 %v1419_v55, %v1416_v54 }
  0xb0   : > { %v738_v11 = vpop.permute.xlu1 %737 }
  0xb1   : > { %815 = vst.msk [vmem:[#allocation2 + $0x4c] sm:$0xf] %vm795_vm7, %v738_v11  ;;  %v736_v13 = vpop.permute.xlu0 %735  ;;  %v1440_v11 = vrot.slane %v1438_v56, 4 }
  0xb2   : > { %814 = vst.msk [vmem:[#allocation2 + $0x48] sm:$0xf] %vm795_vm7, %v736_v13  ;;  %1262 = vrot.lane.b32.xlu1 %v3888_v10, %s4360_s22  ;;  %v1453_v10 = vrot.slane %v1451_v52, 4 }
  0xb3   : > { %1260 = vrot.lane.b32.xlu0 %v3887_v12, %s4360_s22  ;;  %v1443_v12 = vrot.slane %v1441_v57, 5 }
  0xb4   : > { %v742_v15 = vpop.permute.xlu1 %741 }
  0xb5   : > { %817 = vst.msk [vmem:[#allocation2 + $0x54] sm:$0xf] %vm795_vm7, %v742_v15  ;;  %v740_v17 = vpop.permute.xlu0 %739  ;;  %v4885_v15 = vrot.slane %v1471_v60, 5 }
  0xb6   : > { %816 = vst.msk [vmem:[#allocation2 + $0x50] sm:$0xf] %vm795_vm7, %v740_v17  ;;  %1266 = vrot.lane.b32.xlu1 %v3890_v14, %s4360_s22  ;;  %v3915_v14 = vld [vmem:[%s4410_s19 + $0x2c] sm:$0x1]  ;;  %v1462_v17 = vshrl.u32 %v3913_v1, 16 }
  0xb7   : > { %1264 = vrot.lane.b32.xlu0 %v3889_v16, %s4360_s22  ;;  %v1477_v16 = vrot.slane %v1475_v61, 4 }
  0xb8   : > { %v746_v19 = vpop.permute.xlu1 %745  ;;  %v1464_v38 = vrot.slane %v1462_v17, 4 }
  0xb9   : > { %819 = vst.msk [vmem:[#allocation2 + $0x5c] sm:$0xf] %vm795_vm7, %v746_v19  ;;  %v744_v21 = vpop.permute.xlu0 %743  ;;  %v1478_v37 = vor.u32 %v1477_v16, %v4885_v15 }
  0xba   : > { %818 = vst.msk [vmem:[#allocation2 + $0x58] sm:$0xf] %vm795_vm7, %v744_v21  ;;  %1270 = vrot.lane.b32.xlu1 %v3892_v18, %s4360_s22  ;;  %v1465_v18 = vshll.u32 %v3913_v1, 16  ;;  %v1499_v21 = vshrl.u32 %v3917_v6, 16 }
  0xbb   : > { %1268 = vrot.lane.b32.xlu0 %v3891_v20, %s4360_s22  ;;  %v1495_v20 = vshll.u32 %v3917_v6, 16  ;;  %v1479_v61 = vrot.slane %v1478_v37, 4 }
  0xbc   : > { %v750_v23 = vpop.permute.xlu1 %749  ;;  %v1501_v42 = vrot.slane %v1499_v21, 4 }
  0xbd   : > { %821 = vst.msk [vmem:[#allocation2 + $0x64] sm:$0xf] %vm795_vm7, %v750_v23  ;;  %v748_v25 = vpop.permute.xlu0 %747  ;;  %v1489_v23 = vshll.u32 %v3916_v7, 16  ;;  %v4898_v41 = vrot.slane %v1495_v20, 5 }
  0xbe   : > { %820 = vst.msk [vmem:[#allocation2 + $0x60] sm:$0xf] %vm795_vm7, %v748_v25  ;;  %1274 = vrot.lane.b32.xlu1 %v3894_v22, %s4360_s22  ;;  %v1486_v22 = vshrl.u32 %v3916_v7, 16  ;;  %v1431_v25 = vrot.slane %v1430_v3, 4 }
  0xbf   : > { %1272 = vrot.lane.b32.xlu0 %v3893_v24, %s4360_s22  ;;  %v3906_v24 = vld [vmem:[%s4410_s19 + $0xc4] sm:$0xf] }
  0xc0   : > { %v754_v28 = vpop.permute.xlu1 %753 }
  0xc1   : > { %823 = vst.msk [vmem:[#allocation2 + $0x6c] sm:$0xf] %vm795_vm7, %v754_v28  ;;  %v752_v30 = vpop.permute.xlu0 %751  ;;  %v1457_v28 = vshll.u32 %v3912_v9, 16  ;;  %v3932_v9 = vld [vmem:[%s4410_s19 + $0x70] sm:$0xf] }
  0xc2   : > { %822 = vst.msk [vmem:[#allocation2 + $0x68] sm:$0xf] %vm795_vm7, %v752_v30  ;;  %1278 = vrot.lane.b32.xlu1 %v3896_v26, %s4360_s22  ;;  %v1435_v26 = vrot.slane %v1433_v4, 5  ;;  %v1454_v30 = vor.u32 %v1453_v10, %v4878_v5  ;;  %v1525_v4 = vrot.slane %v1523_v47, 4 }
  0xc3   : > { %1276 = vrot.lane.b32.xlu0 %v3895_v29, %s4360_s22  ;;  %v1421_v29 = vrot.slane %v1420_v8, 4  ;;  %v1459_v53 = vrot.slane %v1457_v28, 5 }
  0xc4   : > { %v758_v33 = vpop.permute.xlu1 %757  ;;  %v1436_v51 = vsel %vm4421_vm2, %v1431_v25, %v1435_v26  ;;  %v1455_v52 = vrot.slane %v1454_v30, 4  ;;  %v1615_v26 = vshll.u32 %v3932_v9, 16 }
  0xc5   : > { %825 = vst.msk [vmem:[#allocation2 + $0x74] sm:$0xf] %vm795_vm7, %v758_v33  ;;  %v756_v36 = vpop.permute.xlu0 %755  ;;  %v3919_v33 = vld [vmem:[%s4410_s19 + $0x3c] sm:$0xf]  ;;  %v1426_v55 = vsel %vm4421_vm2, %v1421_v29, %v4866_v49  ;;  %v3921_v49 = vld [vmem:[%s4410_s19 + $0x44] sm:$0x1] }
  0xc6   : > { %824 = vst.msk [vmem:[#allocation2 + $0x70] sm:$0xf] %vm795_vm7, %v756_v36  ;;  %1282 = vrot.lane.b32.xlu1 %v3898_v31, %s4360_s22  ;;  %v1481_v31 = vshll.u32 %v3915_v14, 16  ;;  %v1444_v36 = vor.u32 %v1443_v12, %v1440_v11  ;;  %v1513_v50 = vshll.u32 %v3919_v33, 16  ;;  %v1460_v8 = vsel %vm4421_vm2, %v1455_v52, %v1459_v53 }
  0xc7   : > { %1280 = vrot.lane.b32.xlu0 %v3897_v34, %s4360_s22 }
  0xc8   : > { %v762_v43 = vpop.permute.xlu1 %761  ;;  %v1445_v56 = vrot.slane %v1444_v36, 4  ;;  %v1483_v57 = vrot.slane %v1481_v31, 5  ;;  %v1515_v7 = vrot.slane %v1513_v50, 5 }
  0xc9   : > { %827 = vst.msk [vmem:[#allocation2 + $0x7c] sm:$0xf] %vm795_vm7, %v762_v43  ;;  %v760_v46 = vpop.permute.xlu0 %759  ;;  %v1488_v43 = vrot.slane %v1486_v22, 4 }
  0xca   : > { %826 = vst.msk [vmem:[#allocation2 + $0x78] sm:$0xf] %vm795_vm7, %v760_v46  ;;  %1286 = vrot.lane.b32.xlu1 %v3900_v39, %s4360_s22  ;;  %v1467_v39 = vrot.slane %v1465_v18, 5  ;;  %v1519_v46 = vshll.u32 %v3920_v32, 16  ;;  %v3934_v18 = vld [vmem:[%s4410_s19 + $0x78] sm:$0xf]  ;;  %v1484_v20 = vsel %vm4421_vm2, %v1479_v61, %v1483_v57 }
  0xcb   : > { %1284 = vrot.lane.b32.xlu0 %v3899_v44, %s4360_s22  ;;  %v1491_v44 = vrot.slane %v1489_v23, 5  ;;  %v1529_v23 = vshll.u32 %v3921_v49, 16  ;;  %v1630_v30 = vshrl.u32 %v3934_v18, 16  ;;  %v1633_v31 = vshll.u32 %v3934_v18, 16 }
  0xcc   : > { %v1042_v58 = vpop.permute.xlu1 %1041  ;;  %v4916_v3 = vrot.slane %v1519_v46, 5 }
  0xcd   : > { %1137 = vst.msk [vmem:[#allocation2 + $0x4] sm:$0xf] %vm1135_vm8, %v1042_v58  ;;  %v1040_v63 = vpop.permute.xlu0 %1039  ;;  %v1468_v58 = vor.u32 %v1467_v39, %v1464_v38  ;;  %v1492_v1 = vor.u32 %v1491_v44, %v1488_v43  ;;  %v1635_v50 = vrot.slane %v1633_v31, 5 }
  0xce   : > { %1136 = vst.msk [vmem:[#allocation2] sm:$0xf] %vm1135_vm8, %v1040_v63  ;;  %1290 = vrot.lane.b32.xlu1 %v3902_v48, %s4360_s22  ;;  %v1510_v48 = vshrl.u32 %v3919_v33, 16  ;;  %v1502_v63 = vor.u32 %v1501_v42, %v4898_v41  ;;  %v3935_v42 = vld [vmem:[%s4410_s19 + $0x7c] sm:$0xf] }
  0xcf   : > { %1288 = vrot.lane.b32.xlu0 %v3901_v59, %s4360_s22  ;;  %v3931_v59 = vld [vmem:[%s4410_s19 + $0x6c] sm:$0xf]  ;;  %v1469_v14 = vrot.slane %v1468_v58, 4  ;;  %v1639_v53 = vshll.u32 %v3935_v42, 16 }
  0xd0   : > { %v1046_v13 = vpop.permute.xlu1 %1045  ;;  %v1512_v6 = vrot.slane %v1510_v48, 4  ;;  %v1606_v10 = vshrl.u32 %v3931_v59, 16  ;;  %v1609_v11 = vshll.u32 %v3931_v59, 16  ;;  %v1503_v21 = vrot.slane %v1502_v63, 4 }
  0xd1   : > { %1139 = vst.msk [vmem:[#allocation2 + $0xc] sm:$0xf] %vm1135_vm8, %v1046_v13  ;;  %v1044_v19 = vpop.permute.xlu0 %1043  ;;  %v1450_v13 = vsel %vm4421_vm2, %v1445_v56, %v4878_v5  ;;  %v1526_v5 = vor.u32 %v1525_v4, %v4916_v3  ;;  %v1474_v33 = vsel %vm4421_vm2, %v1469_v14, %v4885_v15  ;;  %v1632_v48 = vrot.slane %v1630_v30, 4  ;;  %v3956_v14 = vld [vmem:[%s4410_s19 + $0x10] sm:$0xf] }
  0xd2   : > { %1138 = vst.msk [vmem:[#allocation2 + $0x8] sm:$0xf] %vm1135_vm8, %v1044_v19  ;;  %1294 = vrot.lane.b32.xlu1 %v3904_v0, %s4360_s22  ;;  %v1505_v0 = vshll.u32 %v3918_v45, 16  ;;  %v1516_v25 = vor.u32 %v1515_v7, %v1512_v6  ;;  %v1608_v28 = vrot.slane %v1606_v10, 4  ;;  %v1611_v29 = vrot.slane %v1609_v11, 5 }
  0xd3   : > { %1292 = vrot.lane.b32.xlu0 %v3903_v2, %s4360_s22  ;;  %v3922_v2 = vld [vmem:[%s4410_s19 + $0x48] sm:$0xf]  ;;  %v1527_v43 = vrot.slane %v1526_v5, 4  ;;  %v1617_v45 = vrot.slane %v1615_v26, 5  ;;  %v1636_v61 = vor.u32 %v1635_v50, %v1632_v48  ;;  %v3936_v7 = vld [vmem:[%s4410_s19 + $0x80] sm:$0x1] }
  0xd4   : > { %v1050_v34 = vpop.permute.xlu1 %1049  ;;  %v1534_v16 = vshrl.u32 %v3922_v2, 16  ;;  %v1537_v17 = vshll.u32 %v3922_v2, 16  ;;  %v1507_v22 = vrot.slane %v1505_v0, 5  ;;  %v1517_v44 = vrot.slane %v1516_v25, 4  ;;  %v3979_v25 = vld [vmem:[%s4410_s19 + $0x6c] sm:$0xe] }
  0xd5   : > { %1141 = vst.msk [vmem:[#allocation2 + $0x14] sm:$0xf] %vm1135_vm8, %v1050_v34  ;;  %v1048_v40 = vpop.permute.xlu0 %1047  ;;  %v1619_v34 = vshrl.u32 %v3932_v9, 16  ;;  %v1612_v46 = vor.u32 %v1611_v29, %v1608_v28  ;;  %v1641_v2 = vrot.slane %v1639_v53, 5  ;;  %v3980_v26 = vld [vmem:[%s4410_s19 + $0x70] sm:$0xf] }
  0xd6   : > { %1140 = vst.msk [vmem:[#allocation2 + $0x10] sm:$0xf] %vm1135_vm8, %v1048_v40  ;;  %1298 = vrot.lane.b32.xlu1 %v3906_v24, %s4360_s22  ;;  %v1493_v24 = vrot.slane %v1492_v1, 4  ;;  %v1536_v36 = vrot.slane %v1534_v16, 4  ;;  %v1539_v37 = vrot.slane %v1537_v17, 5  ;;  %v1508_v39 = vsel %vm4421_vm2, %v1503_v21, %v1507_v22 }
  0xd7   : > { %1296 = vrot.lane.b32.xlu0 %v3905_v35, %s4360_s22  ;;  %v3923_v35 = vld [vmem:[%s4410_s19 + $0x4c] sm:$0xf]  ;;  %v1531_v40 = vrot.slane %v1529_v23, 5  ;;  %v1621_v56 = vrot.slane %v1619_v34, 4  ;;  %v1522_v58 = vsel %vm4421_vm2, %v1517_v44, %v4916_v3  ;;  %v1613_v59 = vrot.slane %v1612_v46, 4 }
  0xd8   : > { %v1054_v54 = vpop.permute.xlu1 %1053  ;;  %v1498_v15 = vsel %vm4421_vm2, %v1493_v24, %v4898_v41  ;;  %v1543_v47 = vshll.u32 %v3923_v35, 16  ;;  %v1540_v52 = vor.u32 %v1539_v37, %v1536_v36  ;;  %v1649_v17 = vshll.u32 %v3936_v7, 16  ;;  %v3957_v29 = vld [vmem:[%s4410_s19 + $0x14] sm:$0x1]  ;;  %v3958_v37 = vld [vmem:[%s4410_s19 + $0x18] sm:$0xe] }
  0xd9   : > { %1143 = vst.msk [vmem:[#allocation2 + $0x1c] sm:$0xf] %vm1135_vm8, %v1054_v54  ;;  %v1052_v60 = vpop.permute.xlu0 %1051  ;;  %v1643_v54 = vshrl.u32 %v3935_v42, 16  ;;  %v1532_v41 = vsel %vm4421_vm2, %v1527_v43, %v1531_v40  ;;  %v1622_v49 = vor.u32 %v1621_v56, %v1617_v45  ;;  %v1618_v3 = vsel %vm4421_vm2, %v1613_v59, %v1617_v45  ;;  %v3981_v40 = vld [vmem:[%s4410_s19 + $0x74] sm:$0x1] }
  0xda   : > { %1142 = vst.msk [vmem:[#allocation2 + $0x18] sm:$0xf] %vm1135_vm8, %v1052_v60  ;;  %1799 = vrot.lane.b32.xlu1 %v1436_v51, %s4361_s23  ;;  %v4957_v60 = vrot.slane %v1543_v47, 5  ;;  %v1541_v1 = vrot.slane %v1540_v52, 4  ;;  %v2024_v21 = vrot.slane %v3956_v14, 5  ;;  %v1651_v5 = vrot.slane %v1649_v17, 5 }
  0xdb   : > { %1797 = vrot.lane.b32.xlu0 %v1426_v55, %s4361_s23  ;;  %v3933_v55 = vld [vmem:[%s4410_s19 + $0x74] sm:$0x1]  ;;  %v1645_v4 = vrot.slane %v1643_v54, 4  ;;  %v4011_v31 = vrot.slane %v3979_v25, 9  ;;  %v2027_v36 = vrot.slane %v3957_v29, 5  ;;  %v2083_v47 = vrot.slane %v3981_v40, 5 }
  0xdc   : > { %v1058_v12 = vpop.permute.xlu1 %1057  ;;  %v1625_v63 = vshll.u32 %v3933_v55, 16  ;;  %v1546_v11 = vsel %vm4421_vm2, %v1541_v1, %v4957_v60  ;;  %v2026_v35 = vrot.slane %v2024_v21, 4  ;;  %v3982_v48 = vld [vmem:[%s4410_s19 + $0x78] sm:$0xe]  ;;  %v3983_v50 = vld [vmem:[%s4410_s19 + $0x7c] sm:$0xf] }
  0xdd   : > { %1145 = vst.msk [vmem:[#allocation2 + $0x24] sm:$0xf] %vm1135_vm8, %v1058_v12  ;;  %v1056_v19 = vpop.permute.xlu0 %1055  ;;  %v1623_v12 = vrot.slane %v1622_v49, 4  ;;  %v1646_v16 = vor.u32 %v1645_v4, %v1641_v2  ;;  %v3960_v52 = vld [vmem:[%s4410_s19 + $0x20] sm:$0x1]  ;;  %v4012_v54 = vrot.slane %v3982_v48, 9 }
  0xde   : > { %1144 = vst.msk [vmem:[#allocation2 + $0x20] sm:$0xf] %vm1135_vm8, %v1056_v19  ;;  %1803 = vrot.lane.b32.xlu1 %v1460_v8, %s4361_s23  ;;  %v1637_v8 = vrot.slane %v1636_v61, 4  ;;  %v1627_v9 = vrot.slane %v1625_v63, 5  ;;  %v2028_v45 = vsel %vm4565_vm6, %v2026_v35, %v2027_v36  ;;  %v2087_v55 = vrot.slane %v3983_v50, 5 }
  0xdf   : > { %1801 = vrot.lane.b32.xlu0 %v1450_v13, %s4361_s23  ;;  %v3955_v13 = vld [vmem:[%s4410_s19 + $0xc] sm:$0xe]  ;;  %v1647_v24 = vrot.slane %v1646_v16, 4  ;;  %v3984_v61 = vld [vmem:[%s4410_s19 + $0x80] sm:$0x1] }
  0xe0   : > { %v1062_v32 = vpop.permute.xlu1 %1061  ;;  %v1642_v19 = vsel %vm4421_vm2, %v1637_v8, %v1641_v2  ;;  %v1628_v23 = vsel %vm4421_vm2, %v1623_v12, %v1627_v9  ;;  %v2088_v63 = vsel %vm4565_vm6, %v4012_v54, %v2087_v55  ;;  %v2089_v49 = vrot.slane %v2087_v55, 4  ;;  %v4052_v7 = vld [vmem:[%s4410_s19 + $0x1c] sm:$0xf]  ;;  %v4075_v9 = vld [vmem:[%s4410_s19 + $0x78] sm:$0xf] }
  0xe1   : > { %1147 = vst.msk [vmem:[#allocation2 + $0x2c] sm:$0xf] %vm1135_vm8, %v1062_v32  ;;  %v1060_v38 = vpop.permute.xlu0 %1059  ;;  %v2080_v32 = vrot.slane %v3980_v26, 5  ;;  %v1652_v34 = vsel %vm4421_vm2, %v1647_v24, %v1651_v5  ;;  %v2090_v4 = vrot.slane %v3984_v61, 5  ;;  %v2518_v14 = vshll.u32 %v4052_v7, 16 }
  0xe2   : > { %1146 = vst.msk [vmem:[#allocation2 + $0x28] sm:$0xf] %vm1135_vm8, %v1060_v38  ;;  %1807 = vrot.lane.b32.xlu1 %v1484_v20, %s4361_s23  ;;  %v4003_v20 = vrot.slane %v3955_v13, 9  ;;  %v3959_v38 = vld [vmem:[%s4410_s19 + $0x1c] sm:$0xf]  ;;  %v2701_v16 = vshrl.u32 %v4075_v9, 16 }
  0xe3   : > { %1805 = vrot.lane.b32.xlu0 %v1474_v33, %s4361_s23  ;;  %v2081_v42 = vsel %vm4565_vm6, %v4011_v31, %v2080_v32  ;;  %v2031_v43 = vrot.slane %v3959_v38, 5  ;;  %v2082_v46 = vrot.slane %v2080_v32, 4  ;;  %v2091_v12 = vsel %vm4565_vm6, %v2089_v49, %v2090_v4  ;;  %v4020_v5 = vld [vmem:[%s4410_s19 + $0x1c] sm:$0xf]  ;;  %v4053_v32 = vld [vmem:[%s4410_s19 + $0x20] sm:$0x1] }
  0xe4   : > { %v1066_v51 = vpop.permute.xlu1 %1065  ;;  %v2025_v30 = vsel %vm4565_vm6, %v4003_v20, %v2024_v21  ;;  %v4076_v20 = vld [vmem:[%s4410_s19 + $0x7c] sm:$0xf]  ;;  %v2704_v21 = vshll.u32 %v4075_v9, 16  ;;  %v5040_v26 = vrot.slane %v2518_v14, 5  ;;  %v4021_v35 = vld [vmem:[%s4410_s19 + $0x24] sm:$0xf] }
  0xe5   : > { %1149 = vst.msk [vmem:[#allocation2 + $0x34] sm:$0xf] %vm1135_vm8, %v1066_v51  ;;  %v1064_v57 = vpop.permute.xlu0 %1063  ;;  %v2710_v29 = vshll.u32 %v4076_v20, 16  ;;  %v2714_v36 = vshrl.u32 %v4076_v20, 16  ;;  %v4078_v40 = vld [vmem:[%s4410_s19 + $0x84] sm:$0xf] }
  0xe6   : > { %1148 = vst.msk [vmem:[#allocation2 + $0x30] sm:$0xf] %vm1135_vm8, %v1064_v57  ;;  %1811 = vrot.lane.b32.xlu1 %v1508_v39, %s4361_s23  ;;  %v2084_v57 = vsel %vm4565_vm6, %v2082_v46, %v2083_v47  ;;  %v2706_v31 = vrot.slane %v2704_v21, 5  ;;  %v2725_v54 = vshrl.u32 %v4078_v40, 16  ;;  %v2728_v55 = vshll.u32 %v4078_v40, 16 }
  0xe7   : > { %1809 = vrot.lane.b32.xlu0 %v1498_v15, %s4361_s23  ;;  %v4004_v15 = vrot.slane %v3958_v37, 9  ;;  %v4038_v9 = vld [vmem:[%s4410_s19 + $0x88] sm:$0xf] }
  0xe8   : > { %v1070_v0 = vpop.permute.xlu1 %1069 }
  0xe9   : > { %1151 = vst.msk [vmem:[#allocation2 + $0x3c] sm:$0xf] %vm1135_vm8, %v1070_v0  ;;  %v1068_v6 = vpop.permute.xlu0 %1067  ;;  %v2032_v53 = vsel %vm4565_vm6, %v4004_v15, %v2031_v43  ;;  %v4051_v0 = vld [vmem:[%s4410_s19 + $0x18] sm:$0xf]  ;;  %v5050_v15 = vrot.slane %v2710_v29, 5 }
  0xea   : > { %1150 = vst.msk [vmem:[#allocation2 + $0x38] sm:$0xf] %vm1135_vm8, %v1068_v6  ;;  %1815 = vrot.lane.b32.xlu1 %v1532_v41, %s4361_s23  ;;  %v2033_v41 = vrot.slane %v2031_v43, 4  ;;  %v2512_v8 = vshll.u32 %v4051_v0, 16  ;;  %v2528_v43 = vshll.u32 %v4053_v32, 16 }
  0xeb   : > { %1813 = vrot.lane.b32.xlu0 %v1522_v58, %s4361_s23  ;;  %v2034_v58 = vrot.slane %v3960_v52, 5  ;;  %v4077_v52 = vld [vmem:[%s4410_s19 + $0x80] sm:$0x1]  ;;  %v4080_v29 = vld [vmem:[%s4410_s19 + $0x8c] sm:$0x1] }
  0xec   : > { %v1074_v10 = vpop.permute.xlu1 %1073  ;;  %v2530_v61 = vrot.slane %v2528_v43, 5  ;;  %v2720_v49 = vshll.u32 %v4077_v52, 16  ;;  %v4313_v43 = vld [vmem:[%s5971_s1 + $0x18] sm:$0xff]  }
  0xed   : > { %1153 = vst.msk [vmem:[#allocation2 + $0x44] sm:$0xf] %vm1135_vm8, %v1074_v10  ;;  %v1072_v18 = vpop.permute.xlu0 %1071  ;;  %v2035_v2 = vsel %vm4565_vm6, %v2033_v41, %v2034_v58  ;;  %v4019_v10 = vld [vmem:[%s4410_s19 + $0x18] sm:$0xf] }
  0xee   : > { %1152 = vst.msk [vmem:[#allocation2 + $0x40] sm:$0xf] %vm1135_vm8, %v1072_v18  ;;  %1829 = vrot.lane.b32.xlu1 %v1618_v3, %s4361_s23  ;;  %v2509_v3 = vshrl.u32 %v4051_v0, 16  ;;  %v2514_v18 = vrot.slane %v2512_v8, 5  ;;  %v2722_v21 = vrot.slane %v2720_v49, 5 }
  0xef   : > { %1817 = vrot.lane.b32.xlu0 %v1546_v11, %s4361_s23 }
  0xf0   : > { %v1078_v22 = vpop.permute.xlu1 %1077  ;;  %v2511_v17 = vrot.slane %v2509_v3, 4  ;;  %v2730_v3 = vrot.slane %v2728_v55, 5 }
  0xf1   : > { %1155 = vst.msk [vmem:[#allocation2 + $0x4c] sm:$0xf] %vm1135_vm8, %v1078_v22  ;;  %v1076_v28 = vpop.permute.xlu0 %1075  ;;  %v4035_v22 = vld [vmem:[%s4410_s19 + $0x78] sm:$0xf] }
  0xf2   : > { %1154 = vst.msk [vmem:[#allocation2 + $0x48] sm:$0xf] %vm1135_vm8, %v1076_v28  ;;  %1833 = vrot.lane.b32.xlu1 %v1642_v19, %s4361_s23  ;;  %v2522_v19 = vshrl.u32 %v4052_v7, 16  ;;  %v2703_v28 = vrot.slane %v2701_v16, 4  ;;  %v2727_v7 = vrot.slane %v2725_v54, 4 }
  0xf3   : > { %1831 = vrot.lane.b32.xlu0 %v1628_v23, %s4361_s23  ;;  %v4054_v23 = vld [vmem:[%s4410_s19 + $0x24] sm:$0xf]  ;;  %v4056_v16 = vld [vmem:[%s4410_s19 + $0x2c] sm:$0x1] }
  0xf4   : > { %v1082_v33 = vpop.permute.xlu1 %1081  ;;  %v2536_v37 = vshll.u32 %v4054_v23, 16  ;;  %v2707_v47 = vor.u32 %v2706_v31, %v2703_v28  ;;  %v3937_v54 = vld [vmem:[%s4410_s19 + $0x84] sm:$0xf] }
  0xf5   : > { %1157 = vst.msk [vmem:[#allocation2 + $0x54] sm:$0xf] %vm1135_vm8, %v1082_v33  ;;  %v1080_v39 = vpop.permute.xlu0 %1079  ;;  %v2524_v33 = vrot.slane %v2522_v19, 4 }
  0xf6   : > { %1156 = vst.msk [vmem:[#allocation2 + $0x50] sm:$0xf] %vm1135_vm8, %v1080_v39  ;;  %2134 = vrot.lane.b32.xlu1 %v2025_v30, %s4362_s24  ;;  %v2515_v30 = vor.u32 %v2514_v18, %v2511_v17  ;;  %v4036_v39 = vld [vmem:[%s4410_s19 + $0x7c] sm:$0xf] }
  0xf7   : > { %1835 = vrot.lane.b32.xlu0 %v1652_v34, %s4361_s23  ;;  %v2533_v34 = vshrl.u32 %v4054_v23, 16  ;;  %v2525_v48 = vor.u32 %v2524_v33, %v5040_v26 }
  0xf8   : > { %v1086_v44 = vpop.permute.xlu1 %1085  ;;  %v2516_v46 = vrot.slane %v2515_v30, 4  ;;  %v4312_v30 = vld [vmem:[%s5971_s1 + $0x20] ss:$0 sps:$4 sm:$0xff]  }
  0xf9   : > { %1159 = vst.msk [vmem:[#allocation2 + $0x5c] sm:$0xf] %vm1135_vm8, %v1086_v44  ;;  %v1084_v51 = vpop.permute.xlu0 %1083  ;;  %v4055_v44 = vld [vmem:[%s4410_s19 + $0x28] sm:$0xf]  ;;  %v2535_v50 = vrot.slane %v2533_v34, 4  ;;  %4277 = vmatprep.subr.msk.bf16.mxu0 %vm3562_vm10, %v4312_v30  ;;  %4278 = vmatprep.subr.msk.bf16.mxu1 %vm3562_vm10, %v4312_v30 }
  0xfa   : > { %1158 = vst.msk [vmem:[#allocation2 + $0x58] sm:$0xf] %vm1135_vm8, %v1084_v51  ;;  %2166 = vrot.lane.b32.xlu1 %v2081_v42, %s4362_s24  ;;  %v2538_v51 = vrot.slane %v2536_v37, 5  ;;  %v2542_v41 = vshll.u32 %v4055_v44, 16  ;;  %v2546_v58 = vshrl.u32 %v4055_v44, 16  ;;  %v2521_v0 = vsel %vm4421_vm2, %v2516_v46, %v5040_v26 }
  0xfb   : > { %2136 = vrot.lane.b32.xlu0 %v2028_v45, %s4362_s24  ;;  %v4037_v45 = vld [vmem:[%s4410_s19 + $0x84] sm:$0xf]  ;;  %v4099_v34 = vld [vmem:[%s4410_s19 + $0x18] sm:$0xe] }
  0xfc   : > { %v1090_v56 = vpop.permute.xlu1 %1089  ;;  %v2539_v4 = vor.u32 %v2538_v51, %v2535_v50 }
  0xfd   : > { %1161 = vst.msk [vmem:[#allocation2 + $0x64] sm:$0xf] %vm1135_vm8, %v1090_v56  ;;  %v1088_v59 = vpop.permute.xlu0 %1087 }
  0xfe   : > { %1160 = vst.msk [vmem:[#allocation2 + $0x60] sm:$0xf] %vm1135_vm8, %v1088_v59  ;;  %2138 = vrot.lane.b32.xlu1 %v2032_v53, %s4362_s24  ;;  %v2716_v53 = vrot.slane %v2714_v36, 4  ;;  %v2540_v19 = vrot.slane %v2539_v4, 4 }
  0xff   : > { %2168 = vrot.lane.b32.xlu0 %v2084_v57, %s4362_s24  ;;  %v4022_v57 = vld [vmem:[%s4410_s19 + $0x28] sm:$0xf] }
 0x100   : > { %v1094_v1 = vpop.permute.xlu1 %1093 }
 0x101   : > { %1163 = vst.msk [vmem:[#allocation2 + $0x6c] sm:$0xf] %vm1135_vm8, %v1094_v1  ;;  %v1092_v6 = vpop.permute.xlu0 %1091  ;;  %v2708_v1 = vrot.slane %v2707_v47, 4  ;;  %v4123_v47 = vld [vmem:[%s4410_s19 + $0x78] sm:$0xe] }
 0x102   : > { %1162 = vst.msk [vmem:[#allocation2 + $0x68] sm:$0xf] %vm1135_vm8, %v1092_v6  ;;  %2170 = vrot.lane.b32.xlu1 %v2088_v63, %s4362_s24  ;;  %v4079_v63 = vld [vmem:[%s4410_s19 + $0x88] sm:$0xf]  ;;  %v2717_v6 = vor.u32 %v2716_v53, %v5050_v15 }
 0x103   : > { %2140 = vrot.lane.b32.xlu0 %v2035_v2, %s4362_s24  ;;  %v2526_v2 = vrot.slane %v2525_v48, 4  ;;  %v2713_v17 = vsel %vm4421_vm2, %v2708_v1, %v5050_v15  ;;  %v4124_v48 = vld [vmem:[%s4410_s19 + $0x7c] sm:$0xf]  ;;  %v1654_v1 = vshrl.u32 %v3937_v54, 16 }
 0x104   : > { %v1098_v11 = vpop.permute.xlu1 %1097  ;;  %v2718_v20 = vrot.slane %v2717_v6, 4 }
 0x105   : > { %1165 = vst.msk [vmem:[#allocation2 + $0x74] sm:$0xf] %vm1135_vm8, %v1098_v11  ;;  %v1096_v13 = vpop.permute.xlu0 %1095  ;;  %v2734_v11 = vshll.u32 %v4079_v63, 16  ;;  %v2531_v18 = vsel %vm4421_vm2, %v2526_v2, %v2530_v61  ;;  %v4103_v61 = vld [vmem:[%s4410_s19 + $0x28] sm:$0xf]  ;;  %v1657_v2 = vshll.u32 %v3937_v54, 16 }
 0x106   : > { %1164 = vst.msk [vmem:[#allocation2 + $0x70] sm:$0xf] %vm1135_vm8, %v1096_v13  ;;  %2331 = vrot.lane.b32.xlu1 %v4019_v10, %s4363_s25  ;;  %v2544_v10 = vrot.slane %v2542_v41, 5  ;;  %v2548_v13 = vrot.slane %v2546_v58, 4  ;;  %v2723_v32 = vsel %vm4421_vm2, %v2718_v20, %v2722_v21  ;;  %v4155_v41 = vrot.slane %v4123_v47, 9 }
 0x107   : > { %2172 = vrot.lane.b32.xlu0 %v2091_v12, %s4362_s24  ;;  %v2738_v12 = vshrl.u32 %v4079_v63, 16  ;;  %v3175_v58 = vrot.slane %v4124_v48, 5  ;;  %v1656_v20 = vrot.slane %v1654_v1, 4  ;;  %v1659_v21 = vrot.slane %v1657_v2, 5  ;;  %v4128_v47 = vld [vmem:[%s4410_s19 + $0x8c] sm:$0x1] }
 0x108   : > { %v1102_v24 = vpop.permute.xlu1 %1101  ;;  %v2545_v31 = vsel %vm4421_vm2, %v2540_v19, %v2544_v10  ;;  %v4104_v19 = vld [vmem:[%s4410_s19 + $0x2c] sm:$0x1] }
 0x109   : > { %1167 = vst.msk [vmem:[#allocation2 + $0x7c] sm:$0xf] %vm1135_vm8, %v1102_v24  ;;  %v1100_v25 = vpop.permute.xlu0 %1099  ;;  %v2736_v24 = vrot.slane %v2734_v11, 5  ;;  %v2740_v26 = vrot.slane %v2738_v12, 4  ;;  %v3938_v11 = vld [vmem:[%s4410_s19 + $0x88] sm:$0xf] }
 0x10a   : > { %1166 = vst.msk [vmem:[#allocation2 + $0x78] sm:$0xf] %vm1135_vm8, %v1100_v25  ;;  %2363 = vrot.lane.b32.xlu1 %v4035_v22, %s4363_s25  ;;  %v2731_v22 = vor.u32 %v2730_v3, %v2727_v7  ;;  %v2552_v25 = vshll.u32 %v4056_v16, 16  ;;  %v3940_v3 = vld [vmem:[%s4410_s19 + $0x90] sm:$0xf]  ;;  %v4315_v12 = vld [vmem:[%s5971_s1 + $0x8] sm:$0xff]  }
 0x10b   : > { %2333 = vrot.lane.b32.xlu0 %v4020_v5, %s4363_s25  ;;  %v2549_v5 = vor.u32 %v2548_v13, %v2544_v10  ;;  %v2741_v40 = vor.u32 %v2740_v26, %v2736_v24  ;;  %v3126_v10 = vrot.slane %v4103_v61, 5  ;;  %v3176_v13 = vsel %vm4565_vm6, %v4155_v41, %v3175_v58  ;;  %v3942_v61 = vld [vmem:[%s4410_s19 + $0x98] sm:$0x1] }
 0x10c   : > { %v1239_v38 = vpop.permute.xlu1 %1238  ;;  %v2732_v33 = vrot.slane %v2731_v22, 4  ;;  %v1678_v22 = vshrl.u32 %v3940_v3, 16  ;;  %v1667_v26 = vshrl.u32 %v3938_v11, 16 }
 0x10d   : > { %1334 = vst.msk [vmem:[#allocation2 + $0x4] sm:$0xf] %vm1332_vm9, %v1239_v38  ;;  %v1237_v42 = vpop.permute.xlu0 %1236  ;;  %v2550_v37 = vrot.slane %v2549_v5, 4  ;;  %v2554_v38 = vrot.slane %v2552_v25, 5  ;;  %v2742_v52 = vrot.slane %v2741_v40, 4  ;;  %v1663_v25 = vshll.u32 %v3938_v11, 16 }
 0x10e   : > { %1333 = vst.msk [vmem:[#allocation2] sm:$0xf] %vm1332_vm9, %v1237_v42  ;;  %2335 = vrot.lane.b32.xlu1 %v4021_v35, %s4363_s25  ;;  %v3564_v35 = vsel %vm3562_vm10, %v4312_v30, 0  ;;  %v2744_v42 = vshll.u32 %v4080_v29, 16  ;;  %v2737_v44 = vsel %vm4421_vm2, %v2732_v33, %v2736_v24  ;;  %v3941_v30 = vld [vmem:[%s4410_s19 + $0x94] sm:$0xf] }
 0x10f   : > { %2365 = vrot.lane.b32.xlu0 %v4036_v39, %s4363_s25  ;;  %v4100_v39 = vld [vmem:[%s4410_s19 + $0x1c] sm:$0xf]  ;;  %4226 = vmatpush3.bf16.msra.mxu0 %v3564_v35  ;;  %v2555_v51 = vsel %vm4421_vm2, %v2550_v37, %v2554_v38  ;;  %v1660_v37 = vor.u32 %v1659_v21, %v1656_v20  ;;  %v1680_v38 = vrot.slane %v1678_v22, 4  ;;  %v3963_v21 = vld [vmem:[%s4410_s19 + $0x2c] sm:$0x1] }
 0x110   : > { %v1243_v56 = vpop.permute.xlu1 %1242  ;;  %4272 = vmatpush3.bf16.msra.mxu1 %v3564_v35  ;;  %v3119_v46 = vrot.slane %v4100_v39, 5  ;;  %4227 = vmatprep.subr.bf16.mxu0 %v4313_v43  ;;  %v2746_v53 = vrot.slane %v2744_v42, 5  ;;  %v3129_v35 = vrot.slane %v4104_v19, 5  ;;  %v1665_v42 = vrot.slane %v1663_v25, 5  ;;  %v3986_v19 = vld [vmem:[%s4410_s19 + $0x88] sm:$0xf] }
 0x111   : > { %1336 = vst.msk [vmem:[#allocation2 + $0xc] sm:$0xf] %vm1332_vm9, %v1243_v56  ;;  %v1241_v59 = vpop.permute.xlu0 %1240  ;;  %4268 = vmatprep.subr.bf16.mxu1 %v4313_v43  ;;  %v4101_v56 = vld [vmem:[%s4410_s19 + $0x20] sm:$0x1] }
 0x112   : > { %1335 = vst.msk [vmem:[#allocation2 + $0x8] sm:$0xf] %vm1332_vm9, %v1241_v59  ;;  %2367 = vrot.lane.b32.xlu1 %v4037_v45, %s4363_s25  ;;  %v4147_v45 = vrot.slane %v4099_v34, 9  ;;  %v4102_v59 = vld [vmem:[%s4410_s19 + $0x24] sm:$0xe]  ;;  %v2747_v4 = vsel %vm4421_vm2, %v2742_v52, %v2746_v53  ;;  %v3121_v6 = vrot.slane %v3119_v46, 4 }
 0x113   : > { %2337 = vrot.lane.b32.xlu0 %v4022_v57, %s4363_s25  ;;  %4228 = vmatpush3.bf16.msra.mxu0 %v4313_v43  ;;  %v4314_v57 = vld [vmem:[%s5971_s1 + $0x10] sm:$0xff]   ;;  %v3122_v7 = vrot.slane %v4101_v56, 5  ;;  %v3128_v34 = vrot.slane %v3126_v10, 4  ;;  %v3185_v56 = vrot.slane %v4128_v47, 5 }
 0x114   : > { %v1247_v8 = vpop.permute.xlu1 %1246  ;;  %4273 = vmatpush3.bf16.msra.mxu1 %v4313_v43  ;;  %v3120_v63 = vsel %vm4565_vm6, %v4147_v45, %v3119_v46  ;;  %4229 = vmatprep.subr.bf16.mxu0 %v4314_v57  ;;  %v1691_v43 = vshrl.u32 %v3941_v30, 16  ;;  %v1669_v45 = vrot.slane %v1667_v26, 4 }
 0x115   : > { %1338 = vst.msk [vmem:[#allocation2 + $0x14] sm:$0xf] %vm1332_vm9, %v1247_v8  ;;  %v1245_v14 = vpop.permute.xlu0 %1244  ;;  %4269 = vmatprep.subr.bf16.mxu1 %v4314_v57  ;;  %v3123_v5 = vsel %vm4565_vm6, %v3121_v6, %v3122_v7  ;;  %v3961_v6 = vld [vmem:[%s4410_s19 + $0x24] sm:$0xe]  ;;  %v3962_v7 = vld [vmem:[%s4410_s19 + $0x28] sm:$0xf] }
 0x116   : > { %1337 = vst.msk [vmem:[#allocation2 + $0x10] sm:$0xf] %vm1332_vm9, %v1245_v14  ;;  %2892 = vrot.lane.b32.xlu1 %v2521_v0, %s4364_s26  ;;  %v4125_v0 = vld [vmem:[%s4410_s19 + $0x80] sm:$0x1]  ;;  %v3177_v14 = vrot.slane %v3175_v58, 4  ;;  %v1670_v41 = vor.u32 %v1669_v45, %v1665_v42  ;;  %v1693_v58 = vrot.slane %v1691_v43, 4 }
 0x117   : > { %2369 = vrot.lane.b32.xlu0 %v4038_v9, %s4363_s25  ;;  %4230 = vmatpush3.bf16.msra.mxu0 %v4314_v57  ;;  %v4148_v9 = vrot.slane %v4102_v59, 9  ;;  %v3178_v16 = vrot.slane %v4125_v0, 5  ;;  %v4005_v11 = vrot.slane %v3961_v6, 9  ;;  %v3966_v43 = vld [vmem:[%s4410_s19 + $0x38] sm:$0x1] }
 0x118   : > { %v1251_v23 = vpop.permute.xlu1 %1250  ;;  %4274 = vmatpush3.bf16.msra.mxu1 %v4314_v57  ;;  %4231 = vmatprep.subr.bf16.mxu0 %v4315_v12 }
 0x119   : > { %1340 = vst.msk [vmem:[#allocation2 + $0x1c] sm:$0xf] %vm1332_vm9, %v1251_v23  ;;  %v1249_v28 = vpop.permute.xlu0 %1248  ;;  %v1681_v23 = vshll.u32 %v3940_v3, 16  ;;  %4270 = vmatprep.subr.bf16.mxu1 %v4315_v12  ;;  %v3127_v29 = vsel %vm4565_vm6, %v4148_v9, %v3126_v10 }
 0x11a   : > { %1339 = vst.msk [vmem:[#allocation2 + $0x18] sm:$0xf] %vm1332_vm9, %v1249_v28  ;;  %2924 = vrot.lane.b32.xlu1 %v2713_v17, %s4364_s26  ;;  %v4126_v17 = vld [vmem:[%s4410_s19 + $0x84] sm:$0xe] }
 0x11b   : > { %2894 = vrot.lane.b32.xlu0 %v2531_v18, %s4364_s26  ;;  %v4127_v18 = vld [vmem:[%s4410_s19 + $0x88] sm:$0xf]  ;;  %4232 = vmatpush3.bf16.msra.mxu0 %v4315_v12  ;;  %v1683_v39 = vrot.slane %v1681_v23, 5 }
 0x11c   : > { %v1255_v36 = vpop.permute.xlu1 %1254  ;;  %4275 = vmatpush3.bf16.msra.mxu1 %v4315_v12  ;;  %v3182_v33 = vrot.slane %v4127_v18, 5  ;;  %v2038_v12 = vrot.slane %v3962_v7, 5  ;;  %v3985_v18 = vld [vmem:[%s4410_s19 + $0x84] sm:$0xe] }
 0x11d   : > { %1342 = vst.msk [vmem:[#allocation2 + $0x24] sm:$0xf] %vm1332_vm9, %v1255_v36  ;;  %v1253_v15 = vpop.permute.xlu0 %1252  ;;  %v3179_v36 = vsel %vm4565_vm6, %v3177_v14, %v3178_v16  ;;  %v1684_v53 = vor.u32 %v1683_v39, %v1680_v38  ;;  %v4013_v23 = vrot.slane %v3985_v18, 9 }
 0x11e   : > { %1341 = vst.msk [vmem:[#allocation2 + $0x20] sm:$0xf] %vm1332_vm9, %v1253_v15  ;;  %2896 = vrot.lane.b32.xlu1 %v2545_v31, %s4364_s26  ;;  %v4317_v31 = vld [vmem:[%s5971_s1] sm:$0xff]   ;;  %v1687_v15 = vshll.u32 %v3941_v30, 16  ;;  %v3184_v52 = vrot.slane %v3182_v33, 4  ;;  %v2039_v22 = vsel %vm4565_vm6, %v4005_v11, %v2038_v12  ;;  %v2040_v26 = vrot.slane %v2038_v12, 4 }
 0x11f   : > { %2926 = vrot.lane.b32.xlu0 %v2723_v32, %s4364_s26  ;;  %v4156_v32 = vrot.slane %v4126_v17, 9  ;;  %4233 = vmatprep.subr.bf16.mxu0 %v4317_v31  ;;  %v1685_v0 = vrot.slane %v1684_v53, 4  ;;  %v3965_v30 = vld [vmem:[%s4410_s19 + $0x34] sm:$0xf]  ;;  %v3990_v53 = vld [vmem:[%s4410_s19 + $0x98] sm:$0x1] }
 0x120   : > { %v1259_v50 = vpop.permute.xlu1 %1258  ;;  %4234 = vmatpush3.bf16.msra.mxu0 %v4317_v31  ;;  %4271 = vmatprep.subr.bf16.mxu1 %v4317_v31  ;;  %v1689_v57 = vrot.slane %v1687_v15, 5  ;;  %v4039_v12 = vld [vmem:[%s4410_s19 + $0x90] sm:$0xf] }
 0x121   : > { %1344 = vst.msk [vmem:[#allocation2 + $0x2c] sm:$0xf] %vm1332_vm9, %v1259_v50  ;;  %v1257_v55 = vpop.permute.xlu0 %1256  ;;  %4276 = vmatpush3.bf16.msra.mxu1 %v4317_v31  ;;  %v3183_v48 = vsel %vm4565_vm6, %v4156_v32, %v3182_v33  ;;  %v3130_v50 = vsel %vm4565_vm6, %v3128_v34, %v3129_v35  ;;  %v3987_v32 = vld [vmem:[%s4410_s19 + $0x8c] sm:$0x1]  ;;  %v2045_v35 = vrot.slane %v3965_v30, 5 }
 0x122   : > { %1343 = vst.msk [vmem:[#allocation2 + $0x28] sm:$0xf] %vm1332_vm9, %v1257_v55  ;;  %2928 = vrot.lane.b32.xlu1 %v2737_v44, %s4364_s26  ;;  %v3939_v44 = vld [vmem:[%s4410_s19 + $0x8c] sm:$0x1]  ;;  %v1694_v3 = vor.u32 %v1693_v58, %v1689_v57  ;;  %v1690_v10 = vsel %vm4421_vm2, %v1685_v0, %v1689_v57  ;;  %v2097_v39 = vrot.slane %v3987_v32, 5  ;;  %v2104_v58 = vrot.slane %v3990_v53, 5 }
 0x123   : > { %2898 = vrot.lane.b32.xlu0 %v2555_v51, %s4364_s26  ;;  %v1661_v51 = vrot.slane %v1660_v37, 4  ;;  %v1673_v54 = vshll.u32 %v3939_v44, 16  ;;  %v4058_v0 = vld [vmem:[%s4410_s19 + $0x34] sm:$0xf]  ;;  %v4084_v32 = vld [vmem:[%s4410_s19 + $0x9c] sm:$0xf] }
 0x124   : > { %v1263_v49 = vpop.permute.xlu1 %1262  ;;  %v1695_v16 = vrot.slane %v1694_v3, 4 }
 0x125   : > { %1346 = vst.msk [vmem:[#allocation2 + $0x34] sm:$0xf] %vm1332_vm9, %v1263_v49  ;;  %v1261_v8 = vpop.permute.xlu0 %1260  ;;  %v1675_v1 = vrot.slane %v1673_v54, 5  ;;  %v3186_v49 = vsel %vm4565_vm6, %v3184_v52, %v3185_v56  ;;  %v4057_v54 = vld [vmem:[%s4410_s19 + $0x30] sm:$0xf] }
 0x126   : > { %1345 = vst.msk [vmem:[#allocation2 + $0x30] sm:$0xf] %vm1332_vm9, %v1261_v8  ;;  %3229 = vrot.lane.b32.xlu1 %v3120_v63, %s4365_s8  ;;  %v1666_v63 = vsel %vm4421_vm2, %v1661_v51, %v1665_v42  ;;  %v1697_v8 = vshll.u32 %v3942_v61, 16  ;;  %v3989_v42 = vld [vmem:[%s4410_s19 + $0x94] sm:$0xf]  ;;  %v2048_v51 = vrot.slane %v3966_v43, 5 }
 0x127   : > { %2930 = vrot.lane.b32.xlu0 %v2747_v4, %s4364_s26  ;;  %v1671_v4 = vrot.slane %v1670_v41, 4  ;;  %v2557_v61 = vshrl.u32 %v4057_v54, 16 }
 0x128   : > { %v1267_v24 = vpop.permute.xlu1 %1266  ;;  %v1699_v17 = vrot.slane %v1697_v8, 5  ;;  %v2566_v8 = vshll.u32 %v4058_v0, 16 }
 0x129   : > { %1348 = vst.msk [vmem:[#allocation2 + $0x3c] sm:$0xf] %vm1332_vm9, %v1267_v24  ;;  %v1265_v28 = vpop.permute.xlu0 %1264  ;;  %v1676_v14 = vsel %vm4421_vm2, %v1671_v4, %v1675_v1  ;;  %v2094_v24 = vrot.slane %v3986_v19, 5  ;;  %v4023_v1 = vld [vmem:[%s4410_s19 + $0x30] sm:$0xf]  ;;  %v2559_v7 = vrot.slane %v2557_v61, 4 }
 0x12a   : > { %1347 = vst.msk [vmem:[#allocation2 + $0x38] sm:$0xf] %vm1332_vm9, %v1265_v28  ;;  %3261 = vrot.lane.b32.xlu1 %v3176_v13, %s4365_s8  ;;  %v1700_v25 = vsel %vm4421_vm2, %v1695_v16, %v1699_v17  ;;  %v2041_v28 = vrot.slane %v3963_v21, 5  ;;  %v4024_v16 = vld [vmem:[%s4410_s19 + $0x34] sm:$0xf] }
 0x12b   : > { %3231 = vrot.lane.b32.xlu0 %v3123_v5, %s4365_s8  ;;  %v2095_v33 = vsel %vm4565_vm6, %v4013_v23, %v2094_v24  ;;  %v2096_v38 = vrot.slane %v2094_v24, 4  ;;  %v4060_v17 = vld [vmem:[%s4410_s19 + $0x3c] sm:$0xf] }
 0x12c   : > { %v1271_v40 = vpop.permute.xlu1 %1270  ;;  %v2042_v37 = vsel %vm4565_vm6, %v2040_v26, %v2041_v28  ;;  %v4059_v26 = vld [vmem:[%s4410_s19 + $0x38] sm:$0x1]  ;;  %v2581_v28 = vshrl.u32 %v4060_v17, 16 }
 0x12d   : > { %1350 = vst.msk [vmem:[#allocation2 + $0x44] sm:$0xf] %vm1332_vm9, %v1271_v40  ;;  %v1269_v46 = vpop.permute.xlu0 %1268  ;;  %v3988_v40 = vld [vmem:[%s4410_s19 + $0x90] sm:$0xe] }
 0x12e   : > { %1349 = vst.msk [vmem:[#allocation2 + $0x40] sm:$0xf] %vm1332_vm9, %v1269_v46  ;;  %3233 = vrot.lane.b32.xlu1 %v3127_v29, %s4365_s8  ;;  %v3964_v29 = vld [vmem:[%s4410_s19 + $0x30] sm:$0xe]  ;;  %v4014_v45 = vrot.slane %v3988_v40, 9  ;;  %v2101_v46 = vrot.slane %v3989_v42, 5 }
 0x12f   : > { %3263 = vrot.lane.b32.xlu0 %v3179_v36, %s4365_s8  ;;  %v4006_v34 = vrot.slane %v3964_v29, 9  ;;  %v2584_v29 = vshll.u32 %v4060_v17, 16  ;;  %v4041_v42 = vld [vmem:[%s4410_s19 + $0x9c] sm:$0xf] }
 0x130   : > { %v1275_v55 = vpop.permute.xlu1 %1274  ;;  %v2103_v41 = vrot.slane %v2101_v46, 4 }
 0x131   : > { %1352 = vst.msk [vmem:[#allocation2 + $0x4c] sm:$0xf] %vm1332_vm9, %v1275_v55  ;;  %v1273_v59 = vpop.permute.xlu0 %1272  ;;  %v2046_v44 = vsel %vm4565_vm6, %v4006_v34, %v2045_v35  ;;  %v2102_v55 = vsel %vm4565_vm6, %v4014_v45, %v2101_v46  ;;  %v2586_v43 = vrot.slane %v2584_v29, 5  ;;  %v2776_v45 = vshll.u32 %v4084_v32, 16  ;;  %v4106_v29 = vld [vmem:[%s4410_s19 + $0x34] sm:$0xf] }
 0x132   : > { %1351 = vst.msk [vmem:[#allocation2 + $0x48] sm:$0xf] %vm1332_vm9, %v1273_v59  ;;  %3265 = vrot.lane.b32.xlu1 %v3183_v48, %s4365_s8  ;;  %v2098_v48 = vsel %vm4565_vm6, %v2096_v38, %v2097_v39  ;;  %v2105_v4 = vsel %vm4565_vm6, %v2103_v41, %v2104_v58  ;;  %v2576_v39 = vshll.u32 %v4059_v26, 16  ;;  %v4042_v58 = vld [vmem:[%s4410_s19 + $0xa0] sm:$0xf] }
 0x133   : > { %3235 = vrot.lane.b32.xlu0 %v3130_v50, %s4365_s8  ;;  %v2047_v50 = vrot.slane %v2045_v35, 4 }
 0x134   : > { %v1279_v2 = vpop.permute.xlu1 %1278 }
 0x135   : > { %1354 = vst.msk [vmem:[#allocation2 + $0x54] sm:$0xf] %vm1332_vm9, %v1279_v2  ;;  %v1277_v9 = vpop.permute.xlu0 %1276  ;;  %v2049_v57 = vsel %vm4565_vm6, %v2047_v50, %v2048_v51  ;;  %v4081_v2 = vld [vmem:[%s4410_s19 + $0x90] sm:$0xf]  ;;  %v4083_v51 = vld [vmem:[%s4410_s19 + $0x98] sm:$0x1] }
 0x136   : > { %1353 = vst.msk [vmem:[#allocation2 + $0x50] sm:$0xf] %vm1332_vm9, %v1277_v9  ;;  %1837 = vrot.lane.b32.xlu1 %v1666_v63, %s4361_s23  ;;  %v2560_v63 = vshll.u32 %v4057_v54, 16  ;;  %v2570_v9 = vshrl.u32 %v4058_v0, 16  ;;  %v2752_v11 = vshll.u32 %v4081_v2, 16  ;;  %v2768_v61 = vshll.u32 %v4083_v51, 16 }
 0x137   : > { %3267 = vrot.lane.b32.xlu0 %v3186_v49, %s4365_s8  ;;  %v4085_v54 = vld [vmem:[%s4410_s19 + $0xa0] sm:$0xf]  ;;  %v2778_v0 = vrot.slane %v2776_v45, 5  ;;  %v4108_v45 = vld [vmem:[%s4410_s19 + $0x3c] sm:$0xe] }
 0x138   : > { %v1283_v13 = vpop.permute.xlu1 %1282  ;;  %v2562_v3 = vrot.slane %v2560_v63, 5  ;;  %v2572_v21 = vrot.slane %v2570_v9, 4  ;;  %v2754_v23 = vrot.slane %v2752_v11, 5 }
 0x139   : > { %1356 = vst.msk [vmem:[#allocation2 + $0x5c] sm:$0xf] %vm1332_vm9, %v1283_v13  ;;  %v1281_v20 = vpop.permute.xlu0 %1280  ;;  %v4082_v13 = vld [vmem:[%s4410_s19 + $0x94] sm:$0xf] }
 0x13a   : > { %1355 = vst.msk [vmem:[#allocation2 + $0x58] sm:$0xf] %vm1332_vm9, %v1281_v20  ;;  %1841 = vrot.lane.b32.xlu1 %v1690_v10, %s4361_s23  ;;  %v2749_v10 = vshrl.u32 %v4081_v2, 16  ;;  %v2563_v19 = vor.u32 %v2562_v3, %v2559_v7  ;;  %v5241_v20 = vrot.slane %v2566_v8, 5  ;;  %v2758_v24 = vshll.u32 %v4082_v13, 16 }
 0x13b   : > { %1839 = vrot.lane.b32.xlu0 %v1676_v14, %s4361_s23 }
 0x13c   : > { %v1287_v5 = vpop.permute.xlu1 %1286  ;;  %v2564_v34 = vrot.slane %v2563_v19, 4  ;;  %v2573_v35 = vor.u32 %v2572_v21, %v5241_v20  ;;  %v2760_v38 = vrot.slane %v2758_v24, 5  ;;  %v4086_v21 = vld [vmem:[%s4410_s19 + $0xa4] sm:$0x1] }
 0x13d   : > { %1358 = vst.msk [vmem:[#allocation2 + $0x64] sm:$0xf] %vm1332_vm9, %v1287_v5  ;;  %v1285_v31 = vpop.permute.xlu0 %1284  ;;  %v2762_v5 = vshrl.u32 %v4082_v13, 16 }
 0x13e   : > { %1357 = vst.msk [vmem:[#allocation2 + $0x60] sm:$0xf] %vm1332_vm9, %v1285_v31  ;;  %2142 = vrot.lane.b32.xlu1 %v2039_v22, %s4362_s24  ;;  %v2751_v22 = vrot.slane %v2749_v10, 4  ;;  %v4040_v31 = vld [vmem:[%s4410_s19 + $0x94] sm:$0xf]  ;;  %v2569_v53 = vsel %vm4421_vm2, %v2564_v34, %v5241_v20 }
 0x13f   : > { %1843 = vrot.lane.b32.xlu0 %v1700_v25, %s4361_s23  ;;  %v4025_v25 = vld [vmem:[%s4410_s19 + $0x3c] sm:$0xf]  ;;  %v2764_v40 = vrot.slane %v2762_v5, 4 }
 0x140   : > { %v1291_v36 = vpop.permute.xlu1 %1290 }
 0x141   : > { %1360 = vst.msk [vmem:[#allocation2 + $0x6c] sm:$0xf] %vm1332_vm9, %v1291_v36  ;;  %v1289_v15 = vpop.permute.xlu0 %1288  ;;  %v4061_v36 = vld [vmem:[%s4410_s19 + $0x40] sm:$0xf]  ;;  %v2765_v41 = vor.u32 %v2764_v40, %v2760_v38 }
 0x142   : > { %1359 = vst.msk [vmem:[#allocation2 + $0x68] sm:$0xf] %vm1332_vm9, %v1289_v15  ;;  %2174 = vrot.lane.b32.xlu1 %v2095_v33, %s4362_s24  ;;  %v2583_v15 = vrot.slane %v2581_v28, 4  ;;  %v2594_v50 = vshrl.u32 %v4061_v36, 16  ;;  %v4105_v28 = vld [vmem:[%s4410_s19 + $0x30] sm:$0xe] }
 0x143   : > { %2144 = vrot.lane.b32.xlu0 %v2042_v37, %s4362_s24  ;;  %v2755_v37 = vor.u32 %v2754_v23, %v2751_v22  ;;  %v2766_v11 = vrot.slane %v2765_v41, 4  ;;  %v4149_v34 = vrot.slane %v4105_v28, 9 }
 0x144   : > { %v1295_v47 = vpop.permute.xlu1 %1294  ;;  %v2596_v7 = vrot.slane %v2594_v50, 4 }
 0x145   : > { %1362 = vst.msk [vmem:[#allocation2 + $0x74] sm:$0xf] %vm1332_vm9, %v1295_v47  ;;  %v1293_v52 = vpop.permute.xlu0 %1292  ;;  %v4026_v47 = vld [vmem:[%s4410_s19 + $0x40] sm:$0xf] }
 0x146   : > { %1361 = vst.msk [vmem:[#allocation2 + $0x70] sm:$0xf] %vm1332_vm9, %v1293_v52  ;;  %2146 = vrot.lane.b32.xlu1 %v2046_v44, %s4362_s24  ;;  %v2773_v44 = vshrl.u32 %v4084_v32, 16 }
 0x147   : > { %2176 = vrot.lane.b32.xlu0 %v2098_v48, %s4362_s24  ;;  %v2590_v48 = vshll.u32 %v4061_v36, 16  ;;  %v3943_v36 = vld [vmem:[%s4410_s19 + $0x9c] sm:$0xf] }
 0x148   : > { %v1299_v56 = vpop.permute.xlu1 %1298  ;;  %v2775_v63 = vrot.slane %v2773_v44, 4  ;;  %v4107_v44 = vld [vmem:[%s4410_s19 + $0x38] sm:$0x1] }
 0x149   : > { %1364 = vst.msk [vmem:[#allocation2 + $0x7c] sm:$0xf] %vm1332_vm9, %v1299_v56  ;;  %v1297_v59 = vpop.permute.xlu0 %1296  ;;  %v2574_v56 = vrot.slane %v2573_v35, 4  ;;  %v2592_v2 = vrot.slane %v2590_v48, 5  ;;  %v3133_v35 = vrot.slane %v4106_v29, 5  ;;  %v1705_v48 = vshll.u32 %v3943_v36, 16 }
 0x14a   : > { %1363 = vst.msk [vmem:[#allocation2 + $0x78] sm:$0xf] %vm1332_vm9, %v1297_v59  ;;  %2178 = vrot.lane.b32.xlu1 %v2102_v55, %s4362_s24  ;;  %v2756_v55 = vrot.slane %v2755_v37, 4  ;;  %v2587_v59 = vor.u32 %v2586_v43, %v2583_v15  ;;  %v4130_v15 = vld [vmem:[%s4410_s19 + $0x94] sm:$0xf] }
 0x14b   : > { %2148 = vrot.lane.b32.xlu0 %v2049_v57, %s4362_s24  ;;  %v2578_v57 = vrot.slane %v2576_v39, 5  ;;  %v3134_v50 = vsel %vm4565_vm6, %v4149_v34, %v3133_v35 }
 0x14c   : > { %v1800_v49 = vpop.permute.xlu1 %1799  ;;  %v2761_v8 = vsel %vm4421_vm2, %v2756_v55, %v2760_v38  ;;  %v2588_v10 = vrot.slane %v2587_v59, 4  ;;  %v3135_v55 = vrot.slane %v3133_v35, 4 }
 0x14d   : > { %1895 = vst.msk [vmem:[#allocation2 + $0x4] sm:$0xf] %vm1893_vm11, %v1800_v49  ;;  %v1798_v6 = vpop.permute.xlu0 %1797  ;;  %v2782_v49 = vshll.u32 %v4085_v54, 16  ;;  %v2579_v9 = vsel %vm4421_vm2, %v2574_v56, %v2578_v57  ;;  %v3136_v56 = vrot.slane %v4107_v44, 5  ;;  %v4131_v57 = vld [vmem:[%s4410_s19 + $0x98] sm:$0x1] }
 0x14e   : > { %1894 = vst.msk [vmem:[#allocation2] sm:$0xf] %vm1893_vm11, %v1798_v6  ;;  %2339 = vrot.lane.b32.xlu1 %v4023_v1, %s4363_s25  ;;  %v4062_v6 = vld [vmem:[%s4410_s19 + $0x44] sm:$0x1]  ;;  %v2593_v22 = vsel %vm4421_vm2, %v2588_v10, %v2592_v2 }
 0x14f   : > { %2180 = vrot.lane.b32.xlu0 %v2105_v4, %s4362_s24  ;;  %v2786_v4 = vshrl.u32 %v4085_v54, 16  ;;  %v2600_v13 = vshll.u32 %v4062_v6, 16  ;;  %v2784_v17 = vrot.slane %v2782_v49, 5  ;;  %v4333_v49 = vld [vmem:[%s4410_s19 + $0x4c] sm:$0xf]  ;;  %v3137_v10 = vsel %vm4565_vm6, %v3135_v55, %v3136_v56 }
 0x150   : > { %v1804_v14 = vpop.permute.xlu1 %1803 }
 0x151   : > { %1897 = vst.msk [vmem:[#allocation2 + $0xc] sm:$0xf] %vm1893_vm11, %v1804_v14  ;;  %v1802_v18 = vpop.permute.xlu0 %1801  ;;  %v2788_v19 = vrot.slane %v2786_v4, 4  ;;  %v2602_v24 = vrot.slane %v2600_v13, 5  ;;  %v1547_v4 = vshrl.u32 %v4333_v49, 16 }
 0x152   : > { %1896 = vst.msk [vmem:[#allocation2 + $0x8] sm:$0xf] %vm1893_vm11, %v1802_v18  ;;  %2371 = vrot.lane.b32.xlu1 %v4039_v12, %s4363_s25  ;;  %v2779_v12 = vor.u32 %v2778_v0, %v2775_v63  ;;  %v2597_v18 = vor.u32 %v2596_v7, %v2592_v2  ;;  %v4132_v63 = vld [vmem:[%s4410_s19 + $0x9c] sm:$0xe]  ;;  %v4133_v0 = vld [vmem:[%s4410_s19 + $0xa0] sm:$0xf] }
 0x153   : > { %2341 = vrot.lane.b32.xlu0 %v4024_v16, %s4363_s25  ;;  %v2770_v16 = vrot.slane %v2768_v61, 5  ;;  %v3944_v61 = vld [vmem:[%s4410_s19 + $0xa0] sm:$0xf]  ;;  %v1707_v2 = vrot.slane %v1705_v48, 5  ;;  %v3947_v13 = vld [vmem:[%s4410_s19 + $0xac] sm:$0xf] }
 0x154   : > { %v1808_v30 = vpop.permute.xlu1 %1807  ;;  %v2780_v23 = vrot.slane %v2779_v12, 4  ;;  %v2598_v26 = vrot.slane %v2597_v18, 4  ;;  %v1715_v12 = vshrl.u32 %v3944_v61, 16  ;;  %v3946_v18 = vld [vmem:[%s4410_s19 + $0xa8] sm:$0xf] }
 0x155   : > { %1899 = vst.msk [vmem:[#allocation2 + $0x14] sm:$0xf] %vm1893_vm11, %v1808_v30  ;;  %v1806_v33 = vpop.permute.xlu0 %1805  ;;  %v2789_v30 = vor.u32 %v2788_v19, %v2784_v17  ;;  %v3948_v48 = vld [vmem:[%s4410_s19 + $0xb0] sm:$0x1] }
 0x156   : > { %1898 = vst.msk [vmem:[#allocation2 + $0x10] sm:$0xf] %vm1893_vm11, %v1806_v33  ;;  %2343 = vrot.lane.b32.xlu1 %v4025_v25, %s4363_s25  ;;  %v2771_v25 = vsel %vm4421_vm2, %v2766_v11, %v2770_v16  ;;  %v2785_v33 = vsel %vm4421_vm2, %v2780_v23, %v2784_v17  ;;  %v2603_v38 = vsel %vm4421_vm2, %v2598_v26, %v2602_v24  ;;  %v1711_v11 = vshll.u32 %v3944_v61, 16  ;;  %v4134_v24 = vld [vmem:[%s4410_s19 + $0xa4] sm:$0x1] }
 0x157   : > { %2373 = vrot.lane.b32.xlu0 %v4040_v31, %s4363_s25  ;;  %v2792_v31 = vshll.u32 %v4086_v21, 16  ;;  %v2790_v39 = vrot.slane %v2789_v30, 4  ;;  %v4158_v16 = vrot.slane %v4132_v63, 9  ;;  %v3196_v17 = vrot.slane %v4133_v0, 5  ;;  %v3924_v30 = vld [vmem:[%s4410_s19 + $0x50] sm:$0x1] }
 0x158   : > { %v1812_v46 = vpop.permute.xlu1 %1811  ;;  %v1739_v26 = vshrl.u32 %v3947_v13, 16  ;;  %v1713_v29 = vrot.slane %v1711_v11, 5  ;;  %v1745_v56 = vshll.u32 %v3948_v48, 16  ;;  %v3968_v63 = vld [vmem:[%s4410_s19 + $0x40] sm:$0xf] }
 0x159   : > { %1901 = vst.msk [vmem:[#allocation2 + $0x1c] sm:$0xf] %vm1893_vm11, %v1812_v46  ;;  %v1810_v52 = vpop.permute.xlu0 %1809  ;;  %v2794_v40 = vrot.slane %v2792_v31, 5  ;;  %v4109_v46 = vld [vmem:[%s4410_s19 + $0x40] sm:$0xf]  ;;  %v1717_v31 = vrot.slane %v1715_v12, 4  ;;  %v3197_v35 = vsel %vm4565_vm6, %v4158_v16, %v3196_v17 }
 0x15a   : > { %1900 = vst.msk [vmem:[#allocation2 + $0x18] sm:$0xf] %vm1893_vm11, %v1810_v52  ;;  %2375 = vrot.lane.b32.xlu1 %v4041_v42, %s4363_s25  ;;  %v4129_v42 = vld [vmem:[%s4410_s19 + $0x90] sm:$0xe]  ;;  %v3189_v52 = vrot.slane %v4130_v15, 5  ;;  %v3140_v59 = vrot.slane %v4109_v46, 5 }
 0x15b   : > { %2345 = vrot.lane.b32.xlu0 %v4026_v47, %s4363_s25  ;;  %v1702_v47 = vshrl.u32 %v3943_v36, 16  ;;  %v4157_v51 = vrot.slane %v4129_v42, 9  ;;  %v2795_v54 = vsel %vm4421_vm2, %v2790_v39, %v2794_v40  ;;  %v3945_v36 = vld [vmem:[%s4410_s19 + $0xa4] sm:$0x1]  ;;  %v3198_v39 = vrot.slane %v3196_v17, 4 }
 0x15c   : > { %v1816_v1 = vpop.permute.xlu1 %1815  ;;  %v3191_v7 = vrot.slane %v3189_v52, 4  ;;  %v3199_v40 = vrot.slane %v4134_v24, 5  ;;  %v1553_v15 = vshll.u32 %v3924_v30, 16  ;;  %v1741_v44 = vrot.slane %v1739_v26, 4  ;;  %v3967_v11 = vld [vmem:[%s4410_s19 + $0x3c] sm:$0xe] }
 0x15d   : > { %1903 = vst.msk [vmem:[#allocation2 + $0x24] sm:$0xf] %vm1893_vm11, %v1816_v1  ;;  %v1814_v3 = vpop.permute.xlu0 %1813  ;;  %v1704_v1 = vrot.slane %v1702_v47, 4  ;;  %v3190_v6 = vsel %vm4565_vm6, %v4157_v51, %v3189_v52  ;;  %v1718_v46 = vor.u32 %v1717_v31, %v1713_v29  ;;  %v1721_v47 = vshll.u32 %v3945_v36, 16  ;;  %v3972_v31 = vld [vmem:[%s4410_s19 + $0x50] sm:$0x1] }
 0x15e   : > { %1902 = vst.msk [vmem:[#allocation2 + $0x20] sm:$0xf] %vm1893_vm11, %v1814_v3  ;;  %2900 = vrot.lane.b32.xlu1 %v2569_v53, %s4364_s26  ;;  %v3192_v3 = vrot.slane %v4131_v57, 5  ;;  %v1747_v49 = vrot.slane %v1745_v56, 5 }
 0x15f   : > { %2377 = vrot.lane.b32.xlu0 %v4042_v58, %s4363_s25  ;;  %v4150_v58 = vrot.slane %v4108_v45, 9 }
 0x160   : > { %v1830_v14 = vpop.permute.xlu1 %1829  ;;  %v3193_v23 = vsel %vm4565_vm6, %v3191_v7, %v3192_v3 }
 0x161   : > { %1910 = vst.msk [vmem:[#allocation2 + $0x40] sm:$0xf] %vm1893_vm11, %v1830_v14  ;;  %v1818_v20 = vpop.permute.xlu0 %1817  ;;  %v3141_v19 = vsel %vm4565_vm6, %v4150_v58, %v3140_v59  ;;  %v1719_v58 = vrot.slane %v1718_v46, 4 }
 0x162   : > { %1904 = vst.msk [vmem:[#allocation2 + $0x28] sm:$0xf] %vm1893_vm11, %v1818_v20  ;;  %2932 = vrot.lane.b32.xlu1 %v2761_v8, %s4364_s26  ;;  %v4110_v8 = vld [vmem:[%s4410_s19 + $0x44] sm:$0x1]  ;;  %v3142_v20 = vrot.slane %v3140_v59, 4  ;;  %v1723_v59 = vrot.slane %v1721_v47, 5 }
 0x163   : > { %2902 = vrot.lane.b32.xlu0 %v2579_v9, %s4364_s26  ;;  %v3143_v21 = vrot.slane %v4110_v8, 5  ;;  %v3969_v8 = vld [vmem:[%s4410_s19 + $0x44] sm:$0x1] }
 0x164   : > { %v1834_v5 = vpop.permute.xlu1 %1833  ;;  %v1724_v7 = vsel %vm4421_vm2, %v1719_v58, %v1723_v59 }
 0x165   : > { %1912 = vst.msk [vmem:[#allocation2 + $0x48] sm:$0xf] %vm1893_vm11, %v1834_v5  ;;  %v1832_v32 = vpop.permute.xlu0 %1831  ;;  %v1549_v5 = vrot.slane %v1547_v4, 4  ;;  %v2052_v4 = vrot.slane %v3968_v63, 5  ;;  %v4028_v63 = vld [vmem:[%s4410_s19 + $0x4c] sm:$0xf] }
 0x166   : > { %1911 = vst.msk [vmem:[#allocation2 + $0x44] sm:$0xf] %vm1893_vm11, %v1832_v32  ;;  %2904 = vrot.lane.b32.xlu1 %v2593_v22, %s4364_s26  ;;  %v1708_v22 = vor.u32 %v1707_v2, %v1704_v1  ;;  %v1726_v32 = vshrl.u32 %v3946_v18, 16 }
 0x167   : > { %2934 = vrot.lane.b32.xlu0 %v2771_v25, %s4364_s26  ;;  %v1735_v25 = vshll.u32 %v3947_v13, 16  ;;  %v1550_v42 = vor.u32 %v1549_v5, %v4957_v60  ;;  %v2054_v13 = vrot.slane %v2052_v4, 4 }
 0x168   : > { %v2135_v37 = vpop.permute.xlu1 %2134 }
 0x169   : > { %2231 = vst.msk [vmem:[#allocation2] sm:$0xf] %vm2230_vm12, %v2135_v37  ;;  %v1836_v43 = vpop.permute.xlu0 %1835  ;;  %v3144_v37 = vsel %vm4565_vm6, %v3142_v20, %v3143_v21  ;;  %v3993_v20 = vld [vmem:[%s4410_s19 + $0xa4] sm:$0x1]  ;;  %v3971_v21 = vld [vmem:[%s4410_s19 + $0x4c] sm:$0xf] }
 0x16a   : > { %1913 = vst.msk [vmem:[#allocation2 + $0x4c] sm:$0xf] %vm1893_vm11, %v1836_v43  ;;  %2936 = vrot.lane.b32.xlu1 %v2785_v33, %s4364_s26  ;;  %v1729_v33 = vshll.u32 %v3946_v18, 16  ;;  %v1737_v43 = vrot.slane %v1735_v25, 5  ;;  %v2111_v25 = vrot.slane %v3993_v20, 5  ;;  %v2059_v26 = vrot.slane %v3971_v21, 5 }
 0x16b   : > { %2906 = vrot.lane.b32.xlu0 %v2603_v38, %s4364_s26  ;;  %v1709_v38 = vrot.slane %v1708_v22, 4 }
 0x16c   : > { %v2167_v53 = vpop.permute.xlu1 %2166  ;;  %v1731_v51 = vrot.slane %v1729_v33, 5  ;;  %v1742_v55 = vor.u32 %v1741_v44, %v1737_v43  ;;  %v2061_v36 = vrot.slane %v2059_v26, 4  ;;  %v3994_v44 = vld [vmem:[%s4410_s19 + $0xa8] sm:$0xe] }
 0x16d   : > { %2247 = vst.msk [vmem:[#allocation2 + $0x40] sm:$0xf] %vm2230_vm12, %v2167_v53  ;;  %v2137_v41 = vpop.permute.xlu0 %2136  ;;  %v1714_v60 = vsel %vm4421_vm2, %v1709_v38, %v1713_v29  ;;  %v1551_v53 = vrot.slane %v1550_v42, 4 }
 0x16e   : > { %2232 = vst.msk [vmem:[#allocation2 + $0x4] sm:$0xf] %vm2230_vm12, %v2137_v41  ;;  %3237 = vrot.lane.b32.xlu1 %v3134_v50, %s4365_s8  ;;  %v1728_v50 = vrot.slane %v1726_v32, 4  ;;  %v3200_v41 = vsel %vm4565_vm6, %v3198_v39, %v3199_v40  ;;  %v1743_v2 = vrot.slane %v1742_v55, 4  ;;  %v3995_v32 = vld [vmem:[%s4410_s19 + $0xac] sm:$0xf] }
 0x16f   : > { %2938 = vrot.lane.b32.xlu0 %v2795_v54, %s4364_s26  ;;  %v1555_v54 = vrot.slane %v1553_v15, 5  ;;  %v2115_v38 = vrot.slane %v3995_v32, 5  ;;  %v3996_v15 = vld [vmem:[%s4410_s19 + $0xb0] sm:$0x1] }
 0x170   : > { %v2139_v9 = vpop.permute.xlu1 %2138  ;;  %v1732_v61 = vor.u32 %v1731_v51, %v1728_v50  ;;  %v1748_v12 = vsel %vm4421_vm2, %v1743_v2, %v1747_v49  ;;  %v2118_v47 = vrot.slane %v3996_v15, 5  ;;  %v4016_v51 = vrot.slane %v3994_v44, 9  ;;  %v4027_v49 = vld [vmem:[%s4410_s19 + $0x48] sm:$0xf]  ;;  %v4045_v15 = vld [vmem:[%s4410_s19 + $0xb4] sm:$0xf] }
 0x171   : > { %2233 = vst.msk [vmem:[#allocation2 + $0x8] sm:$0xf] %vm2230_vm12, %v2139_v9  ;;  %v2169_v14 = vpop.permute.xlu0 %2168  ;;  %v1556_v1 = vsel %vm4421_vm2, %v1551_v53, %v1555_v54  ;;  %v3992_v9 = vld [vmem:[%s4410_s19 + $0xa0] sm:$0xf]  ;;  %v2117_v46 = vrot.slane %v2115_v38, 4 }
 0x172   : > { %2248 = vst.msk [vmem:[#allocation2 + $0x44] sm:$0xf] %vm2230_vm12, %v2169_v14  ;;  %3269 = vrot.lane.b32.xlu1 %v3190_v6, %s4365_s8  ;;  %v1733_v3 = vrot.slane %v1732_v61, 4  ;;  %v2055_v14 = vrot.slane %v3969_v8, 5  ;;  %v2108_v16 = vrot.slane %v3992_v9, 5  ;;  %v2116_v56 = vsel %vm4565_vm6, %v4016_v51, %v2115_v38 }
 0x173   : > { %3239 = vrot.lane.b32.xlu0 %v3137_v10, %s4365_s8  ;;  %v4063_v53 = vld [vmem:[%s4410_s19 + $0x48] sm:$0xf]  ;;  %v2119_v54 = vsel %vm4565_vm6, %v2117_v46, %v2118_v47  ;;  %v4065_v9 = vld [vmem:[%s4410_s19 + $0x50] sm:$0x1]  ;;  %v4068_v47 = vld [vmem:[%s4410_s19 + $0x5c] sm:$0x1] }
 0x174   : > { %v2171_v28 = vpop.permute.xlu1 %2170  ;;  %v1738_v18 = vsel %vm4421_vm2, %v1733_v3, %v1737_v43  ;;  %v2056_v24 = vsel %vm4565_vm6, %v2054_v13, %v2055_v14  ;;  %v2110_v5 = vrot.slane %v2108_v16, 4  ;;  %v2605_v59 = vshrl.u32 %v4063_v53, 16  ;;  %v4044_v14 = vld [vmem:[%s4410_s19 + $0xac] sm:$0xf] }
 0x175   : > { %2249 = vst.msk [vmem:[#allocation2 + $0x48] sm:$0xf] %vm2230_vm12, %v2171_v28  ;;  %v2141_v34 = vpop.permute.xlu0 %2140  ;;  %v2608_v61 = vshll.u32 %v4063_v53, 16  ;;  %v2624_v21 = vshll.u32 %v4065_v9, 16 }
 0x176   : > { %2234 = vst.msk [vmem:[#allocation2 + $0xc] sm:$0xf] %vm2230_vm12, %v2141_v34  ;;  %3241 = vrot.lane.b32.xlu1 %v3141_v19, %s4365_s8  ;;  %v4007_v19 = vrot.slane %v3967_v11, 9  ;;  %v3970_v34 = vld [vmem:[%s4410_s19 + $0x48] sm:$0xe]  ;;  %v2607_v3 = vrot.slane %v2605_v59, 4 }
 0x177   : > { %3271 = vrot.lane.b32.xlu0 %v3193_v23, %s4365_s8  ;;  %v3991_v23 = vld [vmem:[%s4410_s19 + $0x9c] sm:$0xe]  ;;  %v4008_v42 = vrot.slane %v3970_v34, 9  ;;  %v2610_v8 = vrot.slane %v2608_v61, 5 }
 0x178   : > { %v2332_v45 = vpop.permute.xlu1 %2331  ;;  %v2053_v29 = vsel %vm4565_vm6, %v4007_v19, %v2052_v4  ;;  %v4015_v30 = vrot.slane %v3991_v23, 9  ;;  %v4066_v23 = vld [vmem:[%s4410_s19 + $0x54] sm:$0xf] }
 0x179   : > { %2428 = vst.msk [vmem:[#allocation2] sm:$0xf] %vm2427_vm13, %v2332_v45  ;;  %v2173_v52 = vpop.permute.xlu0 %2172  ;;  %v2060_v50 = vsel %vm4565_vm6, %v4008_v42, %v2059_v26  ;;  %v2629_v34 = vshrl.u32 %v4066_v23, 16  ;;  %v4046_v42 = vld [vmem:[%s4410_s19 + $0xb8] sm:$0xf] }
 0x17a   : > { %2250 = vst.msk [vmem:[#allocation2 + $0x4c] sm:$0xf] %vm2230_vm12, %v2173_v52  ;;  %3273 = vrot.lane.b32.xlu1 %v3197_v35, %s4365_s8  ;;  %v2112_v35 = vsel %vm4565_vm6, %v2110_v5, %v2111_v25  ;;  %v2109_v40 = vsel %vm4565_vm6, %v4015_v30, %v2108_v16  ;;  %v4089_v30 = vld [vmem:[%s4410_s19 + $0xb0] sm:$0x1] }
 0x17b   : > { %3243 = vrot.lane.b32.xlu0 %v3144_v37, %s4365_s8  ;;  %v2062_v37 = vrot.slane %v3972_v31, 5  ;;  %v2631_v53 = vrot.slane %v2629_v34, 4 }
 0x17c   : > { %v2364_v57 = vpop.permute.xlu1 %2363 }
 0x17d   : > { %2444 = vst.msk [vmem:[#allocation2 + $0x40] sm:$0xf] %vm2427_vm13, %v2364_v57  ;;  %v2334_v0 = vpop.permute.xlu0 %2333  ;;  %v2063_v45 = vsel %vm4565_vm6, %v2061_v36, %v2062_v37  ;;  %v4091_v36 = vld [vmem:[%s4410_s19 + $0xb8] sm:$0xf] }
 0x17e   : > { %2429 = vst.msk [vmem:[#allocation2 + $0x4] sm:$0xf] %vm2427_vm13, %v2334_v0  ;;  %1845 = vrot.lane.b32.xlu1 %v1714_v60, %s4361_s23  ;;  %v4064_v60 = vld [vmem:[%s4410_s19 + $0x4c] sm:$0xf]  ;;  %v2830_v51 = vshll.u32 %v4091_v36, 16 }
 0x17f   : > { %3275 = vrot.lane.b32.xlu0 %v3200_v41, %s4365_s8  ;;  %v2614_v41 = vshll.u32 %v4064_v60, 16  ;;  %v2618_v58 = vshrl.u32 %v4064_v60, 16  ;;  %v4088_v0 = vld [vmem:[%s4410_s19 + $0xac] sm:$0xf] }
 0x180   : > { %v2336_v6 = vpop.permute.xlu1 %2335  ;;  %v2810_v11 = vshrl.u32 %v4088_v0, 16 }
 0x181   : > { %2430 = vst.msk [vmem:[#allocation2 + $0x8] sm:$0xf] %vm2427_vm13, %v2336_v6  ;;  %v2366_v10 = vpop.permute.xlu0 %2365  ;;  %v5426_v6 = vrot.slane %v2614_v41, 5 }
 0x182   : > { %2445 = vst.msk [vmem:[#allocation2 + $0x44] sm:$0xf] %vm2427_vm13, %v2366_v10  ;;  %1819 = vrot.lane.b32.xlu1 %v1556_v1, %s4361_s23  ;;  %v4087_v1 = vld [vmem:[%s4410_s19 + $0xa8] sm:$0xf]  ;;  %v2806_v10 = vshll.u32 %v4088_v0, 16  ;;  %v2812_v25 = vrot.slane %v2810_v11, 4 }
 0x183   : > { %1847 = vrot.lane.b32.xlu0 %v1724_v7, %s4361_s23  ;;  %v2620_v7 = vrot.slane %v2618_v58, 4  ;;  %v2800_v13 = vshll.u32 %v4087_v1, 16 }
 0x184   : > { %v2368_v17 = vpop.permute.xlu1 %2367  ;;  %v5441_v5 = vrot.slane %v2806_v10, 5 }
 0x185   : > { %2446 = vst.msk [vmem:[#allocation2 + $0x48] sm:$0xf] %vm2427_vm13, %v2368_v17  ;;  %v2338_v22 = vpop.permute.xlu0 %2337  ;;  %v4043_v17 = vld [vmem:[%s4410_s19 + $0xa8] sm:$0xf]  ;;  %v2621_v20 = vor.u32 %v2620_v7, %v5426_v6 }
 0x186   : > { %2431 = vst.msk [vmem:[#allocation2 + $0xc] sm:$0xf] %vm2427_vm13, %v2338_v22  ;;  %1851 = vrot.lane.b32.xlu1 %v1748_v12, %s4361_s23  ;;  %v2797_v12 = vshrl.u32 %v4087_v1, 16  ;;  %v2611_v22 = vor.u32 %v2610_v8, %v2607_v3  ;;  %v2813_v44 = vor.u32 %v2812_v25, %v5441_v5  ;;  %v4092_v8 = vld [vmem:[%s4410_s19 + $0xbc] sm:$0x1] }
 0x187   : > { %1849 = vrot.lane.b32.xlu0 %v1738_v18, %s4361_s23  ;;  %v4067_v18 = vld [vmem:[%s4410_s19 + $0x58] sm:$0xf]  ;;  %v2622_v38 = vrot.slane %v2621_v20, 4 }
 0x188   : > { %v2893_v28 = vpop.permute.xlu1 %2892  ;;  %v2799_v26 = vrot.slane %v2797_v12, 4  ;;  %v2638_v31 = vshll.u32 %v4067_v18, 16  ;;  %v2642_v32 = vshrl.u32 %v4067_v18, 16  ;;  %v2814_v59 = vrot.slane %v2813_v44, 4  ;;  %v5511_v44 = vld [vmem:[%s4410_s19 + $0x58] sm:$0xf] }
 0x189   : > { %2989 = vst.msk [vmem:[#allocation2] sm:$0xf] %vm2988_vm14, %v2893_v28  ;;  %v2370_v33 = vpop.permute.xlu0 %2369  ;;  %v2802_v28 = vrot.slane %v2800_v13, 5 }
 0x18a   : > { %2447 = vst.msk [vmem:[#allocation2 + $0x4c] sm:$0xf] %vm2427_vm13, %v2370_v33  ;;  %2152 = vrot.lane.b32.xlu1 %v2056_v24, %s4362_s24  ;;  %v4030_v24 = vld [vmem:[%s4410_s19 + $0x58] sm:$0xf] }
 0x18b   : > { %2150 = vrot.lane.b32.xlu0 %v2053_v29, %s4362_s24  ;;  %v4029_v29 = vld [vmem:[%s4410_s19 + $0x54] sm:$0xf]  ;;  %v2803_v46 = vor.u32 %v2802_v28, %v2799_v26 }
 0x18c   : > { %v2925_v39 = vpop.permute.xlu1 %2924 }
 0x18d   : > { %3005 = vst.msk [vmem:[#allocation2 + $0x40] sm:$0xf] %vm2988_vm14, %v2925_v39  ;;  %v2895_v43 = vpop.permute.xlu0 %2894  ;;  %v2626_v39 = vrot.slane %v2624_v21, 5  ;;  %v2804_v0 = vrot.slane %v2803_v46, 4 }
 0x18e   : > { %2990 = vst.msk [vmem:[#allocation2 + $0x4] sm:$0xf] %vm2988_vm14, %v2895_v43  ;;  %2184 = vrot.lane.b32.xlu1 %v2112_v35, %s4362_s24  ;;  %v2632_v35 = vshll.u32 %v4066_v23, 16  ;;  %v2612_v43 = vrot.slane %v2611_v22, 4  ;;  %v4112_v22 = vld [vmem:[%s4410_s19 + $0x4c] sm:$0xf] }
 0x18f   : > { %2182 = vrot.lane.b32.xlu0 %v2109_v40, %s4362_s24  ;;  %v4090_v40 = vld [vmem:[%s4410_s19 + $0xb4] sm:$0xf]  ;;  %v2627_v58 = vsel %vm4421_vm2, %v2622_v38, %v2626_v39  ;;  %v3147_v28 = vrot.slane %v4112_v22, 5  ;;  %v3926_v38 = vld [vmem:[%s4410_s19 + $0x58] sm:$0xf] }
 0x190   : > { %v2897_v48 = vpop.permute.xlu1 %2896  ;;  %v2617_v7 = vsel %vm4421_vm2, %v2612_v43, %v5426_v6  ;;  %v3925_v39 = vld [vmem:[%s4410_s19 + $0x54] sm:$0xf]  ;;  %v4137_v43 = vld [vmem:[%s4410_s19 + $0xb0] sm:$0x1] }
 0x191   : > { %2991 = vst.msk [vmem:[#allocation2 + $0x8] sm:$0xf] %vm2988_vm14, %v2897_v48  ;;  %v2927_v52 = vpop.permute.xlu0 %2926  ;;  %v5456_v48 = vrot.slane %v2638_v31, 5 }
 0x192   : > { %3006 = vst.msk [vmem:[#allocation2 + $0x44] sm:$0xf] %vm2988_vm14, %v2927_v52  ;;  %2156 = vrot.lane.b32.xlu1 %v2063_v45, %s4362_s24  ;;  %v2816_v45 = vshll.u32 %v4089_v30, 16  ;;  %v2834_v52 = vshrl.u32 %v4091_v36, 16  ;;  %v4111_v36 = vld [vmem:[%s4410_s19 + $0x48] sm:$0xe] }
 0x193   : > { %2154 = vrot.lane.b32.xlu0 %v2060_v50, %s4362_s24  ;;  %v2644_v50 = vrot.slane %v2642_v32, 4 }
 0x194   : > { %v2929_v55 = vpop.permute.xlu1 %2928  ;;  %v2818_v61 = vrot.slane %v2816_v45, 5 }
 0x195   : > { %3007 = vst.msk [vmem:[#allocation2 + $0x48] sm:$0xf] %vm2988_vm14, %v2929_v55  ;;  %v2899_v57 = vpop.permute.xlu0 %2898  ;;  %v2821_v55 = vshrl.u32 %v4090_v40, 16  ;;  %v2645_v1 = vor.u32 %v2644_v50, %v5456_v48 }
 0x196   : > { %2992 = vst.msk [vmem:[#allocation2 + $0xc] sm:$0xf] %vm2988_vm14, %v2899_v57  ;;  %2188 = vrot.lane.b32.xlu1 %v2119_v54, %s4362_s24  ;;  %v2634_v54 = vrot.slane %v2632_v35, 5  ;;  %v2819_v13 = vsel %vm4421_vm2, %v2814_v59, %v2818_v61  ;;  %v3950_v59 = vld [vmem:[%s4410_s19 + $0xb8] sm:$0xf] }
 0x197   : > { %2186 = vrot.lane.b32.xlu0 %v2116_v56, %s4362_s24  ;;  %v2824_v56 = vshll.u32 %v4090_v40, 16  ;;  %v2823_v9 = vrot.slane %v2821_v55, 4  ;;  %v2646_v6 = vrot.slane %v2645_v1, 4  ;;  %v3949_v61 = vld [vmem:[%s4410_s19 + $0xb4] sm:$0xf] }
 0x198   : > { %v3230_v2 = vpop.permute.xlu1 %3229  ;;  %v2635_v3 = vor.u32 %v2634_v54, %v2631_v53  ;;  %v1558_v53 = vshrl.u32 %v3925_v39, 16  ;;  %v1561_v54 = vshll.u32 %v3925_v39, 16 }
 0x199   : > { %3326 = vst.msk [vmem:[#allocation2] sm:$0xf] %vm3325_vm15, %v3230_v2  ;;  %v2931_v4 = vpop.permute.xlu0 %2930  ;;  %v5466_v2 = vrot.slane %v2830_v51, 5  ;;  %v2826_v10 = vrot.slane %v2824_v56, 5  ;;  %v5519_v51 = vld [vmem:[%s4410_s19 + $0xb8] sm:$0xf] }
 0x19a   : > { %3008 = vst.msk [vmem:[#allocation2 + $0x4c] sm:$0xf] %vm2988_vm14, %v2931_v4  ;;  %2349 = vrot.lane.b32.xlu1 %v4028_v63, %s4363_s25  ;;  %v2648_v63 = vshll.u32 %v4068_v47, 16  ;;  %v2636_v20 = vrot.slane %v2635_v3, 4  ;;  %v4151_v47 = vrot.slane %v4111_v36, 9  ;;  %v3206_v56 = vrot.slane %v4137_v43, 5 }
 0x19b   : > { %2347 = vrot.lane.b32.xlu0 %v4027_v49, %s4363_s25  ;;  %v2836_v49 = vrot.slane %v2834_v52, 4  ;;  %v2827_v21 = vor.u32 %v2826_v10, %v2823_v9  ;;  %v1567_v52 = vshll.u32 %v3926_v38, 16  ;;  %v4138_v3 = vld [vmem:[%s4410_s19 + $0xb4] sm:$0xe]  ;;  %v1560_v10 = vrot.slane %v1558_v53, 4 }
 0x19c   : > { %v3262_v16 = vpop.permute.xlu1 %3261  ;;  %v2641_v31 = vsel %vm4421_vm2, %v2636_v20, %v5456_v48  ;;  %v4135_v48 = vld [vmem:[%s4410_s19 + $0xa8] sm:$0xe] }
 0x19d   : > { %3342 = vst.msk [vmem:[#allocation2 + $0x40] sm:$0xf] %vm3325_vm15, %v3262_v16  ;;  %v3232_v19 = vpop.permute.xlu0 %3231  ;;  %v2837_v16 = vor.u32 %v2836_v49, %v5466_v2  ;;  %v2828_v32 = vrot.slane %v2827_v21, 4  ;;  %v4159_v1 = vrot.slane %v4135_v48, 9  ;;  %v4140_v49 = vld [vmem:[%s4410_s19 + $0xbc] sm:$0x1] }
 0x19e   : > { %3327 = vst.msk [vmem:[#allocation2 + $0x4] sm:$0xf] %vm3325_vm15, %v3232_v19  ;;  %2381 = vrot.lane.b32.xlu1 %v4044_v14, %s4363_s25  ;;  %v2650_v14 = vrot.slane %v2648_v63, 5  ;;  %v2809_v19 = vsel %vm4421_vm2, %v2804_v0, %v5441_v5  ;;  %v3148_v0 = vsel %vm4565_vm6, %v4151_v47, %v3147_v28 }
 0x19f   : > { %2379 = vrot.lane.b32.xlu0 %v4043_v17, %s4363_s25  ;;  %v2840_v17 = vshll.u32 %v4092_v8, 16  ;;  %v2838_v25 = vrot.slane %v2837_v16, 4  ;;  %v2833_v46 = vsel %vm4421_vm2, %v2828_v32, %v5466_v2  ;;  %v4114_v2 = vld [vmem:[%s4410_s19 + $0x54] sm:$0xe]  ;;  %v5537_v8 = vrot.slane %v1567_v52, 5 }
 0x1a0   : > { %v3234_v33 = vpop.permute.xlu1 %3233  ;;  %v2651_v5 = vsel %vm4421_vm2, %v2646_v6, %v2650_v14  ;;  %v1763_v6 = vshrl.u32 %v3950_v59, 16  ;;  %v1750_v14 = vshrl.u32 %v3949_v61, 16  ;;  %v1753_v16 = vshll.u32 %v3949_v61, 16 }
 0x1a1   : > { %3328 = vst.msk [vmem:[#allocation2 + $0x8] sm:$0xf] %vm3325_vm15, %v3234_v33  ;;  %v3264_v37 = vpop.permute.xlu0 %3263  ;;  %v2842_v26 = vrot.slane %v2840_v17, 5  ;;  %v4113_v33 = vld [vmem:[%s4410_s19 + $0x50] sm:$0x1]  ;;  %v4152_v22 = vrot.slane %v4114_v2, 9 }
 0x1a2   : > { %3343 = vst.msk [vmem:[#allocation2 + $0x44] sm:$0xf] %vm3325_vm15, %v3264_v37  ;;  %2353 = vrot.lane.b32.xlu1 %v4030_v24, %s4363_s25 }
 0x1a3   : > { %2351 = vrot.lane.b32.xlu0 %v4029_v29, %s4363_s25  ;;  %v5492_v29 = vld [vmem:[%s4410_s19 + $0xac] sm:$0xf]  ;;  %v2843_v40 = vsel %vm4421_vm2, %v2838_v25, %v2842_v26  ;;  %v4160_v26 = vrot.slane %v4138_v3, 9 }
 0x1a4   : > { %v3266_v60 = vpop.permute.xlu1 %3265  ;;  %v3203_v37 = vrot.slane %v5492_v29, 5 }
 0x1a5   : > { %3344 = vst.msk [vmem:[#allocation2 + $0x48] sm:$0xf] %vm3325_vm15, %v3266_v60  ;;  %v3236_v57 = vpop.permute.xlu0 %3235  ;;  %v4316_v41 = vld [vmem:[#allocation2] sm:$0xff]   ;;  %v1571_v60 = vshrl.u32 %v3926_v38, 16 }
 0x1a6   : > { %3329 = vst.msk [vmem:[#allocation2 + $0xc] sm:$0xf] %vm3325_vm15, %v3236_v57  ;;  %2385 = vrot.lane.b32.xlu1 %v4046_v42, %s4363_s25  ;;  %4235 = vmatprep.mubr.msk.bf16.mxu0 %vm3513_vm0, %v4316_v41  ;;  %v3149_v42 = vrot.slane %v3147_v28, 4  ;;  %v3205_v55 = vrot.slane %v3203_v37, 4  ;;  %v3154_v57 = vrot.slane %v5511_v44, 5  ;;  %v3204_v21 = vsel %vm4565_vm6, %v4159_v1, %v3203_v37 }
 0x1a7   : > { %2383 = vrot.lane.b32.xlu0 %v4045_v15, %s4363_s25  ;;  %v3150_v15 = vrot.slane %v4113_v33, 5  ;;  %v1573_v9 = vrot.slane %v1571_v60, 4  ;;  %v1765_v33 = vrot.slane %v1763_v6, 4  ;;  %v3951_v37 = vld [vmem:[%s4410_s19 + $0xbc] sm:$0x1] }
 0x1a8   : > { %v1838_v4 = vpop.permute.xlu1 %1837  ;;  %v3207_v17 = vsel %vm4565_vm6, %v3205_v55, %v3206_v56  ;;  %v3953_v44 = vld [vmem:[%s4410_s19 + $0xc4] sm:$0xf]  ;;  %v1769_v53 = vshll.u32 %v3951_v37, 16  ;;  %v3975_v37 = vld [vmem:[%s4410_s19 + $0x5c] sm:$0x1] }
 0x1a9   : > { %1914 = vst.msk [vmem:[#allocation2 + $0x50] sm:$0xf] %vm1893_vm11, %v1838_v4  ;;  %v3268_v11 = vpop.permute.xlu0 %3267  ;;  %v4318_v12 = vld [vmem:[#allocation2 + $0x40] sm:$0xff]   ;;  %v3151_v41 = vsel %vm4565_vm6, %v3149_v42, %v3150_v15  ;;  %v3210_v4 = vrot.slane %v5519_v51, 5  ;;  %v1574_v28 = vor.u32 %v1573_v9, %v5537_v8  ;;  %v3155_v42 = vsel %vm4565_vm6, %v4152_v22, %v3154_v57 }
 0x1aa   : > { %3345 = vst.msk [vmem:[#allocation2 + $0x4c] sm:$0xf] %vm3325_vm15, %v3268_v11  ;;  %2910 = vrot.lane.b32.xlu1 %v2627_v58, %s4364_s26  ;;  %4251 = vmatprep.mubr.msk.bf16.mxu1 %vm3513_vm0, %v4318_v12  ;;  %v4116_v58 = vld [vmem:[%s4410_s19 + $0x5c] sm:$0x1]  ;;  %v1563_v11 = vrot.slane %v1561_v54, 5  ;;  %v1771_v3 = vrot.slane %v1769_v53, 5 }
 0x1ab   : > { %2908 = vrot.lane.b32.xlu0 %v2617_v7, %s4364_s26  ;;  %v3927_v12 = vld [vmem:[%s4410_s19 + $0x5c] sm:$0x1]  ;;  %v3211_v47 = vsel %vm4565_vm6, %v4160_v26, %v3210_v4  ;;  %v1575_v48 = vrot.slane %v1574_v28, 4  ;;  %v3952_v51 = vld [vmem:[%s4410_s19 + $0xc0] sm:$0xf] }
 0x1ac   : > { %v1842_v18 = vpop.permute.xlu1 %1841  ;;  %v1577_v29 = vshll.u32 %v3927_v12, 16  ;;  %v1777_v1 = vshll.u32 %v3952_v51, 16  ;;  %v3974_v28 = vld [vmem:[%s4410_s19 + $0x58] sm:$0xf] }
 0x1ad   : > { %1916 = vst.msk [vmem:[#allocation2 + $0x58] sm:$0xf] %vm1893_vm11, %v1842_v18  ;;  %v1840_v23 = vpop.permute.xlu0 %1839  ;;  %v4319_v24 = vld [vmem:[#allocation2 + $0x8] sm:$0xff]   ;;  %v3156_v18 = vrot.slane %v3154_v57, 4  ;;  %v1783_v57 = vshll.u32 %v3953_v44, 16 }
 0x1ae   : > { %1915 = vst.msk [vmem:[#allocation2 + $0x54] sm:$0xf] %vm1893_vm11, %v1840_v23  ;;  %2942 = vrot.lane.b32.xlu1 %v2819_v13, %s4364_s26  ;;  %4236 = vmatmul.mubr.msk.bf16.vlgmr.msra.gmra.mxu0 %vm3513_vm0, %v4319_v24  ;;  %v1759_v13 = vshll.u32 %v3950_v59, 16  ;;  %v3212_v23 = vrot.slane %v3210_v4, 4  ;;  %v3213_v24 = vrot.slane %v4140_v49, 5 }
 0x1af   : > { %2940 = vrot.lane.b32.xlu0 %v2809_v19, %s4364_s26  ;;  %v3157_v19 = vrot.slane %v4116_v58, 5  ;;  %v3930_v59 = vld [vmem:[%s4410_s19 + $0x68] sm:$0x1] }
 0x1b0   : > { %v2143_v30 = vpop.permute.xlu1 %2142  ;;  %v5553_v32 = vrot.slane %v1759_v13, 5 }
 0x1b1   : > { %2235 = vst.msk [vmem:[#allocation2 + $0x10] sm:$0xf] %vm2230_vm12, %v2143_v30  ;;  %v1844_v34 = vpop.permute.xlu0 %1843  ;;  %v4320_v35 = vld [vmem:[#allocation2 + $0x48] sm:$0xff]   ;;  %v1564_v30 = vor.u32 %v1563_v11, %v1560_v10  ;;  %v3158_v36 = vsel %vm4565_vm6, %v3156_v18, %v3157_v19  ;;  %v1601_v10 = vshll.u32 %v3930_v59, 16  ;;  %v1785_v11 = vrot.slane %v1783_v57, 5 }
 0x1b2   : > { %1917 = vst.msk [vmem:[#allocation2 + $0x5c] sm:$0xf] %vm1893_vm11, %v1844_v34  ;;  %2914 = vrot.lane.b32.xlu1 %v2651_v5, %s4364_s26  ;;  %4252 = vmatmul.mubr.msk.bf16.vlgmr.msra.gmra.mxu1 %vm3513_vm0, %v4320_v35  ;;  %v3929_v5 = vld [vmem:[%s4410_s19 + $0x64] sm:$0xf]  ;;  %v1752_v34 = vrot.slane %v1750_v14, 4  ;;  %v1755_v35 = vrot.slane %v1753_v16, 5  ;;  %v1766_v60 = vor.u32 %v1765_v33, %v5553_v32 }
 0x1b3   : > { %2912 = vrot.lane.b32.xlu0 %v2641_v31, %s4364_s26  ;;  %v3928_v31 = vld [vmem:[%s4410_s19 + $0x60] sm:$0xf]  ;;  %v1591_v38 = vshll.u32 %v3929_v5, 16  ;;  %v1595_v39 = vshrl.u32 %v3929_v5, 16  ;;  %v1565_v52 = vrot.slane %v1564_v30, 4  ;;  %v1779_v18 = vrot.slane %v1777_v1, 5 }
 0x1b4   : > { %v2175_v45 = vpop.permute.xlu1 %2174  ;;  %v1582_v15 = vshrl.u32 %v3928_v31, 16  ;;  %v1585_v43 = vshll.u32 %v3928_v31, 16  ;;  %v1756_v54 = vor.u32 %v1755_v35, %v1752_v34  ;;  %v3954_v16 = vld [vmem:[%s4410_s19 + $0xc8] sm:$0x1]  ;;  %v2066_v33 = vrot.slane %v3974_v28, 5 }
 0x1b5   : > { %2251 = vst.msk [vmem:[#allocation2 + $0x50] sm:$0xf] %vm2230_vm12, %v2175_v45  ;;  %v2145_v50 = vpop.permute.xlu0 %2144  ;;  %v5572_v55 = vrot.slane %v1591_v38, 5  ;;  %v1597_v56 = vrot.slane %v1595_v39, 4  ;;  %v1570_v4 = vsel %vm4421_vm2, %v1565_v52, %v5537_v8  ;;  %v3998_v38 = vld [vmem:[%s4410_s19 + $0xb8] sm:$0xf] }
 0x1b6   : > { %2236 = vst.msk [vmem:[#allocation2 + $0x14] sm:$0xf] %vm2230_vm12, %v2145_v50  ;;  %2946 = vrot.lane.b32.xlu1 %v2843_v40, %s4364_s26  ;;  %v1579_v50 = vrot.slane %v1577_v29, 5  ;;  %v1584_v61 = vrot.slane %v1582_v15, 4  ;;  %v1757_v6 = vrot.slane %v1756_v54, 4  ;;  %v2068_v15 = vrot.slane %v2066_v33, 4 }
 0x1b7   : > { %2944 = vrot.lane.b32.xlu0 %v2833_v46, %s4364_s26  ;;  %v3214_v46 = vsel %vm4565_vm6, %v3212_v23, %v3213_v24  ;;  %v1598_v9 = vor.u32 %v1597_v56, %v5572_v55  ;;  %v1793_v23 = vshll.u32 %v3954_v16, 16  ;;  %v3997_v52 = vld [vmem:[%s4410_s19 + $0xb4] sm:$0xe]  ;;  %v4001_v59 = vld [vmem:[%s4410_s19 + $0xc4] sm:$0xf] }
 0x1b8   : > { %v2147_v63 = vpop.permute.xlu1 %2146  ;;  %v1580_v49 = vsel %vm4421_vm2, %v1575_v48, %v1579_v50  ;;  %v1762_v5 = vsel %vm4421_vm2, %v1757_v6, %v5553_v32  ;;  %v3999_v48 = vld [vmem:[%s4410_s19 + $0xbc] sm:$0x1]  ;;  %v3977_v50 = vld [vmem:[%s4410_s19 + $0x64] sm:$0xf] }
 0x1b9   : > { %2237 = vst.msk [vmem:[#allocation2 + $0x18] sm:$0xf] %vm2230_vm12, %v2147_v63  ;;  %v2177_v7 = vpop.permute.xlu0 %2176  ;;  %v1587_v63 = vrot.slane %v1585_v43, 5  ;;  %v1795_v32 = vrot.slane %v1793_v23, 5  ;;  %v2069_v43 = vrot.slane %v3975_v37, 5  ;;  %v2125_v54 = vrot.slane %v3999_v48, 5 }
 0x1ba   : > { %2252 = vst.msk [vmem:[#allocation2 + $0x54] sm:$0xf] %vm2230_vm12, %v2177_v7  ;;  %3247 = vrot.lane.b32.xlu1 %v3151_v41, %s4365_s8  ;;  %v1787_v41 = vshrl.u32 %v3953_v44, 16  ;;  %v1767_v7 = vrot.slane %v1766_v60, 4  ;;  %v2122_v44 = vrot.slane %v3998_v38, 5 }
 0x1bb   : > { %3245 = vrot.lane.b32.xlu0 %v3148_v0, %s4365_s8  ;;  %v1774_v0 = vshrl.u32 %v3952_v51, 16  ;;  %v1588_v14 = vor.u32 %v1587_v63, %v1584_v61  ;;  %v2070_v60 = vsel %vm4565_vm6, %v2068_v15, %v2069_v43  ;;  %v3976_v63 = vld [vmem:[%s4410_s19 + $0x60] sm:$0xe]  ;;  %v4032_v28 = vld [vmem:[%s4410_s19 + $0x64] sm:$0xf] }
 0x1bc   : > { %v2179_v20 = vpop.permute.xlu1 %2178  ;;  %v1789_v12 = vrot.slane %v1787_v41, 4  ;;  %v1772_v8 = vsel %vm4421_vm2, %v1767_v7, %v1771_v3  ;;  %v2124_v53 = vrot.slane %v2122_v44, 4  ;;  %v4017_v41 = vrot.slane %v3997_v52, 9  ;;  %v4071_v38 = vld [vmem:[%s4410_s19 + $0x68] sm:$0x1] }
 0x1bd   : > { %2253 = vst.msk [vmem:[#allocation2 + $0x58] sm:$0xf] %vm2230_vm12, %v2179_v20  ;;  %v2149_v25 = vpop.permute.xlu0 %2148  ;;  %v1599_v20 = vrot.slane %v1598_v9, 4  ;;  %v4010_v3 = vrot.slane %v3976_v63, 9  ;;  %v4002_v9 = vld [vmem:[%s4410_s19 + $0xc8] sm:$0x1] }
 0x1be   : > { %2238 = vst.msk [vmem:[#allocation2 + $0x1c] sm:$0xf] %vm2230_vm12, %v2149_v25  ;;  %3279 = vrot.lane.b32.xlu1 %v3207_v17, %s4365_s8  ;;  %v1776_v17 = vrot.slane %v1774_v0, 4  ;;  %v1790_v22 = vor.u32 %v1789_v12, %v1785_v11  ;;  %v1589_v25 = vrot.slane %v1588_v14, 4  ;;  %v2126_v0 = vsel %vm4565_vm6, %v2124_v53, %v2125_v54  ;;  %v4048_v43 = vld [vmem:[%s4410_s19 + $0xc4] sm:$0xf] }
 0x1bf   : > { %3277 = vrot.lane.b32.xlu0 %v3204_v21, %s4365_s8  ;;  %v1603_v21 = vrot.slane %v1601_v10, 5  ;;  %v2123_v7 = vsel %vm4565_vm6, %v4017_v41, %v2122_v44  ;;  %v2132_v6 = vrot.slane %v4002_v9, 5  ;;  %v2672_v52 = vshll.u32 %v4071_v38, 16  ;;  %v4072_v53 = vld [vmem:[%s4410_s19 + $0x6c] sm:$0xf] }
 0x1c0   : > { %v2340_v40 = vpop.permute.xlu1 %2339  ;;  %v1780_v26 = vor.u32 %v1779_v18, %v1776_v17  ;;  %v1791_v31 = vrot.slane %v1790_v22, 4  ;;  %v1594_v35 = vsel %vm4421_vm2, %v1589_v25, %v5572_v55  ;;  %v2073_v55 = vrot.slane %v3977_v50, 5  ;;  %v4070_v18 = vld [vmem:[%s4410_s19 + $0x64] sm:$0xf]  ;;  %v4033_v54 = vld [vmem:[%s4410_s19 + $0x6c] sm:$0xf] }
 0x1c1   : > { %2432 = vst.msk [vmem:[#allocation2 + $0x10] sm:$0xf] %vm2427_vm13, %v2340_v40  ;;  %v2181_v45 = vpop.permute.xlu0 %2180  ;;  %v1604_v30 = vsel %vm4421_vm2, %v1599_v20, %v1603_v21  ;;  %v3973_v40 = vld [vmem:[%s4410_s19 + $0x54] sm:$0xe]  ;;  %v2662_v21 = vshll.u32 %v4070_v18, 16  ;;  %v2666_v22 = vshrl.u32 %v4070_v18, 16 }
 0x1c2   : > { %2254 = vst.msk [vmem:[#allocation2 + $0x5c] sm:$0xf] %vm2230_vm12, %v2181_v45  ;;  %3251 = vrot.lane.b32.xlu1 %v3158_v36, %s4365_s8  ;;  %v1781_v36 = vrot.slane %v1780_v26, 4  ;;  %v2075_v1 = vrot.slane %v2073_v55, 4  ;;  %v2074_v16 = vsel %vm4565_vm6, %v4010_v3, %v2073_v55  ;;  %v2674_v3 = vrot.slane %v2672_v52, 5 }
 0x1c3   : > { %3249 = vrot.lane.b32.xlu0 %v3155_v42, %s4365_s8  ;;  %v1796_v42 = vsel %vm4421_vm2, %v1791_v31, %v1795_v32  ;;  %v4094_v31 = vld [vmem:[%s4410_s19 + $0xc4] sm:$0xf]  ;;  %v4093_v32 = vld [vmem:[%s4410_s19 + $0xc0] sm:$0xf]  ;;  %v4096_v9 = vld [vmem:[%s4410_s19 + $0xcc] sm:$0xf] }
 0x1c4   : > { %v2372_v58 = vpop.permute.xlu1 %2371  ;;  %v2848_v15 = vshll.u32 %v4093_v32, 16 }
 0x1c5   : > { %2448 = vst.msk [vmem:[#allocation2 + $0x50] sm:$0xf] %vm2427_vm13, %v2372_v58  ;;  %v2342_v2 = vpop.permute.xlu0 %2341  ;;  %v3978_v58 = vld [vmem:[%s4410_s19 + $0x68] sm:$0x1] }
 0x1c6   : > { %2433 = vst.msk [vmem:[#allocation2 + $0x14] sm:$0xf] %vm2427_vm13, %v2342_v2  ;;  %3283 = vrot.lane.b32.xlu1 %v3214_v46, %s4365_s8  ;;  %v1786_v46 = vsel %vm4421_vm2, %v1781_v36, %v1785_v11  ;;  %v2076_v2 = vrot.slane %v3978_v58, 5  ;;  %v4000_v11 = vld [vmem:[%s4410_s19 + $0xc0] sm:$0xe]  ;;  %v2850_v41 = vrot.slane %v2848_v15, 5 }
 0x1c7   : > { %3281 = vrot.lane.b32.xlu0 %v3211_v47, %s4365_s8  ;;  %v4009_v47 = vrot.slane %v3973_v40, 9  ;;  %v4018_v17 = vrot.slane %v4000_v11, 9  ;;  %v2858_v40 = vshrl.u32 %v4094_v31, 16  ;;  %v4049_v11 = vld [vmem:[%s4410_s19 + $0xcc] sm:$0xf] }
 0x1c8   : > { %v2344_v13 = vpop.permute.xlu1 %2343  ;;  %v2077_v12 = vsel %vm4565_vm6, %v2075_v1, %v2076_v2  ;;  %v2677_v1 = vshrl.u32 %v4072_v53, 16  ;;  %v2680_v2 = vshll.u32 %v4072_v53, 16 }
 0x1c9   : > { %2434 = vst.msk [vmem:[#allocation2 + $0x18] sm:$0xf] %vm2427_vm13, %v2344_v13  ;;  %v2374_v19 = vpop.permute.xlu0 %2373  ;;  %v2067_v57 = vsel %vm4565_vm6, %v4009_v47, %v2066_v33  ;;  %v4073_v47 = vld [vmem:[%s4410_s19 + $0x70] sm:$0xf] }
 0x1ca   : > { %2449 = vst.msk [vmem:[#allocation2 + $0x54] sm:$0xf] %vm2427_vm13, %v2374_v19  ;;  %1823 = vrot.lane.b32.xlu1 %v1580_v49, %s4361_s23  ;;  %v2129_v49 = vrot.slane %v4001_v59, 5  ;;  %v4095_v59 = vld [vmem:[%s4410_s19 + $0xc8] sm:$0x1]  ;;  %v2690_v63 = vshrl.u32 %v4073_v47, 16 }
 0x1cb   : > { %1821 = vrot.lane.b32.xlu0 %v1570_v4, %s4361_s23 }
 0x1cc   : > { %v2376_v24 = vpop.permute.xlu1 %2375  ;;  %v2131_v13 = vrot.slane %v2129_v49, 4  ;;  %v2692_v18 = vrot.slane %v2690_v63, 4  ;;  %v4142_v63 = vld [vmem:[%s4410_s19 + $0xc4] sm:$0xf] }
 0x1cd   : > { %2450 = vst.msk [vmem:[#allocation2 + $0x58] sm:$0xf] %vm2427_vm13, %v2376_v24  ;;  %v2346_v29 = vpop.permute.xlu0 %2345  ;;  %v2130_v24 = vsel %vm4565_vm6, %v4018_v17, %v2129_v49  ;;  %v4097_v49 = vld [vmem:[%s4410_s19 + $0xd0] sm:$0xf] }
 0x1ce   : > { %2435 = vst.msk [vmem:[#allocation2 + $0x1c] sm:$0xf] %vm2427_vm13, %v2346_v29  ;;  %1855 = vrot.lane.b32.xlu1 %v1772_v8, %s4361_s23  ;;  %v4069_v8 = vld [vmem:[%s4410_s19 + $0x60] sm:$0xf]  ;;  %v2133_v20 = vsel %vm4565_vm6, %v2131_v13, %v2132_v6  ;;  %v5663_v29 = vrot.slane %v2662_v21, 5  ;;  %v2864_v6 = vshll.u32 %v4095_v59, 16 }
 0x1cf   : > { %1853 = vrot.lane.b32.xlu0 %v1762_v5, %s4361_s23  ;;  %v2653_v25 = vshrl.u32 %v4069_v8, 16  ;;  %v2656_v26 = vshll.u32 %v4069_v8, 16  ;;  %v2882_v8 = vshrl.u32 %v4097_v49, 16  ;;  %v2679_v21 = vrot.slane %v2677_v1, 4  ;;  %v4117_v1 = vld [vmem:[%s4410_s19 + $0x60] sm:$0xe] }
 0x1d0   : > { %v2901_v34 = vpop.permute.xlu1 %2900 }
 0x1d1   : > { %2993 = vst.msk [vmem:[#allocation2 + $0x10] sm:$0xf] %vm2988_vm14, %v2901_v34  ;;  %v2378_v39 = vpop.permute.xlu0 %2377  ;;  %v4031_v34 = vld [vmem:[%s4410_s19 + $0x60] sm:$0xf]  ;;  %v2655_v36 = vrot.slane %v2653_v25, 4  ;;  %v2658_v37 = vrot.slane %v2656_v26, 5 }
 0x1d2   : > { %2451 = vst.msk [vmem:[#allocation2 + $0x5c] sm:$0xf] %vm2427_vm13, %v2378_v39  ;;  %1827 = vrot.lane.b32.xlu1 %v1604_v30, %s4361_s23  ;;  %v2668_v30 = vrot.slane %v2666_v22, 4  ;;  %v2854_v39 = vshll.u32 %v4094_v31, 16  ;;  %v2682_v22 = vrot.slane %v2680_v2, 5  ;;  %v2866_v31 = vrot.slane %v2864_v6, 5 }
 0x1d3   : > { %1825 = vrot.lane.b32.xlu0 %v1594_v35, %s4361_s23  ;;  %v4141_v6 = vld [vmem:[%s4410_s19 + $0xc0] sm:$0xe] }
 0x1d4   : > { %v2933_v45 = vpop.permute.xlu1 %2932  ;;  %v2669_v44 = vor.u32 %v2668_v30, %v5663_v29  ;;  %v5683_v55 = vrot.slane %v2854_v39, 5  ;;  %v2683_v38 = vor.u32 %v2682_v22, %v2679_v21  ;;  %v4098_v39 = vld [vmem:[%s4410_s19 + $0xd4] sm:$0x1]  ;;  %v4145_v21 = vld [vmem:[%s4410_s19 + $0xd0] sm:$0xf] }
 0x1d5   : > { %3009 = vst.msk [vmem:[#allocation2 + $0x50] sm:$0xf] %vm2988_vm14, %v2933_v45  ;;  %v2903_v51 = vpop.permute.xlu0 %2902 }
 0x1d6   : > { %2994 = vst.msk [vmem:[#allocation2 + $0x14] sm:$0xf] %vm2988_vm14, %v2903_v51  ;;  %1859 = vrot.lane.b32.xlu1 %v1796_v42, %s4361_s23  ;;  %v2845_v42 = vshrl.u32 %v4093_v32, 16  ;;  %v4034_v51 = vld [vmem:[%s4410_s19 + $0x70] sm:$0xf]  ;;  %v2670_v58 = vrot.slane %v2669_v44, 4 }
 0x1d7   : > { %1857 = vrot.lane.b32.xlu0 %v1786_v46, %s4361_s23  ;;  %v4047_v46 = vld [vmem:[%s4410_s19 + $0xc0] sm:$0xf] }
 0x1d8   : > { %v2905_v56 = vpop.permute.xlu1 %2904  ;;  %v2675_v26 = vsel %vm4421_vm2, %v2670_v58, %v2674_v3 }
 0x1d9   : > { %2995 = vst.msk [vmem:[#allocation2 + $0x18] sm:$0xf] %vm2988_vm14, %v2905_v56  ;;  %v2935_v61 = vpop.permute.xlu0 %2934  ;;  %v2860_v56 = vrot.slane %v2858_v40, 4 }
 0x1da   : > { %3010 = vst.msk [vmem:[#allocation2 + $0x54] sm:$0xf] %vm2988_vm14, %v2935_v61  ;;  %2160 = vrot.lane.b32.xlu1 %v2070_v60, %s4362_s24  ;;  %v2659_v60 = vor.u32 %v2658_v37, %v2655_v36  ;;  %v2686_v61 = vshll.u32 %v4073_v47, 16  ;;  %v2888_v47 = vshll.u32 %v4098_v39, 16 }
 0x1db   : > { %2158 = vrot.lane.b32.xlu0 %v2067_v57, %s4362_s24  ;;  %v2847_v57 = vrot.slane %v2845_v42, 4  ;;  %v2861_v13 = vor.u32 %v2860_v56, %v5683_v55 }
 0x1dc   : > { %v2937_v4 = vpop.permute.xlu1 %2936  ;;  %v5699_v17 = vrot.slane %v2686_v61, 5  ;;  %v4119_v61 = vld [vmem:[%s4410_s19 + $0x68] sm:$0x1] }
 0x1dd   : > { %3011 = vst.msk [vmem:[#allocation2 + $0x58] sm:$0xf] %vm2988_vm14, %v2937_v4  ;;  %v2907_v10 = vpop.permute.xlu0 %2906  ;;  %v2862_v30 = vrot.slane %v2861_v13, 4 }
 0x1de   : > { %2996 = vst.msk [vmem:[#allocation2 + $0x1c] sm:$0xf] %vm2988_vm14, %v2907_v10  ;;  %2192 = vrot.lane.b32.xlu1 %v2126_v0, %s4362_s24  ;;  %v4050_v10 = vld [vmem:[%s4410_s19 + $0xd0] sm:$0xf]  ;;  %v2693_v32 = vor.u32 %v2692_v18, %v5699_v17 }
 0x1df   : > { %2190 = vrot.lane.b32.xlu0 %v2123_v7, %s4362_s24 }
 0x1e0   : > { %v3238_v14 = vpop.permute.xlu1 %3237  ;;  %v2694_v44 = vrot.slane %v2693_v32, 4  ;;  %v4146_v32 = vld [vmem:[%s4410_s19 + $0xd4] sm:$0x1] }
 0x1e1   : > { %3330 = vst.msk [vmem:[#allocation2 + $0x10] sm:$0xf] %vm3325_vm15, %v3238_v14  ;;  %v2939_v19 = vpop.permute.xlu0 %2938  ;;  %v2851_v14 = vor.u32 %v2850_v41, %v2847_v57 }
 0x1e2   : > { %3012 = vst.msk [vmem:[#allocation2 + $0x5c] sm:$0xf] %vm2988_vm14, %v2939_v19  ;;  %2164 = vrot.lane.b32.xlu1 %v2077_v12, %s4362_s24  ;;  %v2660_v12 = vrot.slane %v2659_v60, 4  ;;  %v2878_v19 = vshll.u32 %v4097_v49, 16  ;;  %v4118_v60 = vld [vmem:[%s4410_s19 + $0x64] sm:$0xf] }
 0x1e3   : > { %2162 = vrot.lane.b32.xlu0 %v2074_v16, %s4362_s24  ;;  %v4074_v16 = vld [vmem:[%s4410_s19 + $0x74] sm:$0x1]  ;;  %v2852_v37 = vrot.slane %v2851_v14, 4  ;;  %v3161_v57 = vrot.slane %v4118_v60, 5 }
 0x1e4   : > { %v3270_v23 = vpop.permute.xlu1 %3269 }
 0x1e5   : > { %3346 = vst.msk [vmem:[#allocation2 + $0x50] sm:$0xf] %vm3325_vm15, %v3270_v23  ;;  %v3240_v5 = vpop.permute.xlu0 %3239  ;;  %v2869_v23 = vshrl.u32 %v4096_v9, 16  ;;  %v3163_v49 = vrot.slane %v3161_v57, 4 }
 0x1e6   : > { %3331 = vst.msk [vmem:[#allocation2 + $0x14] sm:$0xf] %vm3325_vm15, %v3240_v5  ;;  %2196 = vrot.lane.b32.xlu1 %v2133_v20, %s4362_s24 }
 0x1e7   : > { %2194 = vrot.lane.b32.xlu0 %v2130_v24, %s4362_s24  ;;  %v2872_v24 = vshll.u32 %v4096_v9, 16  ;;  %v2871_v40 = vrot.slane %v2869_v23, 4  ;;  %v4120_v23 = vld [vmem:[%s4410_s19 + $0x6c] sm:$0xe] }
 0x1e8   : > { %v3242_v33 = vpop.permute.xlu1 %3241 }
 0x1e9   : > { %3332 = vst.msk [vmem:[#allocation2 + $0x18] sm:$0xf] %vm3325_vm15, %v3242_v33  ;;  %v3272_v35 = vpop.permute.xlu0 %3271  ;;  %v2696_v33 = vshll.u32 %v4074_v16, 16  ;;  %v2874_v42 = vrot.slane %v2872_v24, 5 }
 0x1ea   : > { %3347 = vst.msk [vmem:[#allocation2 + $0x54] sm:$0xf] %vm3325_vm15, %v3272_v35  ;;  %2357 = vrot.lane.b32.xlu1 %v4032_v28, %s4363_s25  ;;  %v2665_v28 = vsel %vm4421_vm2, %v2660_v12, %v5663_v29  ;;  %v2884_v35 = vrot.slane %v2882_v8, 4  ;;  %v4121_v12 = vld [vmem:[%s4410_s19 + $0x70] sm:$0xf]  ;;  %v4161_v8 = vrot.slane %v4141_v6, 9 }
 0x1eb   : > { %2355 = vrot.lane.b32.xlu0 %v4031_v34, %s4363_s25  ;;  %v2880_v34 = vrot.slane %v2878_v19, 5  ;;  %v2875_v52 = vor.u32 %v2874_v42, %v2871_v40 }
 0x1ec   : > { %v3274_v45 = vpop.permute.xlu1 %3273 }
 0x1ed   : > { %3348 = vst.msk [vmem:[#allocation2 + $0x58] sm:$0xf] %vm3325_vm15, %v3274_v45  ;;  %v3244_v48 = vpop.permute.xlu0 %3243  ;;  %v4321_v50 = vld [vmem:[#allocation2 + $0x10] sm:$0xff]   ;;  %v2698_v45 = vrot.slane %v2696_v33, 5  ;;  %v2876_v59 = vrot.slane %v2875_v52, 4 }
 0x1ee   : > { %3333 = vst.msk [vmem:[#allocation2 + $0x1c] sm:$0xf] %vm3325_vm15, %v3244_v48  ;;  %2389 = vrot.lane.b32.xlu1 %v4048_v43, %s4363_s25  ;;  %4239 = vmatprep.mubr.msk.bf16.mxu0 %vm3513_vm0, %v4321_v50  ;;  %v2867_v43 = vsel %vm4421_vm2, %v2862_v30, %v2866_v31  ;;  %v2857_v50 = vsel %vm4421_vm2, %v2852_v37, %v5683_v55  ;;  %v2890_v55 = vrot.slane %v2888_v47, 5  ;;  %v4154_v31 = vrot.slane %v4120_v23, 9 }
 0x1ef   : > { %2387 = vrot.lane.b32.xlu0 %v4047_v46, %s4363_s25  ;;  %v2885_v46 = vor.u32 %v2884_v35, %v2880_v34  ;;  %v2881_v9 = vsel %vm4421_vm2, %v2876_v59, %v2880_v34  ;;  %v4144_v34 = vld [vmem:[%s4410_s19 + $0xcc] sm:$0xe]  ;;  %v3227_v37 = vrot.slane %v4146_v32, 5 }
 0x1f0   : > { %v1846_v0 = vpop.permute.xlu1 %1845  ;;  %v4162_v40 = vrot.slane %v4144_v34, 9 }
 0x1f1   : > { %1918 = vst.msk [vmem:[#allocation2 + $0x60] sm:$0xf] %vm1893_vm11, %v1846_v0  ;;  %v3276_v4 = vpop.permute.xlu0 %3275  ;;  %v4322_v7 = vld [vmem:[#allocation2 + $0x50] sm:$0xff]   ;;  %v2886_v56 = vrot.slane %v2885_v46, 4 }
 0x1f2   : > { %3349 = vst.msk [vmem:[#allocation2 + $0x5c] sm:$0xf] %vm3325_vm15, %v3276_v4  ;;  %2361 = vrot.lane.b32.xlu1 %v4034_v51, %s4363_s25  ;;  %4255 = vmatprep.mubr.msk.bf16.mxu1 %vm3513_vm0, %v4322_v7  ;;  %v2684_v51 = vrot.slane %v2683_v38, 4  ;;  %v3164_v4 = vrot.slane %v4119_v61, 5  ;;  %v3217_v7 = vrot.slane %v4142_v63, 5 }
 0x1f3   : > { %2359 = vrot.lane.b32.xlu0 %v4033_v54, %s4363_s25  ;;  %v2699_v54 = vsel %vm4421_vm2, %v2694_v44, %v2698_v45  ;;  %v2891_v2 = vsel %vm4421_vm2, %v2886_v56, %v2890_v55 }
 0x1f4   : > { %v1820_v20 = vpop.permute.xlu1 %1819  ;;  %v2689_v58 = vsel %vm4421_vm2, %v2684_v51, %v5699_v17  ;;  %v3165_v27 = vsel %vm4565_vm6, %v3163_v49, %v3164_v4  ;;  %v3219_v14 = vrot.slane %v3217_v7, 4  ;;  %v3168_v17 = vrot.slane %v4121_v12, 5 }
 0x1f5   : > { %1905 = vst.msk [vmem:[#allocation2 + $0x2c] sm:$0xf] %vm1893_vm11, %v1820_v20  ;;  %v1848_v5 = vpop.permute.xlu0 %1847  ;;  %v4323_v25 = vld [vmem:[#allocation2 + $0x18] sm:$0xff]   ;;  %v4122_v20 = vld [vmem:[%s4410_s19 + $0x74] sm:$0x1]  ;;  %v3218_v30 = vsel %vm4565_vm6, %v4161_v8, %v3217_v7 }
 0x1f6   : > { %1919 = vst.msk [vmem:[#allocation2 + $0x64] sm:$0xf] %vm1893_vm11, %v1848_v5  ;;  %2393 = vrot.lane.b32.xlu1 %v4050_v10, %s4363_s25  ;;  %4240 = vmatmul.mubr.msk.bf16.gmra.mxu0 %vm3513_vm0, %v4323_v25  ;;  %v4153_v10 = vrot.slane %v4117_v1, 9  ;;  %v3170_v5 = vrot.slane %v3168_v17, 4  ;;  %v3171_v25 = vrot.slane %v4122_v20, 5  ;;  %v3169_v39 = vsel %vm4565_vm6, %v4154_v31, %v3168_v17 }
 0x1f7   : > { %2391 = vrot.lane.b32.xlu0 %v4049_v11, %s4363_s25  ;;  %v4143_v11 = vld [vmem:[%s4410_s19 + $0xc8] sm:$0x1] }
 0x1f8   : > { %v1852_v36 = vpop.permute.xlu1 %1851  ;;  %v3220_v16 = vrot.slane %v4143_v11, 5  ;;  %v3162_v19 = vsel %vm4565_vm6, %v4153_v10, %v3161_v57  ;;  %v3172_v35 = vsel %vm4565_vm6, %v3170_v5, %v3171_v25 }
 0x1f9   : > { %1921 = vst.msk [vmem:[#allocation2 + $0x6c] sm:$0xf] %vm1893_vm11, %v1852_v36  ;;  %v1850_v29 = vpop.permute.xlu0 %1849  ;;  %v4324_v15 = vld [vmem:[#allocation2 + $0x58] sm:$0xff]  }
 0x1fa   : > { %1920 = vst.msk [vmem:[#allocation2 + $0x68] sm:$0xf] %vm1893_vm11, %v1850_v29  ;;  %2918 = vrot.lane.b32.xlu1 %v2675_v26, %s4364_s26  ;;  %4256 = vmatmul.mubr.msk.bf16.gmra.mxu1 %vm3513_vm0, %v4324_v15  ;;  %v3221_v24 = vsel %vm4565_vm6, %v3219_v14, %v3220_v16  ;;  %v3224_v26 = vrot.slane %v4145_v21, 5 }
 0x1fb   : > { %2916 = vrot.lane.b32.xlu0 %v2665_v28, %s4364_s26 }
 0x1fc   : > { %v2153_v48 = vpop.permute.xlu1 %2152  ;;  %v3226_v36 = vrot.slane %v3224_v26, 4 }
 0x1fd   : > { %2240 = vst.msk [vmem:[#allocation2 + $0x24] sm:$0xf] %vm2230_vm12, %v2153_v48  ;;  %v2151_v53 = vpop.permute.xlu0 %2150 }
 0x1fe   : > { %2239 = vst.msk [vmem:[#allocation2 + $0x20] sm:$0xf] %vm2230_vm12, %v2151_v53  ;;  %2950 = vrot.lane.b32.xlu1 %v2867_v43, %s4364_s26  ;;  %v3228_v29 = vsel %vm4565_vm6, %v3226_v36, %v3227_v37  ;;  %v3225_v43 = vsel %vm4565_vm6, %v4162_v40, %v3224_v26 }
 0x1ff   : > { %2948 = vrot.lane.b32.xlu0 %v2857_v50, %s4364_s26 }
 0x200   : > { %v2185_v41 = vpop.permute.xlu1 %2184 }
 0x201   : > { %2256 = vst.msk [vmem:[#allocation2 + $0x64] sm:$0xf] %vm2230_vm12, %v2185_v41  ;;  %v2183_v0 = vpop.permute.xlu0 %2182 }
 0x202   : > { %2255 = vst.msk [vmem:[#allocation2 + $0x60] sm:$0xf] %vm2230_vm12, %v2183_v0  ;;  %2922 = vrot.lane.b32.xlu1 %v2699_v54, %s4364_s26 }
 0x203   : > { %2920 = vrot.lane.b32.xlu0 %v2689_v58, %s4364_s26 }
 0x204   : > { %v2157_v3 = vpop.permute.xlu1 %2156 }
 0x205   : > { %2242 = vst.msk [vmem:[#allocation2 + $0x2c] sm:$0xf] %vm2230_vm12, %v2157_v3  ;;  %v2155_v13 = vpop.permute.xlu0 %2154 }
 0x206   : > { %2241 = vst.msk [vmem:[#allocation2 + $0x28] sm:$0xf] %vm2230_vm12, %v2155_v13  ;;  %2954 = vrot.lane.b32.xlu1 %v2891_v2, %s4364_s26 }
 0x207   : > { %2952 = vrot.lane.b32.xlu0 %v2881_v9, %s4364_s26 }
 0x208   : > { %v2189_v18 = vpop.permute.xlu1 %2188 }
 0x209   : > { %2258 = vst.msk [vmem:[#allocation2 + $0x6c] sm:$0xf] %vm2230_vm12, %v2189_v18  ;;  %v2187_v22 = vpop.permute.xlu0 %2186 }
 0x20a   : > { %2257 = vst.msk [vmem:[#allocation2 + $0x68] sm:$0xf] %vm2230_vm12, %v2187_v22  ;;  %3255 = vrot.lane.b32.xlu1 %v3165_v27, %s4365_s8 }
 0x20b   : > { %3253 = vrot.lane.b32.xlu0 %v3162_v19, %s4365_s8 }
 0x20c   : > { %v2350_v28 = vpop.permute.xlu1 %2349 }
 0x20d   : > { %2437 = vst.msk [vmem:[#allocation2 + $0x24] sm:$0xf] %vm2427_vm13, %v2350_v28  ;;  %v2348_v33 = vpop.permute.xlu0 %2347 }
 0x20e   : > { %2436 = vst.msk [vmem:[#allocation2 + $0x20] sm:$0xf] %vm2427_vm13, %v2348_v33  ;;  %3287 = vrot.lane.b32.xlu1 %v3221_v24, %s4365_s8 }
 0x20f   : > { %3285 = vrot.lane.b32.xlu0 %v3218_v30, %s4365_s8  ;;  %v5839_v30 = vld [vmem:[%s5972_s2] ss:$0 sm:$0xff] }
 0x210   : > { %v2382_v38 = vpop.permute.xlu1 %2381 }
 0x211   : > { %2453 = vst.msk [vmem:[#allocation2 + $0x64] sm:$0xf] %vm2427_vm13, %v2382_v38  ;;  %v2380_v42 = vpop.permute.xlu0 %2379 }
 0x212   : > { %2452 = vst.msk [vmem:[#allocation2 + $0x60] sm:$0xf] %vm2427_vm13, %v2380_v42  ;;  %3259 = vrot.lane.b32.xlu1 %v3172_v35, %s4365_s8 }
 0x213   : > { %3257 = vrot.lane.b32.xlu0 %v3169_v39, %s4365_s8 }
 0x214   : > { %v2354_v15 = vpop.permute.xlu1 %2353 }
 0x215   : > { %2439 = vst.msk [vmem:[#allocation2 + $0x2c] sm:$0xf] %vm2427_vm13, %v2354_v15  ;;  %v2352_v44 = vpop.permute.xlu0 %2351 }
 0x216   : > { %2438 = vst.msk [vmem:[#allocation2 + $0x28] sm:$0xf] %vm2427_vm13, %v2352_v44  ;;  %3291 = vrot.lane.b32.xlu1 %v3228_v29, %s4365_s8 }
 0x217   : > { %3289 = vrot.lane.b32.xlu0 %v3225_v43, %s4365_s8 }
 0x218   : > { %v2386_v45 = vpop.permute.xlu1 %2385 }
 0x219   : > { %2455 = vst.msk [vmem:[#allocation2 + $0x6c] sm:$0xf] %vm2427_vm13, %v2386_v45  ;;  %v2384_v46 = vpop.permute.xlu0 %2383 }
 0x21a   : > { %2454 = vst.msk [vmem:[#allocation2 + $0x68] sm:$0xf] %vm2427_vm13, %v2384_v46 }
 0x21c   : > { %v2911_v47 = vpop.permute.xlu1 %2910 }
 0x21d   : > { %2998 = vst.msk [vmem:[#allocation2 + $0x24] sm:$0xf] %vm2988_vm14, %v2911_v47  ;;  %v2909_v62 = vpop.permute.xlu0 %2908 }
 0x21e   : > { %2997 = vst.msk [vmem:[#allocation2 + $0x20] sm:$0xf] %vm2988_vm14, %v2909_v62 }
 0x220   : > { %v2943_v48 = vpop.permute.xlu1 %2942 }
 0x221   : > { %3014 = vst.msk [vmem:[#allocation2 + $0x64] sm:$0xf] %vm2988_vm14, %v2943_v48  ;;  %v2941_v50 = vpop.permute.xlu0 %2940 }
 0x222   : > { %3013 = vst.msk [vmem:[#allocation2 + $0x60] sm:$0xf] %vm2988_vm14, %v2941_v50 }
 0x224   : > { %v2915_v51 = vpop.permute.xlu1 %2914 }
 0x225   : > { %3000 = vst.msk [vmem:[#allocation2 + $0x2c] sm:$0xf] %vm2988_vm14, %v2915_v51  ;;  %v2913_v52 = vpop.permute.xlu0 %2912 }
 0x226   : > { %2999 = vst.msk [vmem:[#allocation2 + $0x28] sm:$0xf] %vm2988_vm14, %v2913_v52 }
 0x228   : > { %v2947_v60 = vpop.permute.xlu1 %2946 }
 0x229   : > { %3016 = vst.msk [vmem:[#allocation2 + $0x6c] sm:$0xf] %vm2988_vm14, %v2947_v60  ;;  %v2945_v53 = vpop.permute.xlu0 %2944 }
 0x22a   : > { %3015 = vst.msk [vmem:[#allocation2 + $0x68] sm:$0xf] %vm2988_vm14, %v2945_v53 }
 0x22c   : > { %v3248_v54 = vpop.permute.xlu1 %3247 }
 0x22d   : > { %3335 = vst.msk [vmem:[#allocation2 + $0x24] sm:$0xf] %vm3325_vm15, %v3248_v54  ;;  %v3246_v56 = vpop.permute.xlu0 %3245 }
 0x22e   : > { %3334 = vst.msk [vmem:[#allocation2 + $0x20] sm:$0xf] %vm3325_vm15, %v3246_v56 }
 0x230   : > { %v3280_v55 = vpop.permute.xlu1 %3279 }
 0x231   : > { %3351 = vst.msk [vmem:[#allocation2 + $0x64] sm:$0xf] %vm3325_vm15, %v3280_v55  ;;  %v3278_v57 = vpop.permute.xlu0 %3277 }
 0x232   : > { %3350 = vst.msk [vmem:[#allocation2 + $0x60] sm:$0xf] %vm3325_vm15, %v3278_v57 }
 0x234   : > { %v3252_v41 = vpop.permute.xlu1 %3251 }
 0x235   : > { %3337 = vst.msk [vmem:[#allocation2 + $0x2c] sm:$0xf] %vm3325_vm15, %v3252_v41  ;;  %v3250_v58 = vpop.permute.xlu0 %3249  ;;  %v4325_v59 = vld [vmem:[#allocation2 + $0x20] sm:$0xff]  }
 0x236   : > { %3336 = vst.msk [vmem:[#allocation2 + $0x28] sm:$0xf] %vm3325_vm15, %v3250_v58  ;;  %4243 = vmatprep.mubr.msk.bf16.mxu0 %vm3513_vm0, %v4325_v59 }
 0x238   : > { %v3284_v61 = vpop.permute.xlu1 %3283 }
 0x239   : > { %3353 = vst.msk [vmem:[#allocation2 + $0x6c] sm:$0xf] %vm3325_vm15, %v3284_v61  ;;  %v3282_v63 = vpop.permute.xlu0 %3281  ;;  %v4326_v0 = vld [vmem:[#allocation2 + $0x60] sm:$0xff]  }
 0x23a   : > { %3352 = vst.msk [vmem:[#allocation2 + $0x68] sm:$0xf] %vm3325_vm15, %v3282_v63  ;;  %4259 = vmatprep.mubr.msk.bf16.mxu1 %vm3513_vm0, %v4326_v0 }
 0x23c   : > { %v1824_v1 = vpop.permute.xlu1 %1823 }
 0x23d   : > { %1907 = vst.msk [vmem:[#allocation2 + $0x34] sm:$0xf] %vm1893_vm11, %v1824_v1  ;;  %v1822_v2 = vpop.permute.xlu0 %1821  ;;  %v4327_v49 = vld [vmem:[#allocation2 + $0x28] sm:$0xff]  }
 0x23e   : > { %1906 = vst.msk [vmem:[#allocation2 + $0x30] sm:$0xf] %vm1893_vm11, %v1822_v2  ;;  %4244 = vmatmul.mubr.msk.bf16.gmra.mxu0 %vm3513_vm0, %v4327_v49 }
 0x240   : > { %v1856_v4 = vpop.permute.xlu1 %1855 }
 0x241   : > { %1923 = vst.msk [vmem:[#allocation2 + $0x74] sm:$0xf] %vm1893_vm11, %v1856_v4  ;;  %v1854_v7 = vpop.permute.xlu0 %1853  ;;  %v4328_v3 = vld [vmem:[#allocation2 + $0x68] sm:$0xff]  }
 0x242   : > { %1922 = vst.msk [vmem:[#allocation2 + $0x70] sm:$0xf] %vm1893_vm11, %v1854_v7  ;;  %4260 = vmatmul.mubr.msk.bf16.gmra.mxu1 %vm3513_vm0, %v4328_v3 }
 0x244   : > { %v1828_v9 = vpop.permute.xlu1 %1827 }
 0x245   : > { %1909 = vst.msk [vmem:[#allocation2 + $0x3c] sm:$0xf] %vm1893_vm11, %v1828_v9  ;;  %v1826_v10 = vpop.permute.xlu0 %1825 }
 0x246   : > { %1908 = vst.msk [vmem:[#allocation2 + $0x38] sm:$0xf] %vm1893_vm11, %v1826_v10 }
 0x248   : > { %v1860_v11 = vpop.permute.xlu1 %1859 }
 0x249   : > { %1925 = vst.msk [vmem:[#allocation2 + $0x7c] sm:$0xf] %vm1893_vm11, %v1860_v11  ;;  %v1858_v12 = vpop.permute.xlu0 %1857 }
 0x24a   : > { %1924 = vst.msk [vmem:[#allocation2 + $0x78] sm:$0xf] %vm1893_vm11, %v1858_v12 }
 0x24c   : > { %v2161_v13 = vpop.permute.xlu1 %2160 }
 0x24d   : > { %2244 = vst.msk [vmem:[#allocation2 + $0x34] sm:$0xf] %vm2230_vm12, %v2161_v13  ;;  %v2159_v6 = vpop.permute.xlu0 %2158 }
 0x24e   : > { %2243 = vst.msk [vmem:[#allocation2 + $0x30] sm:$0xf] %vm2230_vm12, %v2159_v6 }
 0x250   : > { %v2193_v27 = vpop.permute.xlu1 %2192 }
 0x251   : > { %2260 = vst.msk [vmem:[#allocation2 + $0x74] sm:$0xf] %vm2230_vm12, %v2193_v27  ;;  %v2191_v14 = vpop.permute.xlu0 %2190 }
 0x252   : > { %2259 = vst.msk [vmem:[#allocation2 + $0x70] sm:$0xf] %vm2230_vm12, %v2191_v14 }
 0x254   : > { %v2165_v16 = vpop.permute.xlu1 %2164 }
 0x255   : > { %2246 = vst.msk [vmem:[#allocation2 + $0x3c] sm:$0xf] %vm2230_vm12, %v2165_v16  ;;  %v2163_v17 = vpop.permute.xlu0 %2162 }
 0x256   : > { %2245 = vst.msk [vmem:[#allocation2 + $0x38] sm:$0xf] %vm2230_vm12, %v2163_v17 }
 0x258   : > { %v2197_v18 = vpop.permute.xlu1 %2196 }
 0x259   : > { %2262 = vst.msk [vmem:[#allocation2 + $0x7c] sm:$0xf] %vm2230_vm12, %v2197_v18  ;;  %v2195_v19 = vpop.permute.xlu0 %2194 }
 0x25a   : > { %2261 = vst.msk [vmem:[#allocation2 + $0x78] sm:$0xf] %vm2230_vm12, %v2195_v19 }
 0x25c   : > { %v2358_v8 = vpop.permute.xlu1 %2357 }
 0x25d   : > { %2441 = vst.msk [vmem:[#allocation2 + $0x34] sm:$0xf] %vm2427_vm13, %v2358_v8  ;;  %v2356_v20 = vpop.permute.xlu0 %2355 }
 0x25e   : > { %2440 = vst.msk [vmem:[#allocation2 + $0x30] sm:$0xf] %vm2427_vm13, %v2356_v20 }
 0x260   : > { %v2390_v21 = vpop.permute.xlu1 %2389 }
 0x261   : > { %2457 = vst.msk [vmem:[#allocation2 + $0x74] sm:$0xf] %vm2427_vm13, %v2390_v21  ;;  %v2388_v22 = vpop.permute.xlu0 %2387 }
 0x262   : > { %2456 = vst.msk [vmem:[#allocation2 + $0x70] sm:$0xf] %vm2427_vm13, %v2388_v22 }
 0x264   : > { %v2362_v23 = vpop.permute.xlu1 %2361 }
 0x265   : > { %2443 = vst.msk [vmem:[#allocation2 + $0x3c] sm:$0xf] %vm2427_vm13, %v2362_v23  ;;  %v2360_v24 = vpop.permute.xlu0 %2359 }
 0x266   : > { %2442 = vst.msk [vmem:[#allocation2 + $0x38] sm:$0xf] %vm2427_vm13, %v2360_v24 }
 0x268   : > { %v2394_v5 = vpop.permute.xlu1 %2393 }
 0x269   : > { %2459 = vst.msk [vmem:[#allocation2 + $0x7c] sm:$0xf] %vm2427_vm13, %v2394_v5  ;;  %v2392_v25 = vpop.permute.xlu0 %2391 }
 0x26a   : > { %2458 = vst.msk [vmem:[#allocation2 + $0x78] sm:$0xf] %vm2427_vm13, %v2392_v25 }
 0x26c   : > { %v2919_v26 = vpop.permute.xlu1 %2918 }
 0x26d   : > { %3002 = vst.msk [vmem:[#allocation2 + $0x34] sm:$0xf] %vm2988_vm14, %v2919_v26  ;;  %v2917_v28 = vpop.permute.xlu0 %2916 }
 0x26e   : > { %3001 = vst.msk [vmem:[#allocation2 + $0x30] sm:$0xf] %vm2988_vm14, %v2917_v28  ;;  %v4237_v31 = vpop.f32.mrf.mxu0 }
 0x26f   : > { %v3609_v32 = vadd.f32 %v4237_v31, %v5839_v30 }
 0x270   : > { %v2951_v33 = vpop.permute.xlu1 %2950  ;;  %v3600_v35 = vpop.f32.mrf.mxu0 }
 0x271   : > { %3018 = vst.msk [vmem:[#allocation2 + $0x74] sm:$0xf] %vm2988_vm14, %v2951_v33  ;;  %v2949_v34 = vpop.permute.xlu0 %2948  ;;  %v3601_v36 = vadd.f32 %v5839_v30, %v3600_v35 }
 0x272   : > { %3730 = vst.msk [vmem:[%s5845_s20 + $0x10] sm:$0xff] %vm3727_vm1, %v3609_v32  ;;  %v4238_v37 = vpop.f32.mrf.mxu0  ;;  %v4253_v38 = vpop.f32.mrf.mxu1 }
 0x273   : > { %3017 = vst.msk [vmem:[#allocation2 + $0x70] sm:$0xf] %vm2988_vm14, %v2949_v34  ;;  %v3612_v39 = vadd.f32 %v4238_v37, %v5839_v30  ;;  %v3673_v40 = vadd.f32 %v4253_v38, %v5839_v30 }
 0x274   : > { %3728 = vst.msk [vmem:[%s5845_s20] sm:$0xff] %vm3727_vm1, %v3601_v36  ;;  %v2923_v42 = vpop.permute.xlu1 %2922  ;;  %v3603_v15 = vpop.f32.mrf.mxu0 }
 0x275   : > { %3004 = vst.msk [vmem:[#allocation2 + $0x3c] sm:$0xf] %vm2988_vm14, %v2923_v42  ;;  %v2921_v29 = vpop.permute.xlu0 %2920  ;;  %v3604_v43 = vadd.f32 %v5839_v30, %v3603_v15  ;;  %v3664_v44 = vpop.f32.mrf.mxu1 }
 0x276   : > { %3731 = vst.msk [vmem:[%s5845_s20 + $0x18] sm:$0xff] %vm3727_vm1, %v3612_v39  ;;  %3746 = vst.msk [vmem:[%s5845_s20 + $0x90] sm:$0xff] %vm3727_vm1, %v3673_v40  ;;  %v3665_v45 = vadd.f32 %v5839_v30, %v3664_v44 }
 0x277   : > { %3003 = vst.msk [vmem:[#allocation2 + $0x38] sm:$0xf] %vm2988_vm14, %v2921_v29  ;;  %v4254_v46 = vpop.f32.mrf.mxu1 }
 0x278   : > { %3729 = vst.msk [vmem:[%s5845_s20 + $0x8] sm:$0xff] %vm3727_vm1, %v3604_v43  ;;  %v2955_v47 = vpop.permute.xlu1 %2954  ;;  %3744 = vst.msk [vmem:[%s5845_s20 + $0x80] sm:$0xff] %vm3727_vm1, %v3665_v45  ;;  %v3676_v62 = vadd.f32 %v4254_v46, %v5839_v30 }
 0x279   : > { %3020 = vst.msk [vmem:[#allocation2 + $0x7c] sm:$0xf] %vm2988_vm14, %v2955_v47  ;;  %v2953_v48 = vpop.permute.xlu0 %2952  ;;  %v3667_v50 = vpop.f32.mrf.mxu1 }
 0x27a   : > { %3019 = vst.msk [vmem:[#allocation2 + $0x78] sm:$0xf] %vm2988_vm14, %v2953_v48  ;;  %v3668_v51 = vadd.f32 %v5839_v30, %v3667_v50 }
 0x27b   : > { %3747 = vst.msk [vmem:[%s5845_s20 + $0x98] sm:$0xff] %vm3727_vm1, %v3676_v62 }
 0x27c   : > { %v3256_v52 = vpop.permute.xlu1 %3255  ;;  %3745 = vst.msk [vmem:[%s5845_s20 + $0x88] sm:$0xff] %vm3727_vm1, %v3668_v51 }
 0x27d   : > { %3339 = vst.msk [vmem:[#allocation2 + $0x34] sm:$0xf] %vm3325_vm15, %v3256_v52  ;;  %v3254_v60 = vpop.permute.xlu0 %3253 }
 0x27e   : > { %3338 = vst.msk [vmem:[#allocation2 + $0x30] sm:$0xf] %vm3325_vm15, %v3254_v60 }
 0x280   : > { %v3288_v53 = vpop.permute.xlu1 %3287 }
 0x281   : > { %3355 = vst.msk [vmem:[#allocation2 + $0x74] sm:$0xf] %vm3325_vm15, %v3288_v53  ;;  %v3286_v54 = vpop.permute.xlu0 %3285 }
 0x282   : > { %3354 = vst.msk [vmem:[#allocation2 + $0x70] sm:$0xf] %vm3325_vm15, %v3286_v54 }
 0x284   : > { %v3260_v56 = vpop.permute.xlu1 %3259 }
 0x285   : > { %3341 = vst.msk [vmem:[#allocation2 + $0x3c] sm:$0xf] %vm3325_vm15, %v3260_v56  ;;  %v3258_v55 = vpop.permute.xlu0 %3257  ;;  %v4329_v57 = vld [vmem:[#allocation2 + $0x30] sm:$0xff]  }
 0x286   : > { %3340 = vst.msk [vmem:[#allocation2 + $0x38] sm:$0xf] %vm3325_vm15, %v3258_v55  ;;  %4247 = vmatprep.mubr.msk.bf16.mxu0 %vm3513_vm0, %v4329_v57 }
 0x288   : > { %v3292_v41 = vpop.permute.xlu1 %3291 }
 0x289   : > { %3357 = vst.msk [vmem:[#allocation2 + $0x7c] sm:$0xf] %vm3325_vm15, %v3292_v41  ;;  %v3290_v58 = vpop.permute.xlu0 %3289  ;;  %v4330_v59 = vld [vmem:[#allocation2 + $0x70] sm:$0xff]  }
 0x28a   : > { %3356 = vst.msk [vmem:[#allocation2 + $0x78] sm:$0xf] %vm3325_vm15, %v3290_v58  ;;  %4263 = vmatprep.mubr.msk.bf16.mxu1 %vm3513_vm0, %v4330_v59 }
 0x28d   : > { %v4331_v61 = vld [vmem:[#allocation2 + $0x38] sm:$0xff]  }
 0x28e   : > { %4248 = vmatmul.mubr.msk.bf16.gmra.mxu0 %vm3513_vm0, %v4331_v61 }
 0x291   : > { %v4332_v63 = vld [vmem:[#allocation2 + $0x78] sm:$0xff]  }
 0x292   : > { %4264 = vmatmul.mubr.msk.bf16.gmra.mxu1 %vm3513_vm0, %v4332_v63 }
 0x2b6   : > { %v4241_v0 = vpop.f32.mrf.mxu0 }
 0x2b7   : > { %v3625_v1 = vadd.f32 %v4241_v0, %v5839_v30 }
 0x2b8   : > { %v3616_v2 = vpop.f32.mrf.mxu0 }
 0x2b9   : > { %3734 = vst.msk [vmem:[%s5845_s20 + $0x30] sm:$0xff] %vm3727_vm1, %v3625_v1  ;;  %v3617_v49 = vadd.f32 %v5839_v30, %v3616_v2 }
 0x2ba   : > { %v4242_v4 = vpop.f32.mrf.mxu0  ;;  %v4257_v7 = vpop.f32.mrf.mxu1 }
 0x2bb   : > { %3732 = vst.msk [vmem:[%s5845_s20 + $0x20] sm:$0xff] %vm3727_vm1, %v3617_v49  ;;  %v3628_v3 = vadd.f32 %v4242_v4, %v5839_v30  ;;  %v3689_v9 = vadd.f32 %v4257_v7, %v5839_v30 }
 0x2bc   : > { %v3619_v10 = vpop.f32.mrf.mxu0  ;;  %v3680_v11 = vpop.f32.mrf.mxu1 }
 0x2bd   : > { %3735 = vst.msk [vmem:[%s5845_s20 + $0x38] sm:$0xff] %vm3727_vm1, %v3628_v3  ;;  %3750 = vst.msk [vmem:[%s5845_s20 + $0xb0] sm:$0xff] %vm3727_vm1, %v3689_v9  ;;  %v3620_v12 = vadd.f32 %v5839_v30, %v3619_v10  ;;  %v3681_v13 = vadd.f32 %v5839_v30, %v3680_v11 }
 0x2be   : > { %v4258_v6 = vpop.f32.mrf.mxu1 }
 0x2bf   : > { %3733 = vst.msk [vmem:[%s5845_s20 + $0x28] sm:$0xff] %vm3727_vm1, %v3620_v12  ;;  %3748 = vst.msk [vmem:[%s5845_s20 + $0xa0] sm:$0xff] %vm3727_vm1, %v3681_v13  ;;  %v3692_v27 = vadd.f32 %v4258_v6, %v5839_v30 }
 0x2c0   : > { %v3683_v14 = vpop.f32.mrf.mxu1 }
 0x2c1   : > { %3751 = vst.msk [vmem:[%s5845_s20 + $0xb8] sm:$0xff] %vm3727_vm1, %v3692_v27  ;;  %v3684_v16 = vadd.f32 %v5839_v30, %v3683_v14 }
 0x2c3   : > { %3749 = vst.msk [vmem:[%s5845_s20 + $0xa8] sm:$0xff] %vm3727_vm1, %v3684_v16 }
 0x2fe   : > { %v4245_v17 = vpop.f32.mrf.mxu0 }
 0x2ff   : > { %v3641_v18 = vadd.f32 %v4245_v17, %v5839_v30 }
 0x300   : > { %v3632_v19 = vpop.f32.mrf.mxu0 }
 0x301   : > { %3738 = vst.msk [vmem:[%s5845_s20 + $0x50] sm:$0xff] %vm3727_vm1, %v3641_v18  ;;  %v3633_v8 = vadd.f32 %v5839_v30, %v3632_v19 }
 0x302   : > { %v4246_v20 = vpop.f32.mrf.mxu0  ;;  %v4261_v21 = vpop.f32.mrf.mxu1 }
 0x303   : > { %3736 = vst.msk [vmem:[%s5845_s20 + $0x40] sm:$0xff] %vm3727_vm1, %v3633_v8  ;;  %v3644_v22 = vadd.f32 %v4246_v20, %v5839_v30  ;;  %v3705_v23 = vadd.f32 %v4261_v21, %v5839_v30 }
 0x304   : > { %v3635_v24 = vpop.f32.mrf.mxu0  ;;  %v3696_v5 = vpop.f32.mrf.mxu1 }
 0x305   : > { %3739 = vst.msk [vmem:[%s5845_s20 + $0x58] sm:$0xff] %vm3727_vm1, %v3644_v22  ;;  %3754 = vst.msk [vmem:[%s5845_s20 + $0xd0] sm:$0xff] %vm3727_vm1, %v3705_v23  ;;  %v3636_v25 = vadd.f32 %v5839_v30, %v3635_v24  ;;  %v3697_v26 = vadd.f32 %v5839_v30, %v3696_v5 }
 0x306   : > { %v4262_v28 = vpop.f32.mrf.mxu1 }
 0x307   : > { %3737 = vst.msk [vmem:[%s5845_s20 + $0x48] sm:$0xff] %vm3727_vm1, %v3636_v25  ;;  %3752 = vst.msk [vmem:[%s5845_s20 + $0xc0] sm:$0xff] %vm3727_vm1, %v3697_v26  ;;  %v3708_v31 = vadd.f32 %v4262_v28, %v5839_v30 }
 0x308   : > { %v3699_v32 = vpop.f32.mrf.mxu1 }
 0x309   : > { %3755 = vst.msk [vmem:[%s5845_s20 + $0xd8] sm:$0xff] %vm3727_vm1, %v3708_v31  ;;  %v3700_v33 = vadd.f32 %v5839_v30, %v3699_v32 }
 0x30b   : > { %3753 = vst.msk [vmem:[%s5845_s20 + $0xc8] sm:$0xff] %vm3727_vm1, %v3700_v33 }
 0x34e   : > { %v4249_v34 = vpop.f32.mrf.mxu0 }
 0x34f   : > { %v3657_v35 = vadd.f32 %v4249_v34, %v5839_v30 }
 0x350   : > { %v3648_v36 = vpop.f32.mrf.mxu0 }
 0x351   : > { %3742 = vst.msk [vmem:[%s5845_s20 + $0x70] sm:$0xff] %vm3727_vm1, %v3657_v35  ;;  %v3649_v37 = vadd.f32 %v5839_v30, %v3648_v36 }
 0x352   : > { %v4250_v38 = vpop.f32.mrf.mxu0  ;;  %v4265_v39 = vpop.f32.mrf.mxu1 }
 0x353   : > { %3740 = vst.msk [vmem:[%s5845_s20 + $0x60] sm:$0xff] %vm3727_vm1, %v3649_v37  ;;  %v3660_v40 = vadd.f32 %v4250_v38, %v5839_v30  ;;  %v3721_v42 = vadd.f32 %v4265_v39, %v5839_v30 }
 0x354   : > { %v3651_v29 = vpop.f32.mrf.mxu0  ;;  %v3712_v15 = vpop.f32.mrf.mxu1 }
 0x355   : > { %3743 = vst.msk [vmem:[%s5845_s20 + $0x78] sm:$0xff] %vm3727_vm1, %v3660_v40  ;;  %3758 = vst.msk [vmem:[%s5845_s20 + $0xf0] sm:$0xff] %vm3727_vm1, %v3721_v42  ;;  %v3652_v43 = vadd.f32 %v5839_v30, %v3651_v29  ;;  %v3713_v44 = vadd.f32 %v5839_v30, %v3712_v15 }
 0x356   : > { %v4266_v45 = vpop.f32.mrf.mxu1 }
 0x357   : > { %3741 = vst.msk [vmem:[%s5845_s20 + $0x68] sm:$0xff] %vm3727_vm1, %v3652_v43  ;;  %3756 = vst.msk [vmem:[%s5845_s20 + $0xe0] sm:$0xff] %vm3727_vm1, %v3713_v44  ;;  %v3724_v46 = vadd.f32 %v4266_v45, %v5839_v30 }
 0x358   : > { %v3715_v47 = vpop.f32.mrf.mxu1 }
 0x359   : > { %3759 = vst.msk [vmem:[%s5845_s20 + $0xf8] sm:$0xff] %vm3727_vm1, %v3724_v46  ;;  %v3716_v62 = vadd.f32 %v5839_v30, %v3715_v47 }
 0x35b   : > { %3757 = vst.msk [vmem:[%s5845_s20 + $0xe8] sm:$0xff] %vm3727_vm1, %v3716_v62 }
 0x35c PF: > { %s13_s14 = sadd.s32 1, %s4356_s14   ;;  %s5978_s12 = smov %s4352_s13 }
 0x35d   : > { %p10_p5 = scmp.ge.s32.totalorder %s13_s14, 4   ;;  %s5979_s13 = smov %s5981_s15 }
 0x35f   :  { %12 = sbr.rel (!%p10_p5) target bundleno = 2 (0x2), region = 65 }

</bundles_post_ra>
